<compile_context>
chip_gen: v7x
topology: tpu7x:2x2x1
jax: 0.10.0
libtpu: 0.0.40
codegen_flags: <defaults>
</compile_context>

<pallas_src>
import jax
import jax.numpy as jnp
from jax import lax
from jax.experimental import pallas as pl
from jax.experimental.pallas import tpu as pltpu


def _round_up(x: int, m: int) -> int:
    return ((x + m - 1) // m) * m


# -----------------------------------------------------------------------------
# Fused kernel
# -----------------------------------------------------------------------------
def _make_kernel(num_feat_layers: int, num_cls_layers: int, n_points: int, tile_n: int):
    """Ref order: x, (w_i, b_i) for feature convs, (w_i, b_i) for classifier linears
    (only if num_cls_layers > 0), out, acc_scratch."""
    ragged = (n_points % tile_n) != 0
    fuse_head = num_cls_layers > 0

    def kernel(*refs):
        x_ref = refs[0]
        p = 1
        feat_refs = refs[p:p + 2 * num_feat_layers]
        p += 2 * num_feat_layers
        cls_refs = refs[p:p + 2 * num_cls_layers]
        p += 2 * num_cls_layers
        out_ref = refs[p]
        acc_ref = refs[p + 1]

        n_idx = pl.program_id(1)

        @pl.when(n_idx == 0)
        def _init():
            acc_ref[...] = jnp.full(acc_ref.shape, -jnp.inf, acc_ref.dtype)

        # ---- load this tile of points (bf16, channels pre-padded to cin_pad) ----
        h = x_ref[0]                                            # (tile_n, cin_pad) bf16
        if ragged:
            # Replace out-of-bounds rows of the (possibly partial) tile by the tile's first
            # valid point: duplicates of a real point leave the max-pool unchanged, and no
            # garbage/NaN ever enters the matmuls.
            valid = n_points - n_idx * tile_n
            row = lax.broadcasted_iota(jnp.int32, h.shape, 0)
            h = jnp.where(row < valid, h, h[0:1, :])

        # ---- point-wise feature extractor (Conv1d k=1 == per-point matmul) ----
        for i in range(num_feat_layers):
            w = feat_refs[2 * i][...]                           # bf16 (C_in, C_out)
            b = feat_refs[2 * i + 1][...]                       # bf16 (1, C_out)
            acc = jnp.dot(h, w, preferred_element_type=jnp.float32)
            h = acc.astype(jnp.bfloat16) + b                    # bf16 bias-add
            if i < num_feat_layers - 1:                         # last conv: BN only, no ReLU
                h = jnp.maximum(h, 0)

        # ---- max over this tile's points + running max combine (bf16) ----
        tile_max = jnp.max(h, axis=0, keepdims=True)            # (1, feat_size) bf16
        acc_ref[...] = jnp.maximum(acc_ref[...], tile_max)

        # ---- epilogue on the last N-tile of each batch element ----
        @pl.when(n_idx == pl.num_programs(1) - 1)
        def _finalize():
            g = acc_ref[...]                                    # (1, feat_size) bf16
            if fuse_head:
                for i in range(num_cls_layers):
                    w = cls_refs[2 * i][...]
                    b = cls_refs[2 * i + 1][...]
                    acc = jnp.dot(g, w, preferred_element_type=jnp.float32)
                    if i < num_cls_layers - 1:                  # hidden: bf16 bias + ReLU
                        g = jnp.maximum(acc.astype(jnp.bfloat16) + b, 0)
                    else:                                       # last linear: f32 logits
                        g = acc + b
            out_ref[...] = g.astype(out_ref.dtype).reshape(out_ref.shape)

    return kernel


# -----------------------------------------------------------------------------
# Wrapper
# -----------------------------------------------------------------------------
def pointnet_classifier_tpu(points, folded, *, tile_n=None, fuse_head=None,
                            out_dtype=jnp.float32, interpret=False):
    """points: (B, N, D) float32 pointcloud (transposed_input=False layout).
    folded: output of fold_and_pack_params(). Returns (B, padded_num_classes) logits."""
    B, N, cin = points.shape
    feat_params = list(folded["feat"])
    cls_params = list(folded["cls"])
    cin_pad = feat_params[0][0].shape[0]
    feat_size = feat_params[-1][0].shape[1]
    ncls_pad = cls_params[-1][0].shape[1]

    if fuse_head is None:
        fuse_head = B <= 8          # M=1 head matmuls only pay off for latency-bound small B

    # ---- generation-aware tile size & VMEM budget ----
    vmem_cap = 64 * 1024 * 1024     # conservative fallback (v7x-sized)
    try:
        info = pltpu.get_tpu_info()
        vmem_cap = int(getattr(info, "vmem_capacity_bytes", vmem_cap)) or vmem_cap
    except Exception:
        pass
    tile_cap = 4096 if vmem_cap >= (100 << 20) else 2048
    if tile_n is None:
        tile_n = tile_cap
    tile_n = max(16, _round_up(int(tile_n), 16))                # bf16 sublane tile = 16
    tile_n = min(tile_n, _round_up(N, 16), tile_cap)
    n_tiles = (N + tile_n - 1) // tile_n

    # ---- single fused input pass: channel pad (cin -> cin_pad) + bf16 cast.  No N padding. ----
    x = points.astype(jnp.bfloat16)
    if cin < cin_pad:
        x = jnp.pad(x, ((0, 0), (0, 0), (0, cin_pad - cin)))

    grid = (B, n_tiles)

    def const_spec(shape):                                      # weights resident in VMEM
        return pl.BlockSpec(shape, lambda b, n: (0, 0))

    in_specs = [pl.BlockSpec((1, tile_n, cin_pad), lambda b, n: (b, n, 0))]
    flat_params = []
    active_cls = cls_params if fuse_head else []
    for w, bias in feat_params + active_cls:
        in_specs.append(const_spec(w.shape))
        in_specs.append(const_spec(bias.shape))
        flat_params += [w, bias]

    out_cols = ncls_pad if fuse_head else feat_size
    out_block_dtype = out_dtype if fuse_head else jnp.bfloat16
    out_spec = pl.BlockSpec((1, 1, out_cols), lambda b, n: (b, 0, 0))

    # ---- VMEM budget computed from the real footprint (generous upper bound) ----
    nbytes = lambda a: int(a.size) * a.dtype.itemsize
    w_bytes = sum(nbytes(w) + nbytes(b) for w, b in feat_params + active_cls)
    act_bytes = tile_n * (feat_size * 10 + 4096)                # f32 dot temp + bf16 copies + misc
    vmem_limit = act_bytes + 2 * w_bytes + (8 << 20)            # 2x: pipeline double-buffering
    vmem_limit = max(vmem_limit, 32 << 20)
    vmem_limit = min(vmem_limit, int(0.75 * vmem_cap))

    kernel = _make_kernel(len(feat_params), len(active_cls), N, tile_n)

    out = pl.pallas_call(
        kernel,
        out_shape=jax.ShapeDtypeStruct((B, 1, out_cols), out_block_dtype),
        grid_spec=pltpu.PrefetchScalarGridSpec(
            num_scalar_prefetch=0,
            grid=grid,
            in_specs=in_specs,
            out_specs=out_spec,
            scratch_shapes=[pltpu.VMEM((1, feat_size), jnp.bfloat16)],
        ),
        compiler_params=pltpu.CompilerParams(
            dimension_semantics=("parallel", "arbitrary"),
            vmem_limit_bytes=int(vmem_limit),
        ),
        interpret=interpret,
    )(x, *flat_params)

    if fuse_head:
        return out.reshape(B, out_cols)                         # padded logits (B, ncls_pad)

    # ---- large-B path: classifier head as batched matmuls over pooled (B, feat) features ----
    g = out.reshape(B, feat_size)                               # bf16 pooled global features
    n_cls = len(cls_params)
    for i, (w, b) in enumerate(cls_params):
        acc = jnp.dot(g, w, preferred_element_type=jnp.float32)
        if i < n_cls - 1:
            g = jnp.maximum(acc.astype(jnp.bfloat16) + b, 0)
        else:
            g = (acc + b).astype(out_dtype)
    return g                                                    # (B, ncls_pad)


# -----------------------------------------------------------------------------
# Parameter construction, BN folding, and a pure-JAX reference
# -----------------------------------------------------------------------------
def init_raw_params(key, *, in_channels=3, feat_layer_dims=(64, 128), feat_size=1024,
                    classifier_layer_dims=(512, 256), num_classes=2):
    """PyTorch-layout params: Conv1d/Linear weights (C_out, C_in), biases, BN params."""
    dims_f = [in_channels, *feat_layer_dims, feat_size]
    dims_c = [feat_size, *classifier_layer_dims]
    n_keys = 6 * (len(dims_f) - 1) + 6 * (len(dims_c) - 1) + 2
    keys = iter(jax.random.split(key, n_keys))

    def linear_init(fan_in, fan_out):
        bound = fan_in ** -0.5
        W = jax.random.uniform(next(keys), (fan_out, fan_in), jnp.float32, -bound, bound)
        b = jax.random.uniform(next(keys), (fan_out,), jnp.float32, -bound, bound)
        return W, b

    def bn_init(c):
        gamma = jax.random.uniform(next(keys), (c,), jnp.float32, 0.5, 1.5)
        beta = jax.random.uniform(next(keys), (c,), jnp.float32, -0.2, 0.2)
        mean = 0.1 * jax.random.normal(next(keys), (c,), jnp.float32)
        var = jax.random.uniform(next(keys), (c,), jnp.float32, 0.5, 1.5)
        return gamma, beta, mean, var

    raw = {"conv": [], "conv_bn": [], "lin": [], "lin_bn": []}
    for i in range(len(dims_f) - 1):
        raw["conv"].append(linear_init(dims_f[i], dims_f[i + 1]))
        raw["conv_bn"].append(bn_init(dims_f[i + 1]))
    for i in range(len(dims_c) - 1):
        raw["lin"].append(linear_init(dims_c[i], dims_c[i + 1]))
        raw["lin_bn"].append(bn_init(dims_c[i + 1]))
    raw["last"] = linear_init(dims_c[-1], num_classes)
    return raw


def fold_and_pack_params(raw, *, in_channels, num_classes, eps=1e-5, w_dtype=jnp.bfloat16):
    """Folds eval-mode BN into weights, transposes to (C_in, C_out), pads the first input dim
    to a multiple of 8 and the final output dim to a multiple of 128.  Weights bf16; hidden
    biases bf16 (shaped (1, C)); the final linear bias stays f32."""

    def fold(W, b, bn):
        if bn is None:
            return W.T, b
        gamma, beta, mean, var = bn
        s = gamma / jnp.sqrt(var + eps)
        return W.T * s[None, :], (b - mean) * s + beta

    feat = [fold(W, b, bn) for (W, b), bn in zip(raw["conv"], raw["conv_bn"])]
    cls = [fold(W, b, bn) for (W, b), bn in zip(raw["lin"], raw["lin_bn"])]
    cls.append(fold(raw["last"][0], raw["last"][1], None))

    cin_pad = _round_up(max(in_channels, 8), 8)
    w0, b0 = feat[0]
    feat[0] = (jnp.pad(w0, ((0, cin_pad - w0.shape[0]), (0, 0))), b0)

    ncls_pad = _round_up(max(num_classes, 128), 128)
    wl, bl = cls[-1]
    cls[-1] = (jnp.pad(wl, ((0, 0), (0, ncls_pad - wl.shape[1]))),
               jnp.pad(bl, ((0, ncls_pad - bl.shape[0]),)))

    def pack(w, b, b_dtype):
        return (w.astype(w_dtype), b.astype(b_dtype).reshape(1, -1))

    feat_p = [pack(w, b, jnp.bfloat16) for w, b in feat]
    cls_p = [pack(w, b, jnp.bfloat16) for w, b in cls[:-1]] + [pack(*cls[-1], jnp.float32)]
    return {"feat": feat_p, "cls": cls_p}


def reference_forward(points, raw, *, eps=1e-5):
    """Pure-JAX f32 reference matching PyTorch eval-mode semantics."""
    def bn(x, p):
        gamma, beta, mean, var = p
        return (x - mean) / jnp.sqrt(var + eps) * gamma + beta

    h = points                                                  # (B, N, C_in)
    n_conv = len(raw["conv"])
    for i, ((W, b), bnp) in enumerate(zip(raw["conv"], raw["conv_bn"])):
        h = jnp.einsum("bnc,oc->bno", h, W) + b                 # Conv1d(kernel_size=1)
        h = bn(h, bnp)
        if i < n_conv - 1:
            h = jax.nn.relu(h)
    g = jnp.max(h, axis=1)                                      # max over points
    for (W, b), bnp in zip(raw["lin"], raw["lin_bn"]):
        g = jax.nn.relu(bn(g @ W.T + b, bnp))
    Wl, bl = raw["last"]
    return g @ Wl.T + bl


# -----------------------------------------------------------------------------
# Self-test
# -----------------------------------------------------------------------------
if __name__ == "__main__":
    B, N, CIN, NUM_CLASSES = 2, 200, 3, 2
    key = jax.random.PRNGKey(0)
    k_params, k_points = jax.random.split(key)

    raw = init_raw_params(k_params, in_channels=CIN, num_classes=NUM_CLASSES)
    points = jax.random.uniform(k_points, (B, N, CIN), jnp.float32)
    folded = fold_and_pack_params(raw, in_channels=CIN, num_classes=NUM_CLASSES)

    ref = jax.block_until_ready(reference_forward(points, raw))
    scale = float(jnp.max(jnp.abs(ref)))

    # Fused-head path (small-B latency); tile_n=128 forces 2 N-tiles incl. a ragged tail (72/128).
    out_f = jax.block_until_ready(
        pointnet_classifier_tpu(points, folded, tile_n=128, fuse_head=True))
    logits_f = out_f[:, :NUM_CLASSES]
    err_f = float(jnp.max(jnp.abs(logits_f - ref)))
    assert err_f <= 0.1 * scale + 0.05, f"fused-head mismatch: max|err|={err_f}, scale={scale}"

    # Split-head path (large-B throughput): kernel emits pooled features, head is a batched matmul.
    out_s = jax.block_until_ready(
        pointnet_classifier_tpu(points, folded, tile_n=128, fuse_head=False))
    logits_s = out_s[:, :NUM_CLASSES]
    err_s = float(jnp.max(jnp.abs(logits_s - ref)))
    assert err_s <= 0.1 * scale + 0.05, f"split-head mismatch: max|err|={err_s}, scale={scale}"

    print("KERNEL_OK")
</pallas_src>

<mosaic_0001>
module attributes {stable_mosaic.version = 11 : i64} {
  func.func @kernel(%arg0: i32, %arg1: i32, %arg2: memref<1x128x8xbf16, #tpu.memory_space<vmem>>, %arg3: memref<8x64xbf16, #tpu.memory_space<vmem>>, %arg4: memref<1x64xbf16, #tpu.memory_space<vmem>>, %arg5: memref<64x128xbf16, #tpu.memory_space<vmem>>, %arg6: memref<1x128xbf16, #tpu.memory_space<vmem>>, %arg7: memref<128x1024xbf16, #tpu.memory_space<vmem>>, %arg8: memref<1x1024xbf16, #tpu.memory_space<vmem>>, %arg9: memref<1024x512xbf16, #tpu.memory_space<vmem>>, %arg10: memref<1x512xbf16, #tpu.memory_space<vmem>>, %arg11: memref<512x256xbf16, #tpu.memory_space<vmem>>, %arg12: memref<1x256xbf16, #tpu.memory_space<vmem>>, %arg13: memref<256x128xbf16, #tpu.memory_space<vmem>>, %arg14: memref<1x128xf32, #tpu.memory_space<vmem>>, %arg15: memref<1x1x128xf32, #tpu.memory_space<vmem>>, %arg16: memref<1x1024xbf16, #tpu.memory_space<vmem>>) attributes {dimension_semantics = [#tpu.dimension_semantics<parallel>, #tpu.dimension_semantics<arbitrary>], iteration_bounds = array<i64: 2, 2>, scalar_prefetch = 0 : i64, scratch_operands = 1 : i64, tpu.core_type = #tpu.core_type<tc>, window_params = [{transform_indices = @transform_0, window_bounds = array<i64: 1, 128, 8>}, {pipeline_mode = #tpu.pipeline_mode<synchronous>, transform_indices = @transform_1, window_bounds = array<i64: 8, 64>}, {pipeline_mode = #tpu.pipeline_mode<synchronous>, transform_indices = @transform_2, window_bounds = array<i64: 1, 64>}, {pipeline_mode = #tpu.pipeline_mode<synchronous>, transform_indices = @transform_3, window_bounds = array<i64: 64, 128>}, {pipeline_mode = #tpu.pipeline_mode<synchronous>, transform_indices = @transform_4, window_bounds = array<i64: 1, 128>}, {pipeline_mode = #tpu.pipeline_mode<synchronous>, transform_indices = @transform_5, window_bounds = array<i64: 128, 1024>}, {pipeline_mode = #tpu.pipeline_mode<synchronous>, transform_indices = @transform_6, window_bounds = array<i64: 1, 1024>}, {pipeline_mode = #tpu.pipeline_mode<synchronous>, transform_indices = @transform_7, window_bounds = array<i64: 1024, 512>}, {pipeline_mode = #tpu.pipeline_mode<synchronous>, transform_indices = @transform_8, window_bounds = array<i64: 1, 512>}, {pipeline_mode = #tpu.pipeline_mode<synchronous>, transform_indices = @transform_9, window_bounds = array<i64: 512, 256>}, {pipeline_mode = #tpu.pipeline_mode<synchronous>, transform_indices = @transform_10, window_bounds = array<i64: 1, 256>}, {pipeline_mode = #tpu.pipeline_mode<synchronous>, transform_indices = @transform_11, window_bounds = array<i64: 256, 128>}, {pipeline_mode = #tpu.pipeline_mode<synchronous>, transform_indices = @transform_12, window_bounds = array<i64: 1, 128>}, {transform_indices = @transform_13, window_bounds = array<i64: 1, 1, 128>}]} {
    %c0_i32 = arith.constant 0 : i32
    %0 = arith.cmpi eq, %arg1, %c0_i32 : i32
    %1 = arith.extui %0 : i1 to i32
    %c0_i32_0 = arith.constant 0 : i32
    %2 = arith.cmpi ne, %1, %c0_i32_0 : i32
    scf.if %2 {
      %cst_25 = arith.constant 0xFF80 : bf16
      %44 = vector.broadcast %cst_25 : bf16 to vector<1x1024xbf16>
      %c0_26 = arith.constant 0 : index
      %c0_27 = arith.constant 0 : index
      %45 = vector.load %arg16[%c0_26, %c0_27] : memref<1x1024xbf16, #tpu.memory_space<vmem>>, vector<1x1024xbf16>
      tpu.vector_store %arg16[%c0_26, %c0_27], %44 {strides = array<i32>} : memref<1x1024xbf16, #tpu.memory_space<vmem>>, vector<1x1024xbf16>,
    } else {
    }
    %c0 = arith.constant 0 : index
    %c0_1 = arith.constant 0 : index
    %c0_2 = arith.constant 0 : index
    %3 = vector.load %arg2[%c0, %c0_1, %c0_2] : memref<1x128x8xbf16, #tpu.memory_space<vmem>>, vector<1x128x8xbf16>
    %4 = vector.shape_cast %3 : vector<1x128x8xbf16> to vector<128x8xbf16>
    %c128_i32 = arith.constant 128 : i32
    %5 = arith.muli %arg1, %c128_i32 : i32
    %c200_i32 = arith.constant 200 : i32
    %6 = arith.subi %c200_i32, %5 : i32
    %7 = tpu.iota {dimensions = array<i32: 0>} : vector<128x8xi32>
    %8 = vector.broadcast %6 : i32 to vector<128x8xi32>
    %9 = arith.cmpi slt, %7, %8 : vector<128x8xi32>
    %10 = vector.extract_strided_slice %4 {offsets = [0, 0], sizes = [1, 8], strides = [1, 1]} : vector<128x8xbf16> to vector<1x8xbf16>
    %11 = vector.shape_cast %10 : vector<1x8xbf16> to vector<1x8xbf16>
    %12 = vector.broadcast %11 : vector<1x8xbf16> to vector<128x8xbf16>
    %13 = arith.select %9, %4, %12 : vector<128x8xi1>, vector<128x8xbf16>
    %c0_3 = arith.constant 0 : index
    %c0_4 = arith.constant 0 : index
    %14 = vector.load %arg3[%c0_3, %c0_4] : memref<8x64xbf16, #tpu.memory_space<vmem>>, vector<8x64xbf16>
    %c0_5 = arith.constant 0 : index
    %c0_6 = arith.constant 0 : index
    %15 = vector.load %arg4[%c0_5, %c0_6] : memref<1x64xbf16, #tpu.memory_space<vmem>>, vector<1x64xbf16>
    %cst = arith.constant dense<0.000000e+00> : vector<128x64xf32>
    %16 = tpu.matmul %13, %14, %cst {dimension_numbers = #tpu.dot_dimension_numbers<[1], [0], [0], [1], [0, 0, 1, 1], [], []>} : vector<128x8xbf16>, vector<8x64xbf16>, vector<128x64xf32> -> vector<128x64xf32>
    %17 = arith.truncf %16 : vector<128x64xf32> to vector<128x64xbf16>
    %18 = vector.broadcast %15 : vector<1x64xbf16> to vector<128x64xbf16>
    %19 = arith.addf %17, %18 : vector<128x64xbf16>
    %cst_7 = arith.constant 0.000000e+00 : bf16
    %20 = vector.broadcast %cst_7 : bf16 to vector<128x64xbf16>
    %21 = arith.maximumf %19, %20 : vector<128x64xbf16>
    %c0_8 = arith.constant 0 : index
    %c0_9 = arith.constant 0 : index
    %22 = vector.load %arg5[%c0_8, %c0_9] : memref<64x128xbf16, #tpu.memory_space<vmem>>, vector<64x128xbf16>
    %c0_10 = arith.constant 0 : index
    %c0_11 = arith.constant 0 : index
    %23 = vector.load %arg6[%c0_10, %c0_11] : memref<1x128xbf16, #tpu.memory_space<vmem>>, vector<1x128xbf16>
    %cst_12 = arith.constant dense<0.000000e+00> : vector<128x128xf32>
    %24 = tpu.matmul %21, %22, %cst_12 {dimension_numbers = #tpu.dot_dimension_numbers<[1], [0], [0], [1], [0, 0, 1, 1], [], []>} : vector<128x64xbf16>, vector<64x128xbf16>, vector<128x128xf32> -> vector<128x128xf32>
    %25 = arith.truncf %24 : vector<128x128xf32> to vector<128x128xbf16>
    %26 = vector.broadcast %23 : vector<1x128xbf16> to vector<128x128xbf16>
    %27 = arith.addf %25, %26 : vector<128x128xbf16>
    %cst_13 = arith.constant 0.000000e+00 : bf16
    %28 = vector.broadcast %cst_13 : bf16 to vector<128x128xbf16>
    %29 = arith.maximumf %27, %28 : vector<128x128xbf16>
    %c0_14 = arith.constant 0 : index
    %c0_15 = arith.constant 0 : index
    %30 = vector.load %arg7[%c0_14, %c0_15] : memref<128x1024xbf16, #tpu.memory_space<vmem>>, vector<128x1024xbf16>
    %c0_16 = arith.constant 0 : index
    %c0_17 = arith.constant 0 : index
    %31 = vector.load %arg8[%c0_16, %c0_17] : memref<1x1024xbf16, #tpu.memory_space<vmem>>, vector<1x1024xbf16>
    %cst_18 = arith.constant dense<0.000000e+00> : vector<128x1024xf32>
    %32 = tpu.matmul %29, %30, %cst_18 {dimension_numbers = #tpu.dot_dimension_numbers<[1], [0], [0], [1], [0, 0, 1, 1], [], []>} : vector<128x128xbf16>, vector<128x1024xbf16>, vector<128x1024xf32> -> vector<128x1024xf32>
    %33 = arith.truncf %32 : vector<128x1024xf32> to vector<128x1024xbf16>
    %34 = vector.broadcast %31 : vector<1x1024xbf16> to vector<128x1024xbf16>
    %35 = arith.addf %33, %34 : vector<128x1024xbf16>
    %cst_19 = arith.constant dense<0xFF80> : vector<1024xbf16>
    %36 = vector.multi_reduction <maximumf>, %35, %cst_19 [0] : vector<128x1024xbf16> to vector<1024xbf16>
    %37 = vector.shape_cast %36 : vector<1024xbf16> to vector<1x1024xbf16>
    %c0_20 = arith.constant 0 : index
    %c0_21 = arith.constant 0 : index
    %38 = vector.load %arg16[%c0_20, %c0_21] : memref<1x1024xbf16, #tpu.memory_space<vmem>>, vector<1x1024xbf16>
    %39 = arith.maximumf %38, %37 : vector<1x1024xbf16>
    %c0_22 = arith.constant 0 : index
    %c0_23 = arith.constant 0 : index
    %40 = vector.load %arg16[%c0_22, %c0_23] : memref<1x1024xbf16, #tpu.memory_space<vmem>>, vector<1x1024xbf16>
    tpu.vector_store %arg16[%c0_22, %c0_23], %39 {strides = array<i32>} : memref<1x1024xbf16, #tpu.memory_space<vmem>>, vector<1x1024xbf16>,
    %c1_i32 = arith.constant 1 : i32
    %41 = arith.cmpi eq, %arg1, %c1_i32 : i32
    %42 = arith.extui %41 : i1 to i32
    %c0_i32_24 = arith.constant 0 : i32
    %43 = arith.cmpi ne, %42, %c0_i32_24 : i32
    scf.if %43 {
      %c0_25 = arith.constant 0 : index
      %c0_26 = arith.constant 0 : index
      %44 = vector.load %arg16[%c0_25, %c0_26] : memref<1x1024xbf16, #tpu.memory_space<vmem>>, vector<1x1024xbf16>
      %c0_27 = arith.constant 0 : index
      %c0_28 = arith.constant 0 : index
      %45 = vector.load %arg9[%c0_27, %c0_28] : memref<1024x512xbf16, #tpu.memory_space<vmem>>, vector<1024x512xbf16>
      %c0_29 = arith.constant 0 : index
      %c0_30 = arith.constant 0 : index
      %46 = vector.load %arg10[%c0_29, %c0_30] : memref<1x512xbf16, #tpu.memory_space<vmem>>, vector<1x512xbf16>
      %cst_31 = arith.constant dense<0.000000e+00> : vector<1x512xf32>
      %47 = tpu.matmul %44, %45, %cst_31 {dimension_numbers = #tpu.dot_dimension_numbers<[1], [0], [0], [1], [0, 0, 1, 1], [], []>} : vector<1x1024xbf16>, vector<1024x512xbf16>, vector<1x512xf32> -> vector<1x512xf32>
      %48 = arith.truncf %47 : vector<1x512xf32> to vector<1x512xbf16>
      %49 = arith.addf %48, %46 : vector<1x512xbf16>
      %cst_32 = arith.constant 0.000000e+00 : bf16
      %50 = vector.broadcast %cst_32 : bf16 to vector<1x512xbf16>
      %51 = arith.maximumf %49, %50 : vector<1x512xbf16>
      %c0_33 = arith.constant 0 : index
      %c0_34 = arith.constant 0 : index
      %52 = vector.load %arg11[%c0_33, %c0_34] : memref<512x256xbf16, #tpu.memory_space<vmem>>, vector<512x256xbf16>
      %c0_35 = arith.constant 0 : index
      %c0_36 = arith.constant 0 : index
      %53 = vector.load %arg12[%c0_35, %c0_36] : memref<1x256xbf16, #tpu.memory_space<vmem>>, vector<1x256xbf16>
      %cst_37 = arith.constant dense<0.000000e+00> : vector<1x256xf32>
      %54 = tpu.matmul %51, %52, %cst_37 {dimension_numbers = #tpu.dot_dimension_numbers<[1], [0], [0], [1], [0, 0, 1, 1], [], []>} : vector<1x512xbf16>, vector<512x256xbf16>, vector<1x256xf32> -> vector<1x256xf32>
      %55 = arith.truncf %54 : vector<1x256xf32> to vector<1x256xbf16>
      %56 = arith.addf %55, %53 : vector<1x256xbf16>
      %cst_38 = arith.constant 0.000000e+00 : bf16
      %57 = vector.broadcast %cst_38 : bf16 to vector<1x256xbf16>
      %58 = arith.maximumf %56, %57 : vector<1x256xbf16>
      %c0_39 = arith.constant 0 : index
      %c0_40 = arith.constant 0 : index
      %59 = vector.load %arg13[%c0_39, %c0_40] : memref<256x128xbf16, #tpu.memory_space<vmem>>, vector<256x128xbf16>
      %c0_41 = arith.constant 0 : index
      %c0_42 = arith.constant 0 : index
      %60 = vector.load %arg14[%c0_41, %c0_42] : memref<1x128xf32, #tpu.memory_space<vmem>>, vector<1x128xf32>
      %cst_43 = arith.constant dense<0.000000e+00> : vector<1x128xf32>
      %61 = tpu.matmul %58, %59, %cst_43 {dimension_numbers = #tpu.dot_dimension_numbers<[1], [0], [0], [1], [0, 0, 1, 1], [], []>} : vector<1x256xbf16>, vector<256x128xbf16>, vector<1x128xf32> -> vector<1x128xf32>
      %62 = arith.addf %61, %60 : vector<1x128xf32>
      %63 = vector.shape_cast %62 : vector<1x128xf32> to vector<1x1x128xf32>
      %c0_44 = arith.constant 0 : index
      %c0_45 = arith.constant 0 : index
      %c0_46 = arith.constant 0 : index
      %64 = vector.load %arg15[%c0_44, %c0_45, %c0_46] : memref<1x1x128xf32, #tpu.memory_space<vmem>>, vector<1x1x128xf32>
      tpu.vector_store %arg15[%c0_44, %c0_45, %c0_46], %63 {strides = array<i32>} : memref<1x1x128xf32, #tpu.memory_space<vmem>>, vector<1x1x128xf32>,
    } else {
    }
    return
  }
  func.func @transform_0(%arg0: i32, %arg1: i32) -> (i32, i32, i32) {
    %c0_i32 = arith.constant 0 : i32
    %c0_i32_0 = arith.constant 0 : i32
    return %arg0, %arg1, %c0_i32 : i32, i32, i32
  }
  func.func @transform_1(%arg0: i32, %arg1: i32) -> (i32, i32) {
    %c0_i32 = arith.constant 0 : i32
    %c0_i32_0 = arith.constant 0 : i32
    %c0_i32_1 = arith.constant 0 : i32
    return %c0_i32, %c0_i32_0 : i32, i32
  }
  func.func @transform_2(%arg0: i32, %arg1: i32) -> (i32, i32) {
    %c0_i32 = arith.constant 0 : i32
    %c0_i32_0 = arith.constant 0 : i32
    %c0_i32_1 = arith.constant 0 : i32
    return %c0_i32, %c0_i32_0 : i32, i32
  }
  func.func @transform_3(%arg0: i32, %arg1: i32) -> (i32, i32) {
    %c0_i32 = arith.constant 0 : i32
    %c0_i32_0 = arith.constant 0 : i32
    %c0_i32_1 = arith.constant 0 : i32
    return %c0_i32, %c0_i32_0 : i32, i32
  }
  func.func @transform_4(%arg0: i32, %arg1: i32) -> (i32, i32) {
    %c0_i32 = arith.constant 0 : i32
    %c0_i32_0 = arith.constant 0 : i32
    %c0_i32_1 = arith.constant 0 : i32
    return %c0_i32, %c0_i32_0 : i32, i32
  }
  func.func @transform_5(%arg0: i32, %arg1: i32) -> (i32, i32) {
    %c0_i32 = arith.constant 0 : i32
    %c0_i32_0 = arith.constant 0 : i32
    %c0_i32_1 = arith.constant 0 : i32
    return %c0_i32, %c0_i32_0 : i32, i32
  }
  func.func @transform_6(%arg0: i32, %arg1: i32) -> (i32, i32) {
    %c0_i32 = arith.constant 0 : i32
    %c0_i32_0 = arith.constant 0 : i32
    %c0_i32_1 = arith.constant 0 : i32
    return %c0_i32, %c0_i32_0 : i32, i32
  }
  func.func @transform_7(%arg0: i32, %arg1: i32) -> (i32, i32) {
    %c0_i32 = arith.constant 0 : i32
    %c0_i32_0 = arith.constant 0 : i32
    %c0_i32_1 = arith.constant 0 : i32
    return %c0_i32, %c0_i32_0 : i32, i32
  }
  func.func @transform_8(%arg0: i32, %arg1: i32) -> (i32, i32) {
    %c0_i32 = arith.constant 0 : i32
    %c0_i32_0 = arith.constant 0 : i32
    %c0_i32_1 = arith.constant 0 : i32
    return %c0_i32, %c0_i32_0 : i32, i32
  }
  func.func @transform_9(%arg0: i32, %arg1: i32) -> (i32, i32) {
    %c0_i32 = arith.constant 0 : i32
    %c0_i32_0 = arith.constant 0 : i32
    %c0_i32_1 = arith.constant 0 : i32
    return %c0_i32, %c0_i32_0 : i32, i32
  }
  func.func @transform_10(%arg0: i32, %arg1: i32) -> (i32, i32) {
    %c0_i32 = arith.constant 0 : i32
    %c0_i32_0 = arith.constant 0 : i32
    %c0_i32_1 = arith.constant 0 : i32
    return %c0_i32, %c0_i32_0 : i32, i32
  }
  func.func @transform_11(%arg0: i32, %arg1: i32) -> (i32, i32) {
    %c0_i32 = arith.constant 0 : i32
    %c0_i32_0 = arith.constant 0 : i32
    %c0_i32_1 = arith.constant 0 : i32
    return %c0_i32, %c0_i32_0 : i32, i32
  }
  func.func @transform_12(%arg0: i32, %arg1: i32) -> (i32, i32) {
    %c0_i32 = arith.constant 0 : i32
    %c0_i32_0 = arith.constant 0 : i32
    %c0_i32_1 = arith.constant 0 : i32
    return %c0_i32, %c0_i32_0 : i32, i32
  }
  func.func @transform_13(%arg0: i32, %arg1: i32) -> (i32, i32, i32) {
    %c0_i32 = arith.constant 0 : i32
    %c0_i32_0 = arith.constant 0 : i32
    %c0_i32_1 = arith.constant 0 : i32
    return %arg0, %c0_i32, %c0_i32_0 : i32, i32, i32
  }
}

</mosaic_0001>

<bundles_post_ra>
// kernel: tpu_custom_call.1
= control target key start
LH: loop header
LB: loop body
LE: loop exit
PB: predicated region body
PF: predicated region fallthrough
CT: control target
= control target key end

     0   :  { %s7324_s0 = inlined_call_operand.vmem [shape: bf16[2,200,8], index: 0, kind: input, shape index: {}]   ;;  %s7325_s1 = inlined_call_operand.vmem [shape: bf16[8,64], index: 1, kind: input, shape index: {}]   ;;  %s7326_s2 = inlined_call_operand.vmem [shape: bf16[1,64], index: 2, kind: input, shape index: {}]   ;;  %s7327_s3 = inlined_call_operand.vmem [shape: bf16[64,128], index: 3, kind: input, shape index: {}]   ;;  %s7328_s4 = inlined_call_operand.vmem [shape: bf16[1,128], index: 4, kind: input, shape index: {}]   ;;  %s7329_s5 = inlined_call_operand.hbm [shape: bf16[128,1024], index: 5, kind: input, shape index: {}]   ;;  %s7330_s6 = inlined_call_operand.vmem [shape: bf16[1,1024], index: 6, kind: input, shape index: {}]   ;;  %s7331_s7 = inlined_call_operand.hbm [shape: bf16[1024,512], index: 7, kind: input, shape index: {}]   ;;  %s7332_s8 = inlined_call_operand.vmem [shape: bf16[1,512], index: 8, kind: input, shape index: {}]   ;;  %s7333_s9 = inlined_call_operand.hbm [shape: bf16[512,256], index: 9, kind: input, shape index: {}]   ;;  %s7334_s10 = inlined_call_operand.vmem [shape: bf16[1,256], index: 10, kind: input, shape index: {}]   ;;  %s7335_s11 = inlined_call_operand.vmem [shape: bf16[256,128], index: 11, kind: input, shape index: {}]   ;;  %s7336_s12 = inlined_call_operand.vmem [shape: f32[1,128], index: 12, kind: input, shape index: {}]   ;;  %s7337_s13 = inlined_call_operand.hbm [shape: f32[2,1,128], index: 13, kind: output, shape index: {}]  }
   0x1   :  { %7354 = sst [smem:[#allocation23_spill]] %s7334_s10 }
   0x2   :  { %7355 = sst [smem:[#allocation24_spill]] %s7335_s11 }
   0x3   :  { %7356 = sst [smem:[#allocation25_spill]] %s7336_s12 }
   0x4   :  { %7357 = sst [smem:[#allocation26_spill]] %s7337_s13 }
   0x5   :  { %18 = vsyncpa [#allocation4], 0 }
   0x6   :  { %19 = vsyncpa [#allocation7], 0 }
   0x7   :  { %20 = vsyncpa [#allocation5], 0 }
   0x8   :  { %22 = vsyncpa [#allocation5 + $0x1], 0  ;;  %s6550_s25 = smov 0   ;;  %s6552_s26 = smov 0  }
   0x9   :  { %s6554_s27 = smov 0   ;;  %s6556_s28 = smov 0  }
   0xa   :  { %s6558_s29 = smov 0   ;;  %s6560_s30 = smov 0  }
   0xb   :  { %s6562_s14 = smov 0   ;;  %s6564_s15 = smov 0  }
   0xc LB: > { %7358 = sst [smem:[#allocation13_spill]] %s6437_s25  ;;  %s5103_s16 = sadd.s32 4294967295, %s6465_s15   ;;  %s6465_s15 = sphi %s6564_s15, %s28_s15   ;;  %s6461_s14 = sphi %s6562_s14, %s7413_s14   ;;  %s6457_s30 = sphi %s6560_s30, %s7412_s30   ;;  %s6453_s29 = sphi %s6558_s29, %s7411_s29   ;;  %s6449_s28 = sphi %s6556_s28, %s7410_s28   ;;  %s6445_s27 = sphi %s6554_s27, %s7409_s27   ;;  %s6441_s26 = sphi %s6552_s26, %s7415_s26   ;;  %s6437_s25 = sphi %s6550_s25, %s7414_s25  }
   0xd   : > { %7359 = sst [smem:[#allocation14_spill]] %s6445_s27  ;;  %s5104_s17 = sadd.s32 4294967294, %s6465_s15  }
   0xe   : > { %7360 = sst [smem:[#allocation15_spill]] %s6457_s30  ;;  %s37_s18 = sadd.s32 1, %s6457_s30 }
   0xf   : > { %7361 = sst [smem:[#allocation16_spill]] %s6461_s14  ;;  %s40_s19 = sadd.s32 1, %s6461_s14 }
  0x10   : > { %7362 = sst [smem:[#allocation17_spill]] %s6465_s15  ;;  %p38_p0 = scmp.ge.s32.totalorder %s37_s18, 2 }
  0x11   : > { %s327_s20 = sadd.s32 1, %s6445_s27  ;;  %p337_p1 = scmp.ne.s32.totalorder %s6445_s27, %s6441_s26 }
  0x12   : > { %p338_p2 = scmp.eq.s32.totalorder %s5103_s16, 3  ;;  %s7417_s18 = smov (%p38_p0, %s37_s18), 0 }
  0x13   : > { %7363 = sst [smem:[#allocation18_spill]] %s7417_s18  ;;  %s7419_s19 = smov (!%p38_p0, %s40_s19), %s6461_s14 }
  0x14   : > { %p6600_p3 = por %p338_p2, %p337_p1  ;;  %p343_p4 = scmp.ne.s32.totalorder %s6441_s26, %s6437_s25 }
  0x15   : > { %p42_p5 = scmp.ge.s32.totalorder %s7419_s19, 2  ;;  %p344_p6 = scmp.eq.s32.totalorder %s5104_s17, 3 }
  0x16   : > { %s7364_s21 = scalar_select %p6600_p3, 1, 0 }
  0x17   : > { %p5105_p7 = scmp.ge.s32.totalorder %s6465_s15, 1  ;;  %p351_p8 = scmp.lt.s32.totalorder %s6465_s15, 5 }
  0x18   : > { %7365 = sst [smem:[#allocation19_spill]] %s7364_s21  ;;  %s7421_s19 = smov (%p42_p5, %s7419_s19), 0 }
  0x19   : > { %7366 = sst [smem:[#allocation20_spill]] %s7421_s19  ;;  %p6610_p9 = por %p344_p6, %p343_p4 }
  0x1a   : > { %p6614_p10 = pnand %p5105_p7, %p351_p8  ;;  %s324_s24 = ssub.s32 %s6461_s14, %s7421_s19 }
  0x1b   : > { %s7367_s22 = scalar_select %p6610_p9, 1, 0 }
  0x1c   : > { %s7369_s23 = scalar_select %p6614_p10, 1, 0 }
  0x1d   : > { %7368 = sst [smem:[#allocation21_spill]] %s7367_s22  ;;  %p325_p11 = scmp.eq.s32.totalorder %s324_s24, 0 }
  0x1e   : > { %p5680_p12 = pneg %p6614_p10  ;;  %p6622_p13 = scmp.eq.s32.totalorder %s5103_s16, 0 }
  0x1f   : > { %s6627_s18 = scalar_select %p325_p11, %s6445_s27, %s327_s20  }
  0x20   : > { %s7370_s17 = scalar_select %p6622_p13, 1, 0 }
  0x21   : > { %7371 = sst [smem:[#allocation22_spill]] %s6627_s18  ;;  %p6631_p0 = pnand %p6622_p13, %p5680_p12 }
  0x22   : > { %s6467_s22 = smov [#allocation6]   ;;  %s6279_s14 = scalar_lea.hbm %s7331_s7, 32768 }
  0x23   : > { %s391_s25 = sshll.u32 %s6467_s22, 4  ;;  %p6280_p1 = scmp.ne.s32.totalorder %s7331_s7, %s6279_s14  ;;  %s392_s25 = int_to_ptr.vmem [resolvable:$true] %s391_s25 }
  0x24   : > { %p6643_p2 = pneg %p6631_p0  ;;  %p6286_p6 = scmp.lt.u32.totalorder %s6279_s14, %s7331_s7 }
  0x26   : > { %p6282_p4 = pnand %p6643_p2, %p6280_p1 }
  0x28   : > { %p6283_p5 = pneg %p6282_p4 }
  0x2a   : > { %p6288_p7 = pnand %p6286_p6, %p6283_p5 }
  0x2c   : > { %6291 = shalt.err (!%p6288_p7)
}
  0x2d   : > { %s6292_s19 = scalar_lea.vmem %s392_s25, 32768  ;;  %p6300_p9 = scmp.lt.s32.totalorder %s392_s25, %s392_s25 }
  0x2e   : > { %p6293_p8 = scmp.ne.s32.totalorder %s392_s25, %s6292_s19  ;;  %p6301_p3 = scmp.lt.s32.totalorder %s6292_s19, %s6292_s19 }
  0x30   : > { %p6295_p11 = pnand %p6293_p8, %p6643_p2  ;;  %p6302_p13 = por %p6301_p3, %p6300_p9 }
  0x32   : > { %p6296_p12 = pneg %p6295_p11 }
  0x34   : > { %p6303_p10 = pnand %p6302_p13, %p6296_p12 }
  0x36   : > { %6306 = shalt.err (!%p6303_p10)
}
  0x37   : > { %s6468_s15 = smov 256   ;;  %s6469_s24 = smov 16  }
  0x38   : > { %5686 = dma.hbm_to_vmem [thread:$0]  (!%p6631_p0), %s7331_s7, 32768, %s392_s25, [#allocation7], %s6468_s15, %s6468_s15, %s6469_s24  }
  0x39   : > { %s6470_s16 = smov [#allocation3]   ;;  %s6307_s21 = scalar_lea.hbm %s7329_s5, 8192 }
  0x3a   : > { %s375_s22 = sshll.u32 %s6470_s16, 4  ;;  %p6308_p3 = scmp.ne.s32.totalorder %s7329_s5, %s6307_s21  ;;  %s376_s22 = int_to_ptr.vmem [resolvable:$true] %s375_s22 }
  0x3b   : > { %p6314_p13 = scmp.lt.u32.totalorder %s6307_s21, %s7329_s5 }
  0x3c   : > { %p6310_p9 = pnand %p6308_p3, %p6643_p2 }
  0x3e   : > { %p6311_p10 = pneg %p6310_p9 }
  0x40   : > { %p6316_p1 = pnand %p6314_p13, %p6311_p10 }
  0x42   : > { %6319 = shalt.err (!%p6316_p1)
}
  0x43   : > { %s6320_s25 = scalar_lea.vmem %s376_s22, 8192  ;;  %p6328_p7 = scmp.lt.s32.totalorder %s376_s22, %s376_s22 }
  0x44   : > { %p6321_p4 = scmp.ne.s32.totalorder %s376_s22, %s6320_s25  ;;  %p6329_p8 = scmp.lt.s32.totalorder %s6320_s25, %s6320_s25 }
  0x46   : > { %p6323_p5 = pnand %p6321_p4, %p6643_p2  ;;  %p6330_p11 = por %p6329_p8, %p6328_p7 }
  0x48   : > { %p6324_p6 = pneg %p6323_p5 }
  0x4a   : > { %p6331_p12 = pnand %p6330_p11, %p6324_p6 }
  0x4c   : > { %6334 = shalt.err (!%p6331_p12)
}
  0x4d   : > { %s6471_s12 = smov 512   ;;  %s6472_s13 = smov 32  }
  0x4e   : > { %5683 = dma.hbm_to_vmem [thread:$0]  (!%p6631_p0), %s7329_s5, 8192, %s376_s22, [#allocation4], %s6471_s12, %s6471_s12, %s6472_s13  }
  0x4f   : > { %s6473_s27 = smov [#allocation8]   ;;  %s6335_s18 = scalar_lea.hbm %s7333_s9, 8192 }
  0x50   : > { %s407_s21 = sshll.u32 %s6473_s27, 4  ;;  %p6336_p3 = scmp.ne.s32.totalorder %s7333_s9, %s6335_s18  ;;  %s408_s21 = int_to_ptr.vmem [resolvable:$true] %s407_s21 }
  0x51   : > { %p6342_p13 = scmp.lt.u32.totalorder %s6335_s18, %s7333_s9 }
  0x52   : > { %p6338_p9 = pnand %p6336_p3, %p6643_p2 }
  0x54   : > { %p6339_p10 = pneg %p6338_p9 }
  0x56   : > { %p6344_p1 = pnand %p6342_p13, %p6339_p10 }
  0x58   : > { %6347 = shalt.err (!%p6344_p1)
}
  0x59   : > { %s6348_s22 = scalar_lea.vmem %s408_s21, 8192  ;;  %p6356_p7 = scmp.lt.s32.totalorder %s408_s21, %s408_s21 }
  0x5a   : > { %p6349_p4 = scmp.ne.s32.totalorder %s408_s21, %s6348_s22  ;;  %p6357_p8 = scmp.lt.s32.totalorder %s6348_s22, %s6348_s22 }
  0x5c   : > { %p6351_p5 = pnand %p6349_p4, %p6643_p2  ;;  %p6358_p11 = por %p6357_p8, %p6356_p7 }
  0x5e   : > { %p6352_p6 = pneg %p6351_p5 }
  0x60   : > { %p6359_p12 = pnand %p6358_p11, %p6352_p6 }
  0x62   : > { %6362 = shalt.err (!%p6359_p12)
}
  0x63   : > { %s6474_s12 = smov 128   ;;  %s6475_s13 = smov 8  }
  0x64   : > { %5689 = dma.hbm_to_vmem [thread:$0]  (!%p6631_p0), %s7333_s9, 8192, %s408_s21, [#allocation7], %s6474_s12, %s6474_s12, %s6475_s13  }
  0x65   : > { %p7374_p3 = scmp.ne.s32.totalorder %s7369_s23, 0 }
  0x66   : > { %p7375_p9 = scmp.ne.s32.totalorder (!%p7374_p3), %s7370_s17, 0 }
  0x67   : > { %453 = sbr.rel (%p7374_p3) target bundleno = 1938 (0x792), region = 72 }
  0x6e   : > { %6424 = dma.done.wait (%p7375_p9), [#allocation4], 8192  }
  0x6f   : > { %6426 = vsyncadd (%p7375_p9), [#allocation4], 4294959104 }
  0x70   : > { %6428 = dma.done.wait (%p7375_p9), [#allocation7], 40960  }
  0x71   : > { %6430 = vsyncadd (%p7375_p9), [#allocation7], 4294926336  ;;  %s510_s30 = sand.u32 1, %s6441_s26   ;;  %s5114_s23 = sshll.u32 %s6449_s28, 4 }
  0x72   : > { %p517_p0 = scmp.lt.s32.totalorder %s6453_s29, 1  ;;  %p519_p2 = scmp.lt.s32.totalorder %s5114_s23, 24 }
  0x73   : > { %s6716_s17 = scalar_lea.vmem [#allocation9], %s510_s30  ;;  %p5116_p10 = scmp.ne.s32.totalorder %s6449_s28, 0 }
  0x74   : > { %s518_s20 = scalar_select %p517_p0, %s6453_s29, 1 }
  0x75   : > { %s7423_s23 = smov (!%p519_p2, %s5114_s23), 24  ;;  %535 = sbr.rel (%p5116_p10) target bundleno = 136 (0x88), region = 88 }
  0x76   : > { %s5665_s27 = smul.u32 25, %s518_s20  ;;  %vm536_vm0 = vcmask (!%p5116_p10), 1040384   ;;  %vm537_vm1 = vsmask.f32 (!%p5116_p10), 256  ;;  %vm539_vm2 = vcmask (!%p5116_p10), 1041409   ;;  %vm543_vm5 = vcmask (!%p5116_p10), 1042434  }
  0x77   : > { %vm540_vm3 = vsmask.f32 (!%p5116_p10), 1280  ;;  %vm538_vm4 = vmand (!%p5116_p10), %vm536_vm0, %vm537_vm1  ;;  %vm544_vm6 = vsmask.f32 (!%p5116_p10), 2304  ;;  %vm547_vm9 = vcmask (!%p5116_p10), 1043459   ;;  %vm551_vm13 = vcmask (!%p5116_p10), 1044484  }
  0x78   : > { %s522_s21 = sadd.s32 %s5665_s27, %s7423_s23  ;;  %vm541_vm7 = vmand (!%p5116_p10), %vm539_vm2, %vm540_vm3  ;;  %vm548_vm10 = vsmask.f32 (!%p5116_p10), 3328  ;;  %vm552_vm14 = vsmask.f32 (!%p5116_p10), 4352  ;;  %vm555_vm1 = vcmask (!%p5116_p10), 1045509   ;;  %v567_v0 = vld [vmem:[#allocation2] sm:$0xff] (!%p5116_p10) }
  0x79   : > { %s5115_s15 = sshll.u32 %s522_s21, 2  ;;  %vm542_vm8 = vmor (!%p5116_p10), %vm541_vm7, %vm538_vm4  ;;  %vm556_vm2 = vsmask.f32 (!%p5116_p10), 5376  ;;  %vm559_vm7 = vcmask (!%p5116_p10), 1046534  }
  0x7a   : > { %s6712_s14 = scalar_lea.vmem %s7324_s0, %s5115_s15  ;;  %vm545_vm11 = vmand (!%p5116_p10), %vm543_vm5, %vm544_vm6  ;;  %vm560_vm5 = vsmask.f32 (!%p5116_p10), 6400 }
  0x7b   : > { %vm546_vm12 = vmor (!%p5116_p10), %vm545_vm11, %vm542_vm8  ;;  %vm563_vm11 = vcmask (!%p5116_p10), 1047559  }
  0x7c   : > { %vm549_vm15 = vmand %vm547_vm9, %vm548_vm10  ;;  %vm564_vm9 = vsmask.f32 7424 }
  0x7d   : > { %vm550_vm0 = vmor %vm549_vm15, %vm546_vm12 }
  0x7e   : > { %vm553_vm3 = vmand %vm551_vm13, %vm552_vm14 }
  0x7f   : > { %vm554_vm4 = vmor %vm553_vm3, %vm550_vm0 }
  0x80   : > { %vm557_vm6 = vmand %vm555_vm1, %vm556_vm2 }
  0x81   : > { %vm558_vm8 = vmor %vm557_vm6, %vm554_vm4 }
  0x82   : > { %vm561_vm10 = vmand %vm559_vm7, %vm560_vm5 }
  0x83   : > { %vm562_vm12 = vmor %vm561_vm10, %vm558_vm8 }
  0x84   : > { %vm565_vm15 = vmand %vm563_vm11, %vm564_vm9 }
  0x85   : > { %vm566_vm13 = vmor %vm565_vm15, %vm562_vm12 }
  0x86   : > { %v568_v1 = vsel %vm566_vm13, 4286644096, %v567_v0 }
  0x87   : > { %569 = vst [vmem:[#allocation2] sm:$0xff] %v568_v1 }
  0x88 PF: > { %v665_v2 = vld [vmem:[%s7325_s1] sm:$0xf]  ;;  %vm732_vm14 = vcmask 1043456   ;;  %s5117_s25 = sshll.u32 %s6449_s28, 7  ;;  %v588_v4 = vlaneseq  ;;  %v5778_v10 = vld [vmem:[%s7327_s3 + $0x8] sm:$0xff]   ;;  %vm707_vm11 = vcmask 64512  }
  0x89   : > { %v570_v3 = vld [vmem:[%s6712_s14] sm:$0xf]  ;;  %5664 = vmatprep.subr.msk.bf16.mxu0 %vm732_vm14, %v665_v2  ;;  %v734_v5 = vsel %vm732_vm14, %v665_v2, 0  ;;  %s587_s22 = ssub.s32 200, %s5117_s25  ;;  %v571_v18 = vld [vmem:[%s6712_s14 + $0x4] sm:$0xf] }
  0x8a   : > { %v5777_v6 = vld [vmem:[%s7327_s3] sm:$0xff]   ;;  %5597 = vmatpush3.bf16.msra.mxu0 %v734_v5  ;;  %v6727_v7 = vshrl.u32 %v588_v4, 7  ;;  %v6729_v8 = vstv %s587_s22  ;;  %v623_v9 = vpack.i.b16 %v570_v3, %v570_v3  ;;  %v572_v23 = vld [vmem:[%s6712_s14 + $0x8] sm:$0xf]  ;;  %v573_v24 = vld [vmem:[%s6712_s14 + $0xc] sm:$0xf] }
  0x8b   : > { %5614 = vmatprep.subr.bf16.mxu1 %v5777_v6  ;;  %v574_v27 = vld [vmem:[%s6712_s14 + $0x10] sm:$0xf]  ;;  %v575_v30 = vld [vmem:[%s6712_s14 + $0x14] sm:$0xf]  ;;  %v576_v36 = vld [vmem:[%s6712_s14 + $0x18] sm:$0xf] }
  0x8c   : > { %v590_v11 = vadd.s32 8, %v6727_v7  ;;  %vm606_vm0 = vcmp.lt.s32.totalorder %v6727_v7, %v6729_v8  ;;  %v6738_v12 = vsub.s32 0, %v6727_v7  ;;  %v591_v13 = vadd.s32 16, %v6727_v7  ;;  %5615 = vmatpush3.bf16.msra.mxu1 %v5777_v6  ;;  %v577_v37 = vld [vmem:[%s6712_s14 + $0x1c] sm:$0xf]  ;;  %v6868_v20 = vld [vmem:[#allocation3 + $0x28] sm:$0xff] }
  0x8d   : > { %v592_v14 = vadd.s32 24, %v6727_v7  ;;  %v593_v15 = vadd.s32 32, %v6727_v7  ;;  %v594_v16 = vadd.s32 40, %v6727_v7  ;;  %v595_v17 = vadd.s32 48, %v6727_v7  ;;  %5616 = vmatprep.subr.bf16.mxu1 %v5778_v10  ;;  %vm6748_vm2 = vmpackc.low %vm606_vm0, %vm606_vm0  ;;  %v578_v41 = vld [vmem:[%s6712_s14 + $0x20] sm:$0xf] }
  0x8e   : > { %vm607_vm1 = vcmp.lt.s32.totalorder %v590_v11, %v6729_v8  ;;  %v628_v19 = vrot.slane %v623_v9, %v6738_v12  ;;  %vm608_vm3 = vcmp.lt.s32.totalorder %v591_v13, %v6729_v8  ;;  %v596_v21 = vadd.s32 56, %v6727_v7  ;;  %v579_v42 = vld [vmem:[%s6712_s14 + $0x24] sm:$0xf]  ;;  %v580_v57 = vld [vmem:[%s6712_s14 + $0x28] sm:$0xf]  ;;  %v5780_v13 = vld [vmem:[%s7327_s3 + $0x18] sm:$0xff]  }
  0x8f   : > { %vm6754_vm4 = vmpackc.low %vm607_vm1, %vm607_vm1  ;;  %vm609_vm7 = vcmp.lt.s32.totalorder %v592_v14, %v6729_v8  ;;  %vm610_vm5 = vcmp.lt.s32.totalorder %v593_v15, %v6729_v8  ;;  %vm611_vm8 = vcmp.lt.s32.totalorder %v594_v16, %v6729_v8  ;;  %v597_v28 = vadd.s32 64, %v6727_v7  ;;  %v581_v58 = vld [vmem:[%s6712_s14 + $0x2c] sm:$0xf]  ;;  %v582_v60 = vld [vmem:[%s6712_s14 + $0x30] sm:$0xf]  ;;  %p5211_p13 = scmp.ne.s32.totalorder %s6449_s28, 1 }
  0x90   : > { %v6762_v25 = vcombine.low %v628_v19, %v628_v19  ;;  %vm6764_vm6 = vmpackc.low %vm608_vm3, %vm608_vm3  ;;  %v598_v29 = vadd.s32 72, %v6727_v7  ;;  %5617 = vmatpush3.bf16.msra.mxu1 %v5778_v10  ;;  %vm612_vm10 = vcmp.lt.s32.totalorder %v595_v17, %v6729_v8  ;;  %vm613_vm12 = vcmp.lt.s32.totalorder %v596_v21, %v6729_v8  ;;  %v583_v61 = vld [vmem:[%s6712_s14 + $0x34] sm:$0xf]  ;;  %v584_v5 = vld [vmem:[%s6712_s14 + $0x38] sm:$0xf]  ;;  %s7398_s13 = sld [smem:[#allocation24_spill]] (!%p5211_p13) }
  0x91   : > { %vm632_vm9 = vmpackc.low %vm609_vm7, %vm609_vm7  ;;  %v599_v31 = vadd.s32 80, %v6727_v7  ;;  %vm614_vm14 = vcmp.lt.s32.totalorder %v597_v28, %v6729_v8  ;;  %v600_v45 = vadd.s32 88, %v6727_v7  ;;  %v601_v47 = vadd.s32 96, %v6727_v7  ;;  %v585_v6 = vld [vmem:[%s6712_s14 + $0x3c] sm:$0xf]  ;;  %v1050_v15 = vld [vmem:[#allocation3] sm:$0xff] }
  0x92   : > { %v649_v32 = vsel %vm6748_vm2, %v570_v3, %v6762_v25  ;;  %v650_v33 = vsel %vm6754_vm4, %v571_v18, %v6762_v25  ;;  %v651_v34 = vsel %vm6764_vm6, %v572_v23, %v6762_v25  ;;  %v652_v35 = vsel %vm632_vm9, %v573_v24, %v6762_v25  ;;  %vm633_vm15 = vmpackc.low %vm610_vm5, %vm610_vm5  ;;  %v1054_v16 = vld [vmem:[#allocation3 + $0x20] sm:$0xff]  ;;  %v6866_v17 = vld [vmem:[#allocation3 + $0x8] sm:$0xff]  ;;  %s7399_s10 = sld [smem:[#allocation23_spill]] (!%p5211_p13)  ;;  %s7400_s20 = sld [smem:[#allocation25_spill]] (!%p5211_p13) }
  0x93   : > { %v5119_v38 = vcombine.low %v649_v32, %v650_v33  ;;  %v5120_v39 = vcombine.low %v651_v34, %v652_v35  ;;  %vm634_vm13 = vmpackc.low %vm611_vm8, %vm611_vm8  ;;  %v653_v40 = vsel %vm633_vm15, %v574_v27, %v6762_v25  ;;  %vm615_vm1 = vcmp.lt.s32.totalorder %v598_v29, %v6729_v8  ;;  %v1058_v21 = vld [vmem:[#allocation3 + $0x40] sm:$0xff]  ;;  %v1059_v54 = vld [vmem:[#allocation3 + $0x48] sm:$0xff] }
  0x94   : > { %v654_v43 = vsel %vm634_vm13, %v575_v30, %v6762_v25  ;;  %vm6802_vm0 = vmpackc.low %vm612_vm10, %vm612_vm10  ;;  %v602_v48 = vadd.s32 104, %v6727_v7  ;;  %vm616_vm7 = vcmp.lt.s32.totalorder %v599_v31, %v6729_v8  ;;  %vm617_vm5 = vcmp.lt.s32.totalorder %v600_v45, %v6729_v8  ;;  %v1062_v22 = vld [vmem:[#allocation3 + $0x60] sm:$0xff] }
  0x95   : > { %5598 = vmatprep.mubr.msk.bf16.mxu0 %vm707_vm11, %v5119_v38  ;;  %v5121_v46 = vcombine.low %v653_v40, %v654_v43  ;;  %vm636_vm2 = vmpackc.low %vm613_vm12, %vm613_vm12  ;;  %v655_v49 = vsel %vm6802_vm0, %v576_v36, %v6762_v25  ;;  %vm618_vm6 = vcmp.lt.s32.totalorder %v601_v47, %v6729_v8  ;;  %v603_v59 = vadd.s32 112, %v6727_v7  ;;  %v1066_v26 = vld [vmem:[#allocation3 + $0x80] sm:$0xff]  ;;  %v666_v43 = vld [vmem:[%s7326_s2] sm:$0x1] }
  0x96   : > { %5599 = vmatmul.mubr.msk.bf16.vlgmr.msra.gmra.mrb[0].mxu0 %vm707_vm11, %v5120_v39  ;;  %vm637_vm3 = vmpackc.low %vm614_vm14, %vm614_vm14  ;;  %v656_v50 = vsel %vm636_vm2, %v577_v37, %v6762_v25  ;;  %vm619_vm9 = vcmp.lt.s32.totalorder %v602_v48, %v6729_v8  ;;  %v604_v62 = vadd.s32 120, %v6727_v7  ;;  %v6476_v14 = vmov 0   ;;  %v1070_v27 = vld [vmem:[#allocation3 + $0xa0] sm:$0xff] }
  0x97   : > { %5602 = vmatprep.mubr.msk.bf16.mxu0 %vm707_vm11, %v5121_v46  ;;  %vm638_vm4 = vmpackc.low %vm615_vm1, %vm615_vm1  ;;  %v657_v51 = vsel %vm637_vm3, %v578_v41, %v6762_v25  ;;  %v5122_v53 = vcombine.low %v655_v49, %v656_v50  ;;  %vm620_vm13 = vcmp.lt.s32.totalorder %v603_v59, %v6729_v8  ;;  %v5147_v18 = vcombine.low %v1050_v15, %v1054_v16  ;;  %v1074_v30 = vld [vmem:[#allocation3 + $0xc0] sm:$0xff] }
  0x98   : > { %v658_v52 = vsel %vm638_vm4, %v579_v42, %v6762_v25  ;;  %vm6825_vm8 = vmpackc.low %vm616_vm7, %vm616_vm7  ;;  %vm621_vm14 = vcmp.lt.s32.totalorder %v604_v62, %v6729_v8  ;;  %v5779_v8 = vld [vmem:[%s7327_s3 + $0x10] sm:$0xff]   ;;  %v5148_v19 = vcombine.high %v1050_v15, %v1054_v16  ;;  %v5149_v23 = vcombine.low %v6866_v17, %v6868_v20  ;;  %v1078_v31 = vld [vmem:[#allocation3 + $0xe0] sm:$0xff] }
  0x99   : > { %v5123_v55 = vcombine.low %v657_v51, %v658_v52  ;;  %vm6830_vm10 = vmpackc.low %vm617_vm5, %vm617_vm5  ;;  %v659_v63 = vsel %vm6825_vm8, %v580_v57, %v6762_v25  ;;  %5618 = vmatprep.subr.bf16.mxu1 %v5779_v8  ;;  %v5150_v24 = vcombine.high %v6866_v17, %v6868_v20  ;;  %v5155_v28 = vcombine.low %v1058_v21, %v1062_v22  ;;  %v1082_v34 = vld [vmem:[#allocation3 + $0x100] sm:$0xff]  ;;  %v1067_v62 = vld [vmem:[#allocation3 + $0x88] sm:$0xff] }
  0x9a   : > { %vm641_vm12 = vmpackc.low %vm618_vm6, %vm618_vm6  ;;  %v660_v0 = vsel %vm6830_vm10, %v581_v58, %v6762_v25  ;;  %5619 = vmatpush3.bf16.msra.mxu1 %v5779_v8  ;;  %1435 = vmatprep.subr.bf16.mxu0 %v5148_v19  ;;  %v5164_v29 = vcombine.high %v1066_v26, %v1070_v27  ;;  %v5163_v32 = vcombine.low %v1066_v26, %v1070_v27  ;;  %v1086_v35 = vld [vmem:[#allocation3 + $0x120] sm:$0xff]  ;;  %v1083_v19 = vld [vmem:[#allocation3 + $0x108] sm:$0xff]  ;;  %vm2317_vm2 = vcmask 1040384  }
  0x9b   : > { %vm642_vm15 = vmpackc.low %vm619_vm9, %vm619_vm9  ;;  %v661_v1 = vsel %vm641_vm12, %v582_v60, %v6762_v25  ;;  %v5124_v3 = vcombine.low %v659_v63, %v660_v0  ;;  %5620 = vmatprep.subr.bf16.mxu1 %v5780_v13  ;;  %1436 = vmatpush1.bf16.msra.mxu0 %v5147_v18  ;;  %v5172_v33 = vcombine.high %v1074_v30, %v1078_v31  ;;  %v1090_v38 = vld [vmem:[#allocation3 + $0x140] sm:$0xff]  ;;  %v1071_v63 = vld [vmem:[#allocation3 + $0xa8] sm:$0xff]  ;;  %vm2318_vm3 = vsmask.f32 256 }
  0x9c   : > { %v662_v2 = vsel %vm642_vm15, %v583_v61, %v6762_v25  ;;  %vm643_vm0 = vmpackc.low %vm620_vm13, %vm620_vm13  ;;  %v5171_v36 = vcombine.low %v1074_v30, %v1078_v31  ;;  %v5180_v37 = vcombine.high %v1082_v34, %v1086_v35  ;;  %v1094_v39 = vld [vmem:[#allocation3 + $0x160] sm:$0xff]  ;;  %v5179_v40 = vcombine.low %v1082_v34, %v1086_v35  ;;  %v1087_v20 = vld [vmem:[#allocation3 + $0x128] sm:$0xff] }
  0x9d   : > { %v5125_v4 = vcombine.low %v661_v1, %v662_v2  ;;  %vm644_vm1 = vmpackc.low %vm621_vm14, %vm621_vm14  ;;  %v663_v9 = vsel %vm643_vm0, %v584_v5, %v6762_v25  ;;  %v5188_v41 = vcombine.high %v1090_v38, %v1094_v39  ;;  %v5187_v42 = vcombine.low %v1090_v38, %v1094_v39 }
  0x9e   : > { %5603 = vmatmul.mubr.msk.bf16.gmra.mrb[4].mxu0 %vm707_vm11, %v5122_v53  ;;  %v664_v10 = vsel %vm644_vm1, %v585_v6, %v6762_v25  ;;  %5621 = vmatpush3.bf16.msra.mxu1 %v5780_v13  ;;  %v5156_v25 = vcombine.high %v1058_v21, %v1062_v22  ;;  %v842_v44 = vpack.i.b16 %v666_v43, %v666_v43  ;;  %vm2320_vm4 = vcmask 1041409   ;;  %vm7111_vm5 = vmand %vm2317_vm2, %vm2318_vm3 }
  0x9f   : > { %5606 = vmatprep.mubr.msk.bf16.mxu0 %vm707_vm11, %v5123_v55  ;;  %v5126_v11 = vcombine.low %v663_v9, %v664_v10  ;;  %1548 = vmatprep.subr.bf16.mxu1 %v5150_v24  ;;  %v1063_v55 = vld [vmem:[#allocation3 + $0x68] sm:$0xff]  ;;  %v5166_v5 = vcombine.high %v1067_v62, %v1071_v63  ;;  %v5165_v15 = vcombine.low %v1067_v62, %v1071_v63  ;;  %v1056_v62 = vld [vmem:[#allocation3 + $0x30] sm:$0xff]  ;;  %v1053_v63 = vld [vmem:[#allocation3 + $0x18] sm:$0xff]  ;;  %vm2321_vm7 = vsmask.f32 1280 }
  0xa0   : > { %1437 = vmatprep.subr.bf16.mxu0 %v5156_v25  ;;  %v6878_v47 = vrot.slane %v842_v44, %v6738_v12  ;;  %v5158_v60 = vcombine.high %v1059_v54, %v1063_v55  ;;  %v1075_v9 = vld [vmem:[#allocation3 + $0xc8] sm:$0xff]  ;;  %v5182_v26 = vcombine.high %v1083_v19, %v1087_v20  ;;  %vm7115_vm6 = vmand %vm2320_vm4, %vm2321_vm7  ;;  %vm2324_vm8 = vcmask 1042434  }
  0xa1   : > { %1438 = vmatpush1.bf16.msra.mxu0 %v5155_v28  ;;  %v1079_v10 = vld [vmem:[#allocation3 + $0xe8] sm:$0xff]  ;;  %vm2325_vm9 = vsmask.f32 2304  ;;  %vm2323_vm10 = vmor %vm7115_vm6, %vm7111_vm5  ;;  %vm2328_vm15 = vcmask 1043459   ;;  %vm2329_vm13 = vsmask.f32 3328 }
  0xa2   : > { %1439 = vmatprep.subr.bf16.mxu0 %v5164_v29  ;;  %v5174_v17 = vcombine.high %v1075_v9, %v1079_v10  ;;  %v5173_v24 = vcombine.low %v1075_v9, %v1079_v10  ;;  %v1091_v28 = vld [vmem:[#allocation3 + $0x148] sm:$0xff]  ;;  %vm2326_vm12 = vmand %vm2324_vm8, %vm2325_vm9  ;;  %vm2332_vm1 = vcmask 1044484   ;;  %vm2336_vm4 = vcmask 1045509  }
  0xa3   : > { %v1095_v29 = vld [vmem:[#allocation3 + $0x168] sm:$0xff]  ;;  %vm7123_vm14 = vmor %vm2326_vm12, %vm2323_vm10  ;;  %vm2337_vm7 = vsmask.f32 5376  ;;  %vm2340_vm8 = vcmask 1046534   ;;  %vm2341_vm9 = vsmask.f32 6400 }
  0xa4   : > { %v5190_v35 = vcombine.high %v1091_v28, %v1095_v29  ;;  %vm7127_vm0 = vmand %vm2328_vm15, %vm2329_vm13  ;;  %vm2344_vm15 = vcmask 1047559   ;;  %vm2345_vm13 = vsmask.f32 7424 }
  0xa5   : > { %1440 = vmatpush1.bf16.msra.mxu0 %v5163_v32  ;;  %vm2331_vm2 = vmor %vm7127_vm0, %vm7123_vm14 }
  0xa6   : > { %5607 = vmatmul.mubr.msk.bf16.gmra.mrb[8].mxu0 %vm707_vm11, %v5124_v3  ;;  %1441 = vmatprep.subr.bf16.mxu0 %v5172_v33  ;;  %v5157_v3 = vcombine.low %v1059_v54, %v1063_v55  ;;  %v5181_v33 = vcombine.low %v1083_v19, %v1087_v20  ;;  %v1110_v54 = vld [vmem:[#allocation3 + $0x1e0] sm:$0xff]  ;;  %v1107_v55 = vld [vmem:[#allocation3 + $0x1c8] sm:$0xff]  ;;  %v1064_v19 = vld [vmem:[#allocation3 + $0x70] sm:$0xff] }
  0xa7   : > { %5610 = vmatprep.mubr.msk.bf16.mxu0 %vm707_vm11, %v5125_v4  ;;  %v1061_v20 = vld [vmem:[#allocation3 + $0x58] sm:$0xff]  ;;  %vm2338_vm6 = vmand %vm2336_vm4, %vm2337_vm7 }
  0xa8   : > { %vm2342_vm12 = vmand %vm2340_vm8, %vm2341_vm9 }
  0xa9   : > { %1442 = vmatpush1.bf16.msra.mxu0 %v5171_v36  ;;  %vm2346_vm0 = vmand %vm2344_vm15, %vm2345_vm13 }
  0xaa   : > { %1443 = vmatprep.subr.bf16.mxu0 %v5180_v37 }
  0xad   : > { %1444 = vmatpush1.bf16.msra.mxu0 %v5179_v40  ;;  %v5189_v40 = vcombine.low %v1091_v28, %v1095_v29  ;;  %v1069_v29 = vld [vmem:[#allocation3 + $0x98] sm:$0xff] }
  0xae   : > { %5611 = vmatmul.mubr.msk.bf16.gmra.mrb[12].mxu0 %vm707_vm11, %v5126_v11  ;;  %1445 = vmatprep.subr.bf16.mxu0 %v5188_v41  ;;  %vm897_vm11 = vcmask 523264  }
  0xaf   : > { %1467 = vmatprep.mubr.bf16.mxu0 %v6476_v14 }
  0xb1   : > { %1446 = vmatpush1.bf16.msra.mxu0 %v5187_v42 }
 0x169   : > { %v5600_v45 = vpop.f32.mrb[0].mxu0 }
 0x16a   : > { %v770_v46 = vpop.f32.mrb[1].mxu0 }
 0x16b   : > { %v5601_v48 = vpop.f32.mrb[2].mxu0 }
 0x16c   : > { %v834_v49 = vpack.c.bf16 %v5601_v48, %v5600_v45  ;;  %v773_v50 = vpop.f32.mrb[3].mxu0  ;;  %v1098_v45 = vld [vmem:[#allocation3 + $0x180] sm:$0xff]  ;;  %v1099_v48 = vld [vmem:[#allocation3 + $0x188] sm:$0xff] }
 0x16d   : > { %v833_v51 = vpack.c.bf16 %v773_v50, %v770_v46  ;;  %v1102_v46 = vld [vmem:[#allocation3 + $0x1a0] sm:$0xff]  ;;  %v1103_v50 = vld [vmem:[#allocation3 + $0x1a8] sm:$0xff] }
 0x16e   : > { %v849_v52 = vadd.bf16 %v6878_v47, %v834_v49  ;;  %v5196_v49 = vcombine.high %v1098_v45, %v1102_v46 }
 0x16f   : > { %v848_v53 = vadd.bf16 %v6878_v47, %v833_v51  ;;  %v5195_v51 = vcombine.low %v1098_v45, %v1102_v46 }
 0x170   : > { %v857_v58 = vmax.bf16 %v6476_v14, %v849_v52  ;;  %v5197_v52 = vcombine.low %v1099_v48, %v1103_v50  ;;  %1447 = vmatprep.subr.bf16.mxu0 %v5196_v49 }
 0x171   : > { %v5604_v56 = vpop.f32.mrb[4].mxu0  ;;  %v856_v57 = vmax.bf16 %v6476_v14, %v848_v53  ;;  %v5198_v53 = vcombine.high %v1099_v48, %v1103_v50  ;;  %1448 = vmatpush1.bf16.msra.mxu0 %v5195_v51 }
 0x172   : > { %v786_v59 = vpop.f32.mrb[5].mxu0 }
 0x173   : > { %5622 = vmatprep.mubr.msk.bf16.mxu1 %vm897_vm11, %v856_v57  ;;  %v5605_v61 = vpop.f32.mrb[6].mxu0  ;;  %v1111_v57 = vld [vmem:[#allocation3 + $0x1e8] sm:$0xff] }
 0x174   : > { %v836_v0 = vpack.c.bf16 %v5605_v61, %v5604_v56  ;;  %5623 = vmatmul.mubr.msk.bf16.vlgmr.msra.gmra.mrb[0].mxu1 %vm897_vm11, %v857_v58  ;;  %v789_v1 = vpop.f32.mrb[7].mxu0  ;;  %v1052_v61 = vld [vmem:[#allocation3 + $0x10] sm:$0xff] }
 0x175   : > { %v835_v2 = vpack.c.bf16 %v789_v1, %v786_v59  ;;  %1549 = vmatpush1.bf16.msra.mxu1 %v5149_v23  ;;  %v5205_v59 = vcombine.low %v1107_v55, %v1111_v57  ;;  %v5152_v1 = vcombine.high %v1052_v61, %v1056_v62 }
 0x176   : > { %v851_v4 = vadd.bf16 %v6878_v47, %v836_v0  ;;  %1550 = vmatprep.subr.bf16.mxu1 %v5158_v60  ;;  %v5206_v60 = vcombine.high %v1107_v55, %v1111_v57  ;;  %v5151_v0 = vcombine.low %v1052_v61, %v1056_v62  ;;  %v1089_v55 = vld [vmem:[#allocation3 + $0x138] sm:$0xff] }
 0x177   : > { %v850_v6 = vadd.bf16 %v6878_v47, %v835_v2  ;;  %v1057_v2 = vld [vmem:[#allocation3 + $0x38] sm:$0xff] }
 0x178   : > { %v859_v11 = vmax.bf16 %v6476_v14, %v851_v4  ;;  %v5154_v4 = vcombine.high %v1053_v63, %v1057_v2 }
 0x179   : > { %v858_v8 = vmax.bf16 %v6476_v14, %v850_v6  ;;  %v5608_v13 = vpop.f32.mrb[8].mxu0  ;;  %1551 = vmatpush1.bf16.msra.mxu1 %v5157_v3  ;;  %v5153_v3 = vcombine.low %v1053_v63, %v1057_v2  ;;  %v1093_v2 = vld [vmem:[#allocation3 + $0x158] sm:$0xff] }
 0x17a   : > { %v802_v16 = vpop.f32.mrb[9].mxu0  ;;  %1552 = vmatprep.subr.bf16.mxu1 %v5166_v5  ;;  %v872_v5 = vld [vmem:[%s7328_s4] sm:$0x1] }
 0x17b   : > { %5626 = vmatprep.mubr.msk.bf16.mxu1 %vm897_vm11, %v858_v8  ;;  %v5609_v18 = vpop.f32.mrb[10].mxu0  ;;  %v1028_v6 = vpack.i.b16 %v872_v5, %v872_v5 }
 0x17c   : > { %5627 = vmatmul.mubr.msk.bf16.gmra.mrb[4].mxu1 %vm897_vm11, %v859_v11  ;;  %v838_v21 = vpack.c.bf16 %v5609_v18, %v5608_v13  ;;  %v805_v22 = vpop.f32.mrb[11].mxu0 }
 0x17d   : > { %v837_v23 = vpack.c.bf16 %v805_v22, %v802_v16  ;;  %1553 = vmatpush1.bf16.msra.mxu1 %v5165_v15  ;;  %v6909_v8 = vrot.slane %v1028_v6, %v6738_v12 }
 0x17e   : > { %v853_v25 = vadd.bf16 %v6878_v47, %v838_v21  ;;  %1554 = vmatprep.subr.bf16.mxu1 %v5174_v17  ;;  %v1060_v17 = vld [vmem:[#allocation3 + $0x50] sm:$0xff]  ;;  %v1065_v21 = vld [vmem:[#allocation3 + $0x78] sm:$0xff] }
 0x17f   : > { %v852_v27 = vadd.bf16 %v6878_v47, %v837_v23  ;;  %v5162_v28 = vcombine.high %v1061_v20, %v1065_v21 }
 0x180   : > { %v861_v30 = vmax.bf16 %v6476_v14, %v853_v25  ;;  %v1072_v25 = vld [vmem:[#allocation3 + $0xb0] sm:$0xff] }
 0x181   : > { %v860_v31 = vmax.bf16 %v6476_v14, %v852_v27  ;;  %v5612_v32 = vpop.f32.mrb[12].mxu0  ;;  %1555 = vmatpush1.bf16.msra.mxu1 %v5173_v24  ;;  %v1068_v24 = vld [vmem:[#allocation3 + $0x90] sm:$0xff]  ;;  %v5160_v27 = vcombine.high %v1060_v17, %v1064_v19 }
 0x182   : > { %v818_v34 = vpop.f32.mrb[13].mxu0  ;;  %1556 = vmatprep.subr.bf16.mxu1 %v5182_v26  ;;  %v5167_v46 = vcombine.low %v1068_v24, %v1072_v25 }
 0x183   : > { %5630 = vmatprep.mubr.msk.bf16.mxu1 %vm897_vm11, %v860_v31  ;;  %v5613_v36 = vpop.f32.mrb[14].mxu0 }
 0x184   : > { %5631 = vmatmul.mubr.msk.bf16.gmra.mrb[8].mxu1 %vm897_vm11, %v861_v30  ;;  %v840_v37 = vpack.c.bf16 %v5613_v36, %v5612_v32  ;;  %v821_v38 = vpop.f32.mrb[15].mxu0  ;;  %v1073_v30 = vld [vmem:[#allocation3 + $0xb8] sm:$0xff]  ;;  %v5159_v32 = vcombine.low %v1060_v17, %v1064_v19  ;;  %v5168_v36 = vcombine.high %v1068_v24, %v1072_v25  ;;  %v1104_v17 = vld [vmem:[#allocation3 + $0x1b0] sm:$0xff] }
 0x185   : > { %v839_v39 = vpack.c.bf16 %v821_v38, %v818_v34  ;;  %1557 = vmatpush1.bf16.msra.mxu1 %v5181_v33  ;;  %v5169_v48 = vcombine.low %v1069_v29, %v1073_v30  ;;  %v1105_v19 = vld [vmem:[#allocation3 + $0x1b8] sm:$0xff] }
 0x186   : > { %v855_v41 = vadd.bf16 %v6878_v47, %v840_v37  ;;  %1558 = vmatprep.subr.bf16.mxu1 %v5190_v35  ;;  %v5161_v35 = vcombine.low %v1061_v20, %v1065_v21 }
 0x187   : > { %v854_v42 = vadd.bf16 %v6878_v47, %v839_v39  ;;  %v1106_v47 = vld [vmem:[#allocation3 + $0x1c0] sm:$0xff]  ;;  %v5170_v39 = vcombine.high %v1069_v29, %v1073_v30  ;;  %v1108_v30 = vld [vmem:[#allocation3 + $0x1d0] sm:$0xff] }
 0x188   : > { %v863_v43 = vmax.bf16 %v6476_v14, %v855_v41  ;;  %v5204_v56 = vcombine.high %v1106_v47, %v1110_v54  ;;  %v5203_v58 = vcombine.low %v1106_v47, %v1110_v54  ;;  %v1080_v41 = vld [vmem:[#allocation3 + $0xf0] sm:$0xff]  ;;  %v1085_v54 = vld [vmem:[#allocation3 + $0x118] sm:$0xff] }
 0x189   : > { %v862_v44 = vmax.bf16 %v6476_v14, %v854_v42  ;;  %1559 = vmatpush1.bf16.msra.mxu1 %v5189_v40  ;;  %v1076_v40 = vld [vmem:[#allocation3 + $0xd0] sm:$0xff]  ;;  %v1077_v42 = vld [vmem:[#allocation3 + $0xd8] sm:$0xff]  ;;  %v5186_v63 = vcombine.high %v1085_v54, %v1089_v55 }
 0x18a   : > { %1560 = vmatprep.subr.bf16.mxu1 %v5198_v53  ;;  %1449 = vmatprep.subr.bf16.mxu0 %v5204_v56  ;;  %v5176_v50 = vcombine.high %v1076_v40, %v1080_v41  ;;  %v1088_v47 = vld [vmem:[#allocation3 + $0x130] sm:$0xff] }
 0x18b   : > { %5634 = vmatprep.mubr.msk.bf16.mxu1 %vm897_vm11, %v862_v44  ;;  %1450 = vmatpush1.bf16.msra.mxu0 %v5203_v58  ;;  %v5175_v58 = vcombine.low %v1076_v40, %v1080_v41 }
 0x18c   : > { %5635 = vmatmul.mubr.msk.bf16.gmra.mrb[12].mxu1 %vm897_vm11, %v863_v43  ;;  %1661 = vmatprep.subr.bf16.mxu0 %v5152_v1  ;;  %v1081_v43 = vld [vmem:[#allocation3 + $0xf8] sm:$0xff]  ;;  %v1096_v1 = vld [vmem:[#allocation3 + $0x170] sm:$0xff]  ;;  %vm2333_vm11 = vsmask.f32 4352 }
 0x18d   : > { %1580 = vmatprep.mubr.bf16.mxu1 %v6476_v14  ;;  %1561 = vmatpush1.bf16.msra.mxu1 %v5197_v52  ;;  %v5178_v51 = vcombine.high %v1077_v42, %v1081_v43  ;;  %v1084_v52 = vld [vmem:[#allocation3 + $0x110] sm:$0xff]  ;;  %v5177_v61 = vcombine.low %v1077_v42, %v1081_v43  ;;  %vm2334_vm3 = vmand %vm2332_vm1, %vm2333_vm11 }
 0x18e   : > { %1562 = vmatprep.subr.bf16.mxu1 %v5206_v60  ;;  %v5184_v62 = vcombine.high %v1084_v52, %v1088_v47  ;;  %v5183_v6 = vcombine.low %v1084_v52, %v1088_v47  ;;  %vm7135_vm5 = vmor %vm2334_vm3, %vm2331_vm2 }
 0x18f   : > { %vm2339_vm10 = vmor %vm2338_vm6, %vm7135_vm5 }
 0x190   : > { %vm2343_vm14 = vmor %vm2342_vm12, %vm2339_vm10 }
 0x191   : > { %1563 = vmatpush1.bf16.msra.mxu1 %v5205_v59  ;;  %vm2347_vm1 = vmor %vm2346_vm0, %vm2343_vm14 }
 0x192   : > { %1774 = vmatprep.subr.bf16.mxu1 %v5154_v4 }
 0x247   : > { %v5624_v9 = vpop.f32.mrb[0].mxu1 }
 0x248   : > { %v956_v10 = vpop.f32.mrb[1].mxu1 }
 0x249   : > { %v5625_v11 = vpop.f32.mrb[2].mxu1 }
 0x24a   : > { %v1020_v13 = vpack.c.bf16 %v5625_v11, %v5624_v9  ;;  %v959_v15 = vpop.f32.mrb[3].mxu1  ;;  %v5185_v9 = vcombine.low %v1085_v54, %v1089_v55 }
 0x24b   : > { %v1019_v16 = vpack.c.bf16 %v959_v15, %v956_v10  ;;  %v1100_v15 = vld [vmem:[#allocation3 + $0x190] sm:$0xff] }
 0x24c   : > { %v1035_v37 = vadd.bf16 %v6909_v8, %v1020_v13 }
 0x24d   : > { %v1034_v18 = vadd.bf16 %v6909_v8, %v1019_v16 }
 0x24e   : > { %v6927_v44 = vmax.bf16 %v6476_v14, %v1035_v37  ;;  %v5199_v37 = vcombine.low %v1100_v15, %v1104_v17 }
 0x24f   : > { %v6913_v22 = vmax.bf16 %v6476_v14, %v1034_v18  ;;  %v6915_v23 = vpop.f32.mrb[4].mxu1  ;;  %v1101_v18 = vld [vmem:[#allocation3 + $0x198] sm:$0xff] }
 0x250   : > { %v972_v26 = vpop.f32.mrb[5].mxu1  ;;  %v5202_v29 = vcombine.high %v1101_v18, %v1105_v19 }
 0x251   : > { %1468 = vmatmul.mubr.bf16.vlgmr.msra.gmra.mrb[16].mxu0 %v6913_v22  ;;  %1581 = vmatmul.mubr.bf16.vlgmr.msra.gmra.mrb[16].mxu1 %v6913_v22  ;;  %v6919_v31 = vpop.f32.mrb[6].mxu1 }
 0x252   : > { %1662 = vmatpush1.bf16.msra.mxu0 %v5151_v0  ;;  %1775 = vmatpush1.bf16.msra.mxu1 %v5153_v3  ;;  %v1022_v33 = vpack.c.bf16 %v6919_v31, %v6915_v23  ;;  %v975_v34 = vpop.f32.mrb[7].mxu1  ;;  %v1092_v0 = vld [vmem:[#allocation3 + $0x150] sm:$0xff]  ;;  %v1097_v3 = vld [vmem:[#allocation3 + $0x178] sm:$0xff]  ;;  %v5201_v23 = vcombine.low %v1101_v18, %v1105_v19 }
 0x253   : > { %v1021_v38 = vpack.c.bf16 %v975_v34, %v972_v26  ;;  %1477 = vmatprep.mubr.bf16.mxu0 %v6476_v14  ;;  %1590 = vmatprep.mubr.bf16.mxu1 %v6476_v14  ;;  %v5192_v11 = vcombine.high %v1092_v0, %v1096_v1  ;;  %v5194_v13 = vcombine.high %v1093_v2, %v1097_v3  ;;  %v1109_v34 = vld [vmem:[#allocation3 + $0x1d8] sm:$0xff] }
 0x254   : > { %1663 = vmatprep.subr.bf16.mxu0 %v5160_v27  ;;  %1776 = vmatprep.subr.bf16.mxu1 %v5162_v28  ;;  %v5191_v24 = vcombine.low %v1092_v0, %v1096_v1  ;;  %v1037_v25 = vadd.bf16 %v6909_v8, %v1022_v33  ;;  %v5193_v27 = vcombine.low %v1093_v2, %v1097_v3 }
 0x255   : > { %v1036_v59 = vadd.bf16 %v6909_v8, %v1021_v38  ;;  %v5200_v28 = vcombine.high %v1100_v15, %v1104_v17 }
 0x256   : > { %1664 = vmatpush1.bf16.msra.mxu0 %v5159_v32  ;;  %1777 = vmatpush1.bf16.msra.mxu1 %v5161_v35  ;;  %v1112_v32 = vld [vmem:[#allocation3 + $0x1f0] sm:$0xff]  ;;  %v1113_v35 = vld [vmem:[#allocation3 + $0x1f8] sm:$0xff] }
 0x257   : > { %v6929_v45 = vpop.f32.mrb[8].mxu1  ;;  %1665 = vmatprep.subr.bf16.mxu0 %v5168_v36  ;;  %1778 = vmatprep.subr.bf16.mxu1 %v5170_v39  ;;  %v6947_v4 = vmax.bf16 %v6476_v14, %v1036_v59  ;;  %v1045_v36 = vmax.bf16 %v6476_v14, %v1037_v25  ;;  %v5208_v31 = vcombine.high %v1108_v30, %v1112_v32 }
 0x258   : > { %v6931_v49 = vpop.f32.mrb[9].mxu1  ;;  %v5210_v33 = vcombine.high %v1109_v34, %v1113_v35  ;;  %v5207_v39 = vcombine.low %v1108_v30, %v1112_v32  ;;  %v5209_v40 = vcombine.low %v1109_v34, %v1113_v35 }
 0x259   : > { %1478 = vmatmul.mubr.bf16.gmra.mrb[20].mxu0 %v6927_v44  ;;  %1591 = vmatmul.mubr.bf16.gmra.mrb[20].mxu1 %v6927_v44  ;;  %v6935_v53 = vpop.f32.mrb[10].mxu1 }
 0x25a   : > { %1487 = vmatprep.mubr.bf16.mxu0 %v6476_v14  ;;  %1600 = vmatprep.mubr.bf16.mxu1 %v6476_v14  ;;  %v1024_v56 = vpack.c.bf16 %v6935_v53, %v6929_v45  ;;  %v6941_v57 = vpop.f32.mrb[11].mxu1 }
 0x25b   : > { %1666 = vmatpush1.bf16.msra.mxu0 %v5167_v46  ;;  %1779 = vmatpush1.bf16.msra.mxu1 %v5169_v48  ;;  %v1023_v60 = vpack.c.bf16 %v6941_v57, %v6931_v49 }
 0x25c   : > { %1667 = vmatprep.subr.bf16.mxu0 %v5176_v50  ;;  %1780 = vmatprep.subr.bf16.mxu1 %v5178_v51  ;;  %v1039_v42 = vadd.bf16 %v6909_v8, %v1024_v56  ;;  %v7008_v51 = vld [vmem:[%s7330_s6] sm:$0xff] }
 0x25d   : > { %v1038_v38 = vadd.bf16 %v6909_v8, %v1023_v60 }
 0x25e   : > { %v1047_v43 = vmax.bf16 %v6476_v14, %v1039_v42 }
 0x25f   : > { %1668 = vmatpush1.bf16.msra.mxu0 %v5175_v58  ;;  %1781 = vmatpush1.bf16.msra.mxu1 %v5177_v61  ;;  %v6949_v5 = vpop.f32.mrb[12].mxu1  ;;  %v1046_v41 = vmax.bf16 %v6476_v14, %v1038_v38 }
 0x260   : > { %1669 = vmatprep.subr.bf16.mxu0 %v5184_v62  ;;  %1782 = vmatprep.subr.bf16.mxu1 %v5186_v63  ;;  %v1004_v10 = vpop.f32.mrb[13].mxu1 }
 0x261   : > { %1488 = vmatmul.mubr.bf16.gmra.mrb[24].mxu0 %v6947_v4  ;;  %1601 = vmatmul.mubr.bf16.gmra.mrb[24].mxu1 %v6947_v4  ;;  %v5637_v16 = vpop.f32.mrb[14].mxu1 }
 0x262   : > { %1497 = vmatprep.mubr.bf16.mxu0 %v6476_v14  ;;  %1610 = vmatprep.mubr.bf16.mxu1 %v6476_v14  ;;  %v1026_v20 = vpack.c.bf16 %v5637_v16, %v6949_v5  ;;  %v1007_v21 = vpop.f32.mrb[15].mxu1 }
 0x263   : > { %1670 = vmatpush1.bf16.msra.mxu0 %v5183_v6  ;;  %1783 = vmatpush1.bf16.msra.mxu1 %v5185_v9  ;;  %v1025_v26 = vpack.c.bf16 %v1007_v21, %v1004_v10 }
 0x264   : > { %1671 = vmatprep.subr.bf16.mxu0 %v5192_v11  ;;  %1784 = vmatprep.subr.bf16.mxu1 %v5194_v13  ;;  %v1041_v45 = vadd.bf16 %v6909_v8, %v1026_v20 }
 0x265   : > { %v1040_v46 = vadd.bf16 %v6909_v8, %v1025_v26  ;;  %v6477_v8 = vmov 1966171168  }
 0x266   : > { %v1049_v49 = vmax.bf16 %v6476_v14, %v1041_v45 }
 0x267   : > { %1672 = vmatpush1.bf16.msra.mxu0 %v5191_v24  ;;  %1785 = vmatpush1.bf16.msra.mxu1 %v5193_v27  ;;  %v1048_v48 = vmax.bf16 %v6476_v14, %v1040_v46 }
 0x268   : > { %1673 = vmatprep.subr.bf16.mxu0 %v5200_v28  ;;  %1786 = vmatprep.subr.bf16.mxu1 %v5202_v29 }
 0x269   : > { %1498 = vmatmul.mubr.bf16.gmra.mrb[28].mxu0 %v1045_v36  ;;  %1611 = vmatmul.mubr.bf16.gmra.mrb[28].mxu1 %v1045_v36 }
 0x26a   : > { %1507 = vmatprep.mubr.bf16.mxu0 %v6476_v14  ;;  %1620 = vmatprep.mubr.bf16.mxu1 %v6476_v14 }
 0x26b   : > { %1674 = vmatpush1.bf16.msra.mxu0 %v5199_v37  ;;  %1787 = vmatpush1.bf16.msra.mxu1 %v5201_v23 }
 0x26c   : > { %1675 = vmatprep.subr.bf16.mxu0 %v5208_v31  ;;  %1788 = vmatprep.subr.bf16.mxu1 %v5210_v33 }
 0x26f   : > { %1676 = vmatpush1.bf16.msra.mxu0 %v5207_v39  ;;  %1789 = vmatpush1.bf16.msra.mxu1 %v5209_v40 }
 0x271   : > { %1508 = vmatmul.mubr.bf16.gmra.mrb[32].mxu0 %v1046_v41  ;;  %1621 = vmatmul.mubr.bf16.gmra.mrb[32].mxu1 %v1046_v41 }
 0x272   : > { %1517 = vmatprep.mubr.bf16.mxu0 %v6476_v14  ;;  %1630 = vmatprep.mubr.bf16.mxu1 %v6476_v14 }
 0x279   : > { %1518 = vmatmul.mubr.bf16.gmra.mrb[36].mxu0 %v1047_v43  ;;  %1631 = vmatmul.mubr.bf16.gmra.mrb[36].mxu1 %v1047_v43 }
 0x27a   : > { %1527 = vmatprep.mubr.bf16.mxu0 %v6476_v14  ;;  %1640 = vmatprep.mubr.bf16.mxu1 %v6476_v14 }
 0x281   : > { %1528 = vmatmul.mubr.bf16.gmra.mrb[40].mxu0 %v1048_v48  ;;  %1641 = vmatmul.mubr.bf16.gmra.mrb[40].mxu1 %v1048_v48 }
 0x282   : > { %1537 = vmatprep.mubr.bf16.mxu0 %v6476_v14  ;;  %1650 = vmatprep.mubr.bf16.mxu1 %v6476_v14 }
 0x289   : > { %1538 = vmatmul.mubr.bf16.gmra.mrb[44].mxu0 %v1049_v49  ;;  %1651 = vmatmul.mubr.bf16.gmra.mrb[44].mxu1 %v1049_v49 }
 0x28a   : > { %1693 = vmatprep.mubr.bf16.mxu0 %v6476_v14  ;;  %1806 = vmatprep.mubr.bf16.mxu1 %v6476_v14 }
 0x291   : > { %1694 = vmatmul.mubr.bf16.vlgmr.msra.gmra.mrb[48].mxu0 %v6913_v22  ;;  %1807 = vmatmul.mubr.bf16.vlgmr.msra.gmra.mrb[48].mxu1 %v6913_v22  ;;  %v1954_v22 = vunpack.c.l.s4 %v6477_v8 }
 0x292   : > { %1703 = vmatprep.mubr.bf16.mxu0 %v6476_v14  ;;  %1816 = vmatprep.mubr.bf16.mxu1 %v6476_v14 }
 0x299   : > { %1704 = vmatmul.mubr.bf16.gmra.mrb[52].mxu0 %v6927_v44  ;;  %1817 = vmatmul.mubr.bf16.gmra.mrb[52].mxu1 %v6927_v44  ;;  %v1955_v44 = vunpack.c.0.s8 %v1954_v22 }
 0x29a   : > { %1713 = vmatprep.mubr.bf16.mxu0 %v6476_v14  ;;  %1826 = vmatprep.mubr.bf16.mxu1 %v6476_v14 }
 0x29b   : > { %v7003_v50 = vsub.s32 %v1955_v44, %v6727_v7 }
 0x29d   : > { %v1959_v52 = vrot.slane %v7008_v51, %v7003_v50 }
 0x29f   : > { %v1967_v53 = vcombine.high %v1959_v52, %v1959_v52  ;;  %v1975_v47 = vrot.slane %v1959_v52, %v7003_v50 }
 0x2a1   : > { %1714 = vmatmul.mubr.bf16.gmra.mrb[56].mxu0 %v6947_v4  ;;  %1827 = vmatmul.mubr.bf16.gmra.mrb[56].mxu1 %v6947_v4  ;;  %v1997_v58 = vcombine.high %v1975_v47, %v1975_v47  ;;  %v2002_v3 = vpack.i.b16 %v1975_v47, %v1975_v47 }
 0x2a2   : > { %1723 = vmatprep.mubr.bf16.mxu0 %v6476_v14  ;;  %1836 = vmatprep.mubr.bf16.mxu1 %v6476_v14 }
 0x2a3   : > { %v2016_v4 = vpack.i.b16 %v1997_v58, %v1997_v58  ;;  %v7015_v11 = vrot.slane %v2002_v3, %v6738_v12 }
 0x2a5   : > { %v7018_v13 = vrot.slane %v2016_v4, %v6738_v12 }
 0x2a9   : > { %1724 = vmatmul.mubr.bf16.gmra.mrb[60].mxu0 %v1045_v36  ;;  %1837 = vmatmul.mubr.bf16.gmra.mrb[60].mxu1 %v1045_v36 }
 0x2aa   : > { %1733 = vmatprep.mubr.bf16.mxu0 %v6476_v14  ;;  %1846 = vmatprep.mubr.bf16.mxu1 %v6476_v14 }
 0x2b1   : > { %1734 = vmatmul.mubr.bf16.gmra.mrb[64].mxu0 %v1046_v41  ;;  %1847 = vmatmul.mubr.bf16.gmra.mrb[64].mxu1 %v1046_v41 }
 0x2b2   : > { %1743 = vmatprep.mubr.bf16.mxu0 %v6476_v14  ;;  %1856 = vmatprep.mubr.bf16.mxu1 %v6476_v14 }
 0x2b9   : > { %1744 = vmatmul.mubr.bf16.gmra.mrb[68].mxu0 %v1047_v43  ;;  %1857 = vmatmul.mubr.bf16.gmra.mrb[68].mxu1 %v1047_v43 }
 0x2ba   : > { %1753 = vmatprep.mubr.bf16.mxu0 %v6476_v14  ;;  %1866 = vmatprep.mubr.bf16.mxu1 %v6476_v14 }
 0x2c1   : > { %1754 = vmatmul.mubr.bf16.gmra.mrb[72].mxu0 %v1048_v48  ;;  %1867 = vmatmul.mubr.bf16.gmra.mrb[72].mxu1 %v1048_v48 }
 0x2c2   : > { %1763 = vmatprep.mubr.bf16.mxu0 %v6476_v14  ;;  %1876 = vmatprep.mubr.bf16.mxu1 %v6476_v14  ;;  %v1989_v14 = vrot.slane %v1967_v53, %v7003_v50 }
 0x2c4   : > { %v1999_v60 = vcombine.high %v1989_v14, %v1989_v14  ;;  %v2009_v5 = vpack.i.b16 %v1989_v14, %v1989_v14 }
 0x2c6   : > { %v2023_v6 = vpack.i.b16 %v1999_v60, %v1999_v60  ;;  %v7021_v17 = vrot.slane %v2009_v5, %v6738_v12 }
 0x2c8   : > { %v7024_v18 = vrot.slane %v2023_v6, %v6738_v12 }
 0x2c9   : > { %1764 = vmatmul.mubr.bf16.gmra.mrb[76].mxu0 %v1049_v49  ;;  %1877 = vmatmul.mubr.bf16.gmra.mrb[76].mxu1 %v1049_v49 }
 0x324   : > { %v1469_v54 = vpop.f32.mrb[16].mxu0  ;;  %v1582_v55 = vpop.f32.mrb[16].mxu1 }
 0x325   : > { %v1471_v56 = vpop.f32.mrb[17].mxu0  ;;  %v1584_v57 = vpop.f32.mrb[17].mxu1 }
 0x326   : > { %v1473_v7 = vpop.f32.mrb[18].mxu0  ;;  %v1586_v59 = vpop.f32.mrb[18].mxu1 }
 0x327   : > { %v1887_v61 = vpack.c.bf16 %v1473_v7, %v1469_v54  ;;  %v1889_v62 = vpack.c.bf16 %v1586_v59, %v1582_v55  ;;  %v1475_v63 = vpop.f32.mrb[19].mxu0  ;;  %v1588_v0 = vpop.f32.mrb[19].mxu1 }
 0x328   : > { %v1888_v1 = vpack.c.bf16 %v1475_v63, %v1471_v56  ;;  %v1890_v2 = vpack.c.bf16 %v1588_v0, %v1584_v57 }
 0x329   : > { %v2057_v29 = vadd.bf16 %v7015_v11, %v1887_v61  ;;  %v2059_v30 = vadd.bf16 %v7018_v13, %v1889_v62 }
 0x32a   : > { %v2058_v35 = vadd.bf16 %v7021_v17, %v1888_v1  ;;  %v2060_v36 = vadd.bf16 %v7024_v18, %v1890_v2 }
 0x32c   : > { %v1479_v9 = vpop.f32.mrb[20].mxu0  ;;  %v1592_v10 = vpop.f32.mrb[20].mxu1 }
 0x32d   : > { %v1481_v15 = vpop.f32.mrb[21].mxu0  ;;  %v1594_v16 = vpop.f32.mrb[21].mxu1 }
 0x32e   : > { %v1483_v19 = vpop.f32.mrb[22].mxu0  ;;  %v1596_v20 = vpop.f32.mrb[22].mxu1 }
 0x32f   : > { %v1895_v21 = vpack.c.bf16 %v1483_v19, %v1479_v9  ;;  %v1897_v24 = vpack.c.bf16 %v1596_v20, %v1592_v10  ;;  %v1485_v25 = vpop.f32.mrb[23].mxu0  ;;  %v1598_v26 = vpop.f32.mrb[23].mxu1 }
 0x330   : > { %v1896_v27 = vpack.c.bf16 %v1485_v25, %v1481_v15  ;;  %v1898_v28 = vpack.c.bf16 %v1598_v26, %v1594_v16 }
 0x331   : > { %v2065_v32 = vadd.bf16 %v7015_v11, %v1895_v21  ;;  %v2067_v34 = vadd.bf16 %v7018_v13, %v1897_v24 }
 0x332   : > { %v2066_v37 = vadd.bf16 %v7021_v17, %v1896_v27  ;;  %v2068_v23 = vadd.bf16 %v7024_v18, %v1898_v28 }
 0x333   : > { %v2121_v31 = vmax.bf16 %v2065_v32, %v2057_v29  ;;  %v2155_v33 = vmax.bf16 %v2067_v34, %v2059_v30 }
 0x334   : > { %v2138_v38 = vmax.bf16 %v2066_v37, %v2058_v35  ;;  %v2172_v39 = vmax.bf16 %v2068_v23, %v2060_v36  ;;  %v1489_v40 = vpop.f32.mrb[24].mxu0  ;;  %v1602_v41 = vpop.f32.mrb[24].mxu1 }
 0x335   : > { %v1491_v42 = vpop.f32.mrb[25].mxu0  ;;  %v1604_v43 = vpop.f32.mrb[25].mxu1 }
 0x336   : > { %v1493_v46 = vpop.f32.mrb[26].mxu0  ;;  %v1606_v48 = vpop.f32.mrb[26].mxu1 }
 0x337   : > { %v1903_v45 = vpack.c.bf16 %v1493_v46, %v1489_v40  ;;  %v1905_v49 = vpack.c.bf16 %v1606_v48, %v1602_v41  ;;  %v1495_v8 = vpop.f32.mrb[27].mxu0  ;;  %v1608_v22 = vpop.f32.mrb[27].mxu1 }
 0x338   : > { %v1904_v44 = vpack.c.bf16 %v1495_v8, %v1491_v42  ;;  %v1906_v52 = vpack.c.bf16 %v1608_v22, %v1604_v43 }
 0x339   : > { %v2073_v53 = vadd.bf16 %v7015_v11, %v1903_v45  ;;  %v2075_v47 = vadd.bf16 %v7018_v13, %v1905_v49 }
 0x33a   : > { %v2074_v14 = vadd.bf16 %v7021_v17, %v1904_v44  ;;  %v2076_v54 = vadd.bf16 %v7024_v18, %v1906_v52 }
 0x33b   : > { %v2122_v55 = vmax.bf16 %v2121_v31, %v2073_v53  ;;  %v2156_v56 = vmax.bf16 %v2155_v33, %v2075_v47 }
 0x33c   : > { %v2139_v57 = vmax.bf16 %v2138_v38, %v2074_v14  ;;  %v2173_v58 = vmax.bf16 %v2172_v39, %v2076_v54  ;;  %v1499_v7 = vpop.f32.mrb[28].mxu0  ;;  %v1612_v59 = vpop.f32.mrb[28].mxu1  ;;  %v1952_v54 = vcombine.high %v7008_v51, %v7008_v51 }
 0x33d   : > { %v1501_v60 = vpop.f32.mrb[29].mxu0  ;;  %v1614_v61 = vpop.f32.mrb[29].mxu1 }
 0x33e   : > { %v1503_v62 = vpop.f32.mrb[30].mxu0  ;;  %v1616_v63 = vpop.f32.mrb[30].mxu1 }
 0x33f   : > { %v1911_v0 = vpack.c.bf16 %v1503_v62, %v1499_v7  ;;  %v1913_v1 = vpack.c.bf16 %v1616_v63, %v1612_v59  ;;  %v1505_v2 = vpop.f32.mrb[31].mxu0  ;;  %v1618_v3 = vpop.f32.mrb[31].mxu1 }
 0x340   : > { %v1912_v4 = vpack.c.bf16 %v1505_v2, %v1501_v60  ;;  %v1914_v5 = vpack.c.bf16 %v1618_v3, %v1614_v61 }
 0x341   : > { %v2081_v6 = vadd.bf16 %v7015_v11, %v1911_v0  ;;  %v2083_v9 = vadd.bf16 %v7018_v13, %v1913_v1  ;;  %v1966_v0 = vrot.slane %v1952_v54, %v7003_v50 }
 0x342   : > { %v2082_v10 = vadd.bf16 %v7021_v17, %v1912_v4  ;;  %v2084_v15 = vadd.bf16 %v7024_v18, %v1914_v5 }
 0x343   : > { %v2123_v16 = vmax.bf16 %v2122_v55, %v2081_v6  ;;  %v2157_v19 = vmax.bf16 %v2156_v56, %v2083_v9 }
 0x344   : > { %v2140_v20 = vmax.bf16 %v2139_v57, %v2082_v10  ;;  %v2174_v21 = vmax.bf16 %v2173_v58, %v2084_v15  ;;  %v1509_v24 = vpop.f32.mrb[32].mxu0  ;;  %v1622_v25 = vpop.f32.mrb[32].mxu1 }
 0x345   : > { %v1511_v26 = vpop.f32.mrb[33].mxu0  ;;  %v1624_v27 = vpop.f32.mrb[33].mxu1 }
 0x346   : > { %v1513_v28 = vpop.f32.mrb[34].mxu0  ;;  %v1626_v29 = vpop.f32.mrb[34].mxu1 }
 0x347   : > { %v1919_v30 = vpack.c.bf16 %v1513_v28, %v1509_v24  ;;  %v1921_v32 = vpack.c.bf16 %v1626_v29, %v1622_v25  ;;  %v1515_v34 = vpop.f32.mrb[35].mxu0  ;;  %v1628_v35 = vpop.f32.mrb[35].mxu1 }
 0x348   : > { %v1920_v36 = vpack.c.bf16 %v1515_v34, %v1511_v26  ;;  %v1922_v37 = vpack.c.bf16 %v1628_v35, %v1624_v27  ;;  %v1982_v27 = vrot.slane %v1966_v0, %v7003_v50 }
 0x349   : > { %v2089_v23 = vadd.bf16 %v7015_v11, %v1919_v30  ;;  %v2091_v31 = vadd.bf16 %v7018_v13, %v1921_v32 }
 0x34a   : > { %v2090_v33 = vadd.bf16 %v7021_v17, %v1920_v36  ;;  %v2092_v38 = vadd.bf16 %v7024_v18, %v1922_v37 }
 0x34b   : > { %v2124_v39 = vmax.bf16 %v2123_v16, %v2089_v23  ;;  %v2158_v40 = vmax.bf16 %v2157_v19, %v2091_v31  ;;  %v1968_v16 = vcombine.high %v1966_v0, %v1966_v0 }
 0x34c   : > { %v2141_v41 = vmax.bf16 %v2140_v20, %v2090_v33  ;;  %v2175_v42 = vmax.bf16 %v2174_v21, %v2092_v38  ;;  %v1519_v43 = vpop.f32.mrb[36].mxu0  ;;  %v1632_v46 = vpop.f32.mrb[36].mxu1 }
 0x34d   : > { %v1521_v48 = vpop.f32.mrb[37].mxu0  ;;  %v1634_v45 = vpop.f32.mrb[37].mxu1  ;;  %v1996_v34 = vrot.slane %v1968_v16, %v7003_v50 }
 0x34e   : > { %v1523_v49 = vpop.f32.mrb[38].mxu0  ;;  %v1636_v8 = vpop.f32.mrb[38].mxu1 }
 0x34f   : > { %v1927_v22 = vpack.c.bf16 %v1523_v49, %v1519_v43  ;;  %v1929_v44 = vpack.c.bf16 %v1636_v8, %v1632_v46  ;;  %v1525_v52 = vpop.f32.mrb[39].mxu0  ;;  %v1638_v53 = vpop.f32.mrb[39].mxu1  ;;  %v2000_v43 = vcombine.high %v1996_v34, %v1996_v34 }
 0x350   : > { %v1928_v47 = vpack.c.bf16 %v1525_v52, %v1521_v48  ;;  %v1930_v14 = vpack.c.bf16 %v1638_v53, %v1634_v45 }
 0x351   : > { %v2097_v55 = vadd.bf16 %v7015_v11, %v1927_v22  ;;  %v2099_v56 = vadd.bf16 %v7018_v13, %v1929_v44  ;;  %v2030_v44 = vpack.i.b16 %v1982_v27, %v1982_v27 }
 0x352   : > { %v2098_v57 = vadd.bf16 %v7021_v17, %v1928_v47  ;;  %v2100_v58 = vadd.bf16 %v7024_v18, %v1930_v14 }
 0x353   : > { %v2125_v7 = vmax.bf16 %v2124_v39, %v2097_v55  ;;  %v2159_v59 = vmax.bf16 %v2158_v40, %v2099_v56  ;;  %v1998_v40 = vcombine.high %v1982_v27, %v1982_v27  ;;  %v2037_v55 = vpack.i.b16 %v1996_v34, %v1996_v34 }
 0x354   : > { %v2142_v60 = vmax.bf16 %v2141_v41, %v2098_v57  ;;  %v2176_v61 = vmax.bf16 %v2175_v42, %v2100_v58  ;;  %v1529_v62 = vpop.f32.mrb[40].mxu0  ;;  %v1642_v63 = vpop.f32.mrb[40].mxu1  ;;  %v2051_v56 = vpack.i.b16 %v2000_v43, %v2000_v43 }
 0x355   : > { %v1531_v1 = vpop.f32.mrb[41].mxu0  ;;  %v1644_v2 = vpop.f32.mrb[41].mxu1  ;;  %v2044_v52 = vpack.i.b16 %v1998_v40, %v1998_v40 }
 0x356   : > { %v1533_v3 = vpop.f32.mrb[42].mxu0  ;;  %v1646_v51 = vpop.f32.mrb[42].mxu1 }
 0x357   : > { %v1935_v4 = vpack.c.bf16 %v1533_v3, %v1529_v62  ;;  %v1937_v5 = vpack.c.bf16 %v1646_v51, %v1642_v63  ;;  %v1535_v6 = vpop.f32.mrb[43].mxu0  ;;  %v1648_v9 = vpop.f32.mrb[43].mxu1 }
 0x358   : > { %v1936_v10 = vpack.c.bf16 %v1535_v6, %v1531_v1  ;;  %v1938_v15 = vpack.c.bf16 %v1648_v9, %v1644_v2 }
 0x359   : > { %v2105_v19 = vadd.bf16 %v7015_v11, %v1935_v4  ;;  %v2107_v20 = vadd.bf16 %v7018_v13, %v1937_v5 }
 0x35a   : > { %v2106_v21 = vadd.bf16 %v7021_v17, %v1936_v10  ;;  %v2108_v24 = vadd.bf16 %v7024_v18, %v1938_v15 }
 0x35b   : > { %v2126_v25 = vmax.bf16 %v2125_v7, %v2105_v19  ;;  %v2160_v26 = vmax.bf16 %v2159_v59, %v2107_v20  ;;  %v7064_v19 = vrot.slane %v2030_v44, %v6738_v12  ;;  %v7067_v20 = vrot.slane %v2044_v52, %v6738_v12 }
 0x35c   : > { %v2143_v28 = vmax.bf16 %v2142_v60, %v2106_v21  ;;  %v2177_v29 = vmax.bf16 %v2176_v61, %v2108_v24  ;;  %v1539_v30 = vpop.f32.mrb[44].mxu0  ;;  %v1652_v32 = vpop.f32.mrb[44].mxu1 }
 0x35d   : > { %v1541_v35 = vpop.f32.mrb[45].mxu0  ;;  %v1654_v36 = vpop.f32.mrb[45].mxu1 }
 0x35e   : > { %v1543_v37 = vpop.f32.mrb[46].mxu0  ;;  %v1656_v23 = vpop.f32.mrb[46].mxu1 }
 0x35f   : > { %v1943_v31 = vpack.c.bf16 %v1543_v37, %v1539_v30  ;;  %v1945_v33 = vpack.c.bf16 %v1656_v23, %v1652_v32  ;;  %v1545_v38 = vpop.f32.mrb[47].mxu0  ;;  %v1658_v39 = vpop.f32.mrb[47].mxu1 }
 0x360   : > { %v1944_v41 = vpack.c.bf16 %v1545_v38, %v1541_v35  ;;  %v1946_v42 = vpack.c.bf16 %v1658_v39, %v1654_v36 }
 0x361   : > { %v2113_v46 = vadd.bf16 %v7015_v11, %v1943_v31  ;;  %v2115_v48 = vadd.bf16 %v7018_v13, %v1945_v33 }
 0x362   : > { %v2114_v45 = vadd.bf16 %v7021_v17, %v1944_v41  ;;  %v2116_v49 = vadd.bf16 %v7024_v18, %v1946_v42 }
 0x363   : > { %v2127_v8 = vmax.bf16 %v2126_v25, %v2113_v46  ;;  %v2161_v22 = vmax.bf16 %v2160_v26, %v2115_v48  ;;  %v7070_v25 = vrot.slane %v2037_v55, %v6738_v12  ;;  %v7073_v26 = vrot.slane %v2051_v56, %v6738_v12 }
 0x364   : > { %v2144_v53 = vmax.bf16 %v2143_v28, %v2114_v45  ;;  %v2178_v47 = vmax.bf16 %v2177_v29, %v2116_v49  ;;  %v1695_v14 = vpop.f32.mrb[48].mxu0  ;;  %v1808_v54 = vpop.f32.mrb[48].mxu1 }
 0x365   : > { %v2128_v57 = vunpack.i.l.bf16 %v2127_v8  ;;  %v2129_v58 = vunpack.i.h.bf16 %v2127_v8  ;;  %v2162_v7 = vunpack.i.l.bf16 %v2161_v22  ;;  %v2163_v11 = vunpack.i.h.bf16 %v2161_v22  ;;  %v1697_v59 = vpop.f32.mrb[49].mxu0  ;;  %v1810_v13 = vpop.f32.mrb[49].mxu1 }
 0x366   : > { %v2145_v60 = vunpack.i.l.bf16 %v2144_v53  ;;  %v2146_v17 = vunpack.i.h.bf16 %v2144_v53  ;;  %v2179_v61 = vunpack.i.l.bf16 %v2178_v47  ;;  %v2180_v18 = vunpack.i.h.bf16 %v2178_v47  ;;  %v1699_v62 = vpop.f32.mrb[50].mxu0  ;;  %v1812_v63 = vpop.f32.mrb[50].mxu1 }
 0x367   : > { %v2130_v0 = vmax.f32 %v2128_v57, %v2129_v58  ;;  %v2164_v1 = vmax.f32 %v2162_v7, %v2163_v11  ;;  %v1891_v2 = vpack.c.bf16 %v1699_v62, %v1695_v14  ;;  %v1893_v3 = vpack.c.bf16 %v1812_v63, %v1808_v54  ;;  %v1701_v51 = vpop.f32.mrb[51].mxu0  ;;  %v1814_v4 = vpop.f32.mrb[51].mxu1 }
 0x368   : > { %v2147_v5 = vmax.f32 %v2145_v60, %v2146_v17  ;;  %v2181_v6 = vmax.f32 %v2179_v61, %v2180_v18  ;;  %v1892_v9 = vpack.c.bf16 %v1701_v51, %v1697_v59  ;;  %v1894_v10 = vpack.c.bf16 %v1814_v4, %v1810_v13 }
 0x369   : > { %v2131_v15 = vrot.slane %v2130_v0, 4  ;;  %v2165_v16 = vrot.slane %v2164_v1, 4  ;;  %v2061_v37 = vadd.bf16 %v7064_v19, %v1891_v2  ;;  %v2063_v23 = vadd.bf16 %v7067_v20, %v1893_v3 }
 0x36a   : > { %v2148_v21 = vrot.slane %v2147_v5, 4  ;;  %v2182_v24 = vrot.slane %v2181_v6, 4  ;;  %v2062_v40 = vadd.bf16 %v7070_v25, %v1892_v9  ;;  %v2064_v12 = vadd.bf16 %v7073_v26, %v1894_v10 }
 0x36b   : > { %v2132_v27 = vmax.f32 %v2130_v0, %v2131_v15  ;;  %v2166_v28 = vmax.f32 %v2164_v1, %v2165_v16 }
 0x36c   : > { %v2149_v29 = vmax.f32 %v2147_v5, %v2148_v21  ;;  %v2183_v30 = vmax.f32 %v2181_v6, %v2182_v24  ;;  %v1705_v32 = vpop.f32.mrb[52].mxu0  ;;  %v1818_v34 = vpop.f32.mrb[52].mxu1 }
 0x36d   : > { %v2133_v35 = vrot.slane %v2132_v27, 2  ;;  %v2167_v36 = vrot.slane %v2166_v28, 2  ;;  %v1707_v31 = vpop.f32.mrb[53].mxu0  ;;  %v1820_v33 = vpop.f32.mrb[53].mxu1 }
 0x36e   : > { %v2150_v38 = vrot.slane %v2149_v29, 2  ;;  %v2184_v39 = vrot.slane %v2183_v30, 2  ;;  %v1709_v41 = vpop.f32.mrb[54].mxu0  ;;  %v1822_v42 = vpop.f32.mrb[54].mxu1 }
 0x36f   : > { %v2134_v43 = vmax.f32 %v2132_v27, %v2133_v35  ;;  %v2168_v46 = vmax.f32 %v2166_v28, %v2167_v36  ;;  %v1899_v48 = vpack.c.bf16 %v1709_v41, %v1705_v32  ;;  %v1901_v45 = vpack.c.bf16 %v1822_v42, %v1818_v34  ;;  %v1711_v49 = vpop.f32.mrb[55].mxu0  ;;  %v1824_v8 = vpop.f32.mrb[55].mxu1 }
 0x370   : > { %v2151_v22 = vmax.f32 %v2149_v29, %v2150_v38  ;;  %v2185_v44 = vmax.f32 %v2183_v30, %v2184_v39  ;;  %v1900_v52 = vpack.c.bf16 %v1711_v49, %v1707_v31  ;;  %v1902_v53 = vpack.c.bf16 %v1824_v8, %v1820_v33 }
 0x371   : > { %v2135_v47 = vrot.slane %v2134_v43, 1  ;;  %v2169_v14 = vrot.slane %v2168_v46, 1  ;;  %v2069_v54 = vadd.bf16 %v7064_v19, %v1899_v48  ;;  %v2071_v55 = vadd.bf16 %v7067_v20, %v1901_v45 }
 0x372   : > { %v2152_v56 = vrot.slane %v2151_v22, 1  ;;  %v2186_v57 = vrot.slane %v2185_v44, 1  ;;  %v2070_v58 = vadd.bf16 %v7070_v25, %v1900_v52  ;;  %v2072_v7 = vadd.bf16 %v7073_v26, %v1902_v53 }
 0x373   : > { %v2136_v11 = vmax.f32 %v2134_v43, %v2135_v47  ;;  %v2170_v59 = vmax.f32 %v2168_v46, %v2169_v14  ;;  %v2189_v13 = vmax.bf16 %v2069_v54, %v2061_v37  ;;  %v2223_v60 = vmax.bf16 %v2071_v55, %v2063_v23 }
 0x374   : > { %v2153_v17 = vmax.f32 %v2151_v22, %v2152_v56  ;;  %v2187_v61 = vmax.f32 %v2185_v44, %v2186_v57  ;;  %v2206_v18 = vmax.bf16 %v2070_v58, %v2062_v40  ;;  %v2240_v62 = vmax.bf16 %v2072_v7, %v2064_v12  ;;  %v1715_v63 = vpop.f32.mrb[56].mxu0  ;;  %v1828_v0 = vpop.f32.mrb[56].mxu1 }
 0x375   : > { %v2137_v1 = vpack.i.bf16 %v2136_v11, %v2136_v11  ;;  %v2171_v2 = vpack.i.bf16 %v2170_v59, %v2170_v59  ;;  %v1717_v3 = vpop.f32.mrb[57].mxu0  ;;  %v1830_v51 = vpop.f32.mrb[57].mxu1 }
 0x376   : > { %v2154_v4 = vpack.i.bf16 %v2153_v17, %v2153_v17  ;;  %v2188_v5 = vpack.i.bf16 %v2187_v61, %v2187_v61  ;;  %v1719_v6 = vpop.f32.mrb[58].mxu0  ;;  %v1832_v9 = vpop.f32.mrb[58].mxu1 }
 0x377   : > { %v1907_v10 = vpack.c.bf16 %v1719_v6, %v1715_v63  ;;  %v1909_v15 = vpack.c.bf16 %v1832_v9, %v1828_v0  ;;  %v1721_v16 = vpop.f32.mrb[59].mxu0  ;;  %v1834_v21 = vpop.f32.mrb[59].mxu1 }
 0x378   : > { %v2266_v24 = vcombine.low %v2137_v1, %v2154_v4  ;;  %v2267_v27 = vcombine.low %v2171_v2, %v2188_v5  ;;  %v1908_v28 = vpack.c.bf16 %v1721_v16, %v1717_v3  ;;  %v1910_v29 = vpack.c.bf16 %v1834_v21, %v1830_v51 }
 0x379   : > { %v2077_v30 = vadd.bf16 %v7064_v19, %v1907_v10  ;;  %v2079_v32 = vadd.bf16 %v7067_v20, %v1909_v15 }
 0x37a   : > { %v2276_v34 = vrot.slane %v2266_v24, %v7003_v50  ;;  %v2283_v35 = vrot.slane %v2267_v27, %v7003_v50  ;;  %v2078_v36 = vadd.bf16 %v7070_v25, %v1908_v28  ;;  %v2080_v37 = vadd.bf16 %v7073_v26, %v1910_v29 }
 0x37b   : > { %v2190_v23 = vmax.bf16 %v2189_v13, %v2077_v30  ;;  %v2224_v31 = vmax.bf16 %v2223_v60, %v2079_v32 }
 0x37c   : > { %v7089_v33 = vcombine.low %v2276_v34, %v2283_v35  ;;  %v2207_v38 = vmax.bf16 %v2206_v18, %v2078_v36  ;;  %v2241_v39 = vmax.bf16 %v2240_v62, %v2080_v37  ;;  %v1725_v40 = vpop.f32.mrb[60].mxu0  ;;  %v1838_v12 = vpop.f32.mrb[60].mxu1 }
 0x37d   : > { %v1727_v41 = vpop.f32.mrb[61].mxu0  ;;  %v1840_v42 = vpop.f32.mrb[61].mxu1 }
 0x37e   : > { %v1729_v43 = vpop.f32.mrb[62].mxu0  ;;  %v1842_v46 = vpop.f32.mrb[62].mxu1 }
 0x37f   : > { %v1915_v48 = vpack.c.bf16 %v1729_v43, %v1725_v40  ;;  %v1917_v45 = vpack.c.bf16 %v1842_v46, %v1838_v12  ;;  %v1731_v49 = vpop.f32.mrb[63].mxu0  ;;  %v1844_v8 = vpop.f32.mrb[63].mxu1 }
 0x380   : > { %v1916_v22 = vpack.c.bf16 %v1731_v49, %v1727_v41  ;;  %v1918_v44 = vpack.c.bf16 %v1844_v8, %v1840_v42 }
 0x381   : > { %v2085_v52 = vadd.bf16 %v7064_v19, %v1915_v48  ;;  %v2087_v53 = vadd.bf16 %v7067_v20, %v1917_v45 }
 0x382   : > { %v2086_v47 = vadd.bf16 %v7070_v25, %v1916_v22  ;;  %v2088_v14 = vadd.bf16 %v7073_v26, %v1918_v44 }
 0x383   : > { %v2191_v54 = vmax.bf16 %v2190_v23, %v2085_v52  ;;  %v2225_v55 = vmax.bf16 %v2224_v31, %v2087_v53 }
 0x384   : > { %v2208_v56 = vmax.bf16 %v2207_v38, %v2086_v47  ;;  %v2242_v57 = vmax.bf16 %v2241_v39, %v2088_v14  ;;  %v1735_v58 = vpop.f32.mrb[64].mxu0  ;;  %v1848_v7 = vpop.f32.mrb[64].mxu1 }
 0x385   : > { %v1737_v11 = vpop.f32.mrb[65].mxu0  ;;  %v1850_v59 = vpop.f32.mrb[65].mxu1 }
 0x386   : > { %v1739_v13 = vpop.f32.mrb[66].mxu0  ;;  %v1852_v60 = vpop.f32.mrb[66].mxu1 }
 0x387   : > { %v1923_v17 = vpack.c.bf16 %v1739_v13, %v1735_v58  ;;  %v1925_v61 = vpack.c.bf16 %v1852_v60, %v1848_v7  ;;  %v1741_v18 = vpop.f32.mrb[67].mxu0  ;;  %v1854_v62 = vpop.f32.mrb[67].mxu1 }
 0x388   : > { %v1924_v63 = vpack.c.bf16 %v1741_v18, %v1737_v11  ;;  %v1926_v0 = vpack.c.bf16 %v1854_v62, %v1850_v59 }
 0x389   : > { %v2093_v1 = vadd.bf16 %v7064_v19, %v1923_v17  ;;  %v2095_v2 = vadd.bf16 %v7067_v20, %v1925_v61 }
 0x38a   : > { %v2094_v3 = vadd.bf16 %v7070_v25, %v1924_v63  ;;  %v2096_v51 = vadd.bf16 %v7073_v26, %v1926_v0 }
 0x38b   : > { %v2192_v4 = vmax.bf16 %v2191_v54, %v2093_v1  ;;  %v2226_v5 = vmax.bf16 %v2225_v55, %v2095_v2 }
 0x38c   : > { %v2209_v6 = vmax.bf16 %v2208_v56, %v2094_v3  ;;  %v2243_v9 = vmax.bf16 %v2242_v57, %v2096_v51  ;;  %v1745_v10 = vpop.f32.mrb[68].mxu0  ;;  %v1858_v15 = vpop.f32.mrb[68].mxu1 }
 0x38d   : > { %v1747_v16 = vpop.f32.mrb[69].mxu0  ;;  %v1860_v21 = vpop.f32.mrb[69].mxu1 }
 0x38e   : > { %v1749_v24 = vpop.f32.mrb[70].mxu0  ;;  %v1862_v27 = vpop.f32.mrb[70].mxu1 }
 0x38f   : > { %v1931_v28 = vpack.c.bf16 %v1749_v24, %v1745_v10  ;;  %v1933_v29 = vpack.c.bf16 %v1862_v27, %v1858_v15  ;;  %v1751_v30 = vpop.f32.mrb[71].mxu0  ;;  %v1864_v32 = vpop.f32.mrb[71].mxu1 }
 0x390   : > { %v1932_v34 = vpack.c.bf16 %v1751_v30, %v1747_v16  ;;  %v1934_v35 = vpack.c.bf16 %v1864_v32, %v1860_v21 }
 0x391   : > { %v2101_v36 = vadd.bf16 %v7064_v19, %v1931_v28  ;;  %v2103_v37 = vadd.bf16 %v7067_v20, %v1933_v29  ;;  %v5806_v29 = vld [vmem:[#allocation6 + $0x84] ss:$16 sps:$4 sm:$0xff] (!%p5211_p13)  }
 0x392   : > { %v2102_v23 = vadd.bf16 %v7070_v25, %v1932_v34  ;;  %v2104_v31 = vadd.bf16 %v7073_v26, %v1934_v35 }
 0x393   : > { %v2193_v38 = vmax.bf16 %v2192_v4, %v2101_v36  ;;  %v2227_v39 = vmax.bf16 %v2226_v5, %v2103_v37 }
 0x394   : > { %v2210_v40 = vmax.bf16 %v2209_v6, %v2102_v23  ;;  %v2244_v12 = vmax.bf16 %v2243_v9, %v2104_v31  ;;  %v1755_v41 = vpop.f32.mrb[72].mxu0  ;;  %v1868_v42 = vpop.f32.mrb[72].mxu1 }
 0x395   : > { %v1757_v43 = vpop.f32.mrb[73].mxu0  ;;  %v1870_v46 = vpop.f32.mrb[73].mxu1 }
 0x396   : > { %v1759_v48 = vpop.f32.mrb[74].mxu0  ;;  %v1872_v45 = vpop.f32.mrb[74].mxu1 }
 0x397   : > { %v1939_v49 = vpack.c.bf16 %v1759_v48, %v1755_v41  ;;  %v1941_v8 = vpack.c.bf16 %v1872_v45, %v1868_v42  ;;  %v1761_v22 = vpop.f32.mrb[75].mxu0  ;;  %v1874_v44 = vpop.f32.mrb[75].mxu1  ;;  %v5834_v45 = vld [vmem:[#allocation6 + $0x100] ss:$16 sps:$4 sm:$0xff] (!%p5211_p13)  }
 0x398   : > { %v1940_v52 = vpack.c.bf16 %v1761_v22, %v1757_v43  ;;  %v1942_v53 = vpack.c.bf16 %v1874_v44, %v1870_v46  ;;  %v5829_v43 = vld [vmem:[#allocation6 + $0x2e0] ss:$16 sps:$4 sm:$0xff] (!%p5211_p13)  }
 0x399   : > { %v2109_v47 = vadd.bf16 %v7064_v19, %v1939_v49  ;;  %v2111_v14 = vadd.bf16 %v7067_v20, %v1941_v8 }
 0x39a   : > { %v2110_v54 = vadd.bf16 %v7070_v25, %v1940_v52  ;;  %v2112_v55 = vadd.bf16 %v7073_v26, %v1942_v53 }
 0x39b   : > { %v2194_v56 = vmax.bf16 %v2193_v38, %v2109_v47  ;;  %v2228_v57 = vmax.bf16 %v2227_v39, %v2111_v14 }
 0x39c   : > { %v2211_v58 = vmax.bf16 %v2210_v40, %v2110_v54  ;;  %v2245_v7 = vmax.bf16 %v2244_v12, %v2112_v55  ;;  %v1765_v11 = vpop.f32.mrb[76].mxu0  ;;  %v1878_v59 = vpop.f32.mrb[76].mxu1 }
 0x39d   : > { %v1767_v13 = vpop.f32.mrb[77].mxu0  ;;  %v1880_v60 = vpop.f32.mrb[77].mxu1 }
 0x39e   : > { %v1769_v17 = vpop.f32.mrb[78].mxu0  ;;  %v1882_v61 = vpop.f32.mrb[78].mxu1 }
 0x39f   : > { %v1947_v18 = vpack.c.bf16 %v1769_v17, %v1765_v11  ;;  %v1949_v62 = vpack.c.bf16 %v1882_v61, %v1878_v59  ;;  %v1771_v63 = vpop.f32.mrb[79].mxu0  ;;  %v1884_v0 = vpop.f32.mrb[79].mxu1  ;;  %v5853_v11 = vld [vmem:[#allocation6 + $0x360] ss:$16 sps:$4 sm:$0xff] (!%p5211_p13)  }
 0x3a0   : > { %v1948_v1 = vpack.c.bf16 %v1771_v63, %v1767_v13  ;;  %v1950_v2 = vpack.c.bf16 %v1884_v0, %v1880_v60  ;;  %v2306_v63 = vrot.slane %v7089_v33, %v7003_v50  ;;  %v5790_v33 = vld [vmem:[#allocation6 + $0x224] ss:$16 sps:$4 sm:$0xff] (!%p5211_p13)  }
 0x3a1   : > { %v2117_v3 = vadd.bf16 %v7064_v19, %v1947_v18  ;;  %v2119_v51 = vadd.bf16 %v7067_v20, %v1949_v62  ;;  %v5799_v19 = vld [vmem:[#allocation6 + $0x240] ss:$16 sps:$4 sm:$0xff] (!%p5211_p13)  }
 0x3a2   : > { %v2118_v4 = vadd.bf16 %v7070_v25, %v1948_v1  ;;  %v2120_v5 = vadd.bf16 %v7073_v26, %v1950_v2  ;;  %v2257_v1 = vld [vmem:[#allocation2] sm:$0xff] }
 0x3a3   : > { %v2195_v6 = vmax.bf16 %v2194_v56, %v2117_v3  ;;  %v2229_v9 = vmax.bf16 %v2228_v57, %v2119_v51 }
 0x3a4   : > { %v2212_v10 = vmax.bf16 %v2211_v58, %v2118_v4  ;;  %v2246_v15 = vmax.bf16 %v2245_v7, %v2120_v5  ;;  %v5782_v4 = vld [vmem:[#allocation6 + $0x4] ss:$16 sps:$4 sm:$0xff] (!%p5211_p13)  }
 0x3a5   : > { %v2196_v16 = vunpack.i.l.bf16 %v2195_v6  ;;  %v2197_v21 = vunpack.i.h.bf16 %v2195_v6  ;;  %v2230_v24 = vunpack.i.l.bf16 %v2229_v9  ;;  %v2231_v27 = vunpack.i.h.bf16 %v2229_v9  ;;  %v5784_v5 = vld [vmem:[#allocation6 + $0x204] ss:$16 sps:$4 sm:$0xff] (!%p5211_p13)   ;;  %3950 = vmatprep.subr.bf16.mxu1 (!%p5211_p13), %v5782_v4  ;;  %v5786_v6 = vld [vmem:[#allocation6] ss:$16 sps:$4 sm:$0xff] (!%p5211_p13)  }
 0x3a6   : > { %v2213_v20 = vunpack.i.l.bf16 %v2212_v10  ;;  %v2214_v25 = vunpack.i.h.bf16 %v2212_v10  ;;  %v2247_v28 = vunpack.i.l.bf16 %v2246_v15  ;;  %v2248_v26 = vunpack.i.h.bf16 %v2246_v15  ;;  %v5787_v9 = vld [vmem:[#allocation6 + $0x200] ss:$16 sps:$4 sm:$0xff] (!%p5211_p13)   ;;  %3991 = vmatprep.subr.bf16.mxu0 (!%p5211_p13), %v5784_v5  ;;  %v5788_v10 = vld [vmem:[#allocation6 + $0x24] ss:$16 sps:$4 sm:$0xff] (!%p5211_p13)   ;;  %3951 = vmatpush1.bf16.msra.mxu1 (!%p5211_p13), %v5786_v6 }
 0x3a7   : > { %v2198_v30 = vmax.f32 %v2196_v16, %v2197_v21  ;;  %v2232_v32 = vmax.f32 %v2230_v24, %v2231_v27  ;;  %3992 = vmatpush1.bf16.msra.mxu0 (!%p5211_p13), %v5787_v9  ;;  %v5792_v15 = vld [vmem:[#allocation6 + $0x20] ss:$16 sps:$4 sm:$0xff] (!%p5211_p13)   ;;  %3952 = vmatprep.subr.bf16.mxu1 (!%p5211_p13), %v5788_v10  ;;  %v5794_v21 = vld [vmem:[#allocation6 + $0x44] ss:$16 sps:$4 sm:$0xff] (!%p5211_p13)  }
 0x3a8   : > { %v2215_v34 = vmax.f32 %v2213_v20, %v2214_v25  ;;  %v2249_v35 = vmax.f32 %v2247_v28, %v2248_v26  ;;  %v5793_v16 = vld [vmem:[#allocation6 + $0x220] ss:$16 sps:$4 sm:$0xff] (!%p5211_p13)   ;;  %3993 = vmatprep.subr.bf16.mxu0 (!%p5211_p13), %v5790_v33  ;;  %v5796_v24 = vld [vmem:[#allocation6 + $0x244] ss:$16 sps:$4 sm:$0xff] (!%p5211_p13)  }
 0x3a9   : > { %v2199_v36 = vrot.slane %v2198_v30, 4  ;;  %v2233_v37 = vrot.slane %v2232_v32, 4  ;;  %v5798_v27 = vld [vmem:[#allocation6 + $0x40] ss:$16 sps:$4 sm:$0xff] (!%p5211_p13)   ;;  %v5800_v20 = vld [vmem:[#allocation6 + $0x64] ss:$16 sps:$4 sm:$0xff] (!%p5211_p13)  }
 0x3aa   : > { %v2216_v23 = vrot.slane %v2215_v34, 4  ;;  %v2250_v31 = vrot.slane %v2249_v35, 4  ;;  %3953 = vmatpush1.bf16.msra.mxu1 (!%p5211_p13), %v5792_v15  ;;  %v5802_v25 = vld [vmem:[#allocation6 + $0x264] ss:$16 sps:$4 sm:$0xff] (!%p5211_p13)   ;;  %v5804_v28 = vld [vmem:[#allocation6 + $0x60] ss:$16 sps:$4 sm:$0xff] (!%p5211_p13)  }
 0x3ab   : > { %v2200_v38 = vmax.f32 %v2198_v30, %v2199_v36  ;;  %v2234_v39 = vmax.f32 %v2232_v32, %v2233_v37  ;;  %3994 = vmatpush1.bf16.msra.mxu0 (!%p5211_p13), %v5793_v16  ;;  %3954 = vmatprep.subr.bf16.mxu1 (!%p5211_p13), %v5794_v21  ;;  %v5805_v26 = vld [vmem:[#allocation6 + $0x260] ss:$16 sps:$4 sm:$0xff] (!%p5211_p13)   ;;  %v5808_v30 = vld [vmem:[#allocation6 + $0x284] ss:$16 sps:$4 sm:$0xff] (!%p5211_p13)  }
 0x3ac   : > { %v2217_v40 = vmax.f32 %v2215_v34, %v2216_v23  ;;  %v2251_v12 = vmax.f32 %v2249_v35, %v2250_v31  ;;  %3995 = vmatprep.subr.bf16.mxu0 (!%p5211_p13), %v5796_v24  ;;  %v5810_v32 = vld [vmem:[#allocation6 + $0x80] ss:$16 sps:$4 sm:$0xff] (!%p5211_p13)   ;;  %v5812_v35 = vld [vmem:[#allocation6 + $0xa4] ss:$16 sps:$4 sm:$0xff] (!%p5211_p13)  }
 0x3ad   : > { %v2201_v41 = vrot.slane %v2200_v38, 2  ;;  %v2235_v42 = vrot.slane %v2234_v39, 2  ;;  %v5811_v34 = vld [vmem:[#allocation6 + $0x280] ss:$16 sps:$4 sm:$0xff] (!%p5211_p13)   ;;  %v5814_v36 = vld [vmem:[#allocation6 + $0x2a4] ss:$16 sps:$4 sm:$0xff] (!%p5211_p13)  }
 0x3ae   : > { %v2218_v46 = vrot.slane %v2217_v40, 2  ;;  %v2252_v48 = vrot.slane %v2251_v12, 2  ;;  %3955 = vmatpush1.bf16.msra.mxu1 (!%p5211_p13), %v5798_v27  ;;  %v5816_v37 = vld [vmem:[#allocation6 + $0xa0] ss:$16 sps:$4 sm:$0xff] (!%p5211_p13)   ;;  %v5818_v31 = vld [vmem:[#allocation6 + $0xc4] ss:$16 sps:$4 sm:$0xff] (!%p5211_p13)  }
 0x3af   : > { %v2202_v49 = vmax.f32 %v2200_v38, %v2201_v41  ;;  %v2236_v8 = vmax.f32 %v2234_v39, %v2235_v42  ;;  %3996 = vmatpush1.bf16.msra.mxu0 (!%p5211_p13), %v5799_v19  ;;  %3956 = vmatprep.subr.bf16.mxu1 (!%p5211_p13), %v5800_v20  ;;  %v5817_v23 = vld [vmem:[#allocation6 + $0x2a0] ss:$16 sps:$4 sm:$0xff] (!%p5211_p13)   ;;  %v5820_v38 = vld [vmem:[#allocation6 + $0x2c4] ss:$16 sps:$4 sm:$0xff] (!%p5211_p13)   ;;  %v5883_v27 = vld [vmem:[#allocation6 + $0xc] ss:$16 sps:$4 sm:$0xff] (!%p5211_p13)  }
 0x3b0   : > { %v2219_v22 = vmax.f32 %v2217_v40, %v2218_v46  ;;  %v2253_v44 = vmax.f32 %v2251_v12, %v2252_v48  ;;  %3997 = vmatprep.subr.bf16.mxu0 (!%p5211_p13), %v5802_v25  ;;  %v5822_v39 = vld [vmem:[#allocation6 + $0xc0] ss:$16 sps:$4 sm:$0xff] (!%p5211_p13)   ;;  %v5824_v12 = vld [vmem:[#allocation6 + $0xe4] ss:$16 sps:$4 sm:$0xff] (!%p5211_p13)  }
 0x3b1   : > { %v2203_v52 = vrot.slane %v2202_v49, 1  ;;  %v2237_v53 = vrot.slane %v2236_v8, 1  ;;  %v5823_v40 = vld [vmem:[#allocation6 + $0x2c0] ss:$16 sps:$4 sm:$0xff] (!%p5211_p13)   ;;  %v5826_v41 = vld [vmem:[#allocation6 + $0x2e4] ss:$16 sps:$4 sm:$0xff] (!%p5211_p13)  }
 0x3b2   : > { %v2220_v47 = vrot.slane %v2219_v22, 1  ;;  %v2254_v14 = vrot.slane %v2253_v44, 1  ;;  %3957 = vmatpush1.bf16.msra.mxu1 (!%p5211_p13), %v5804_v28  ;;  %v5828_v42 = vld [vmem:[#allocation6 + $0xe0] ss:$16 sps:$4 sm:$0xff] (!%p5211_p13)   ;;  %v5830_v46 = vld [vmem:[#allocation6 + $0x104] ss:$16 sps:$4 sm:$0xff] (!%p5211_p13)  }
 0x3b3   : > { %v2204_v54 = vmax.f32 %v2202_v49, %v2203_v52  ;;  %v2238_v55 = vmax.f32 %v2236_v8, %v2237_v53  ;;  %3998 = vmatpush1.bf16.msra.mxu0 (!%p5211_p13), %v5805_v26  ;;  %3958 = vmatprep.subr.bf16.mxu1 (!%p5211_p13), %v5806_v29  ;;  %v5832_v48 = vld [vmem:[#allocation6 + $0x304] ss:$16 sps:$4 sm:$0xff] (!%p5211_p13)   ;;  %v5835_v49 = vld [vmem:[#allocation6 + $0x300] ss:$16 sps:$4 sm:$0xff] (!%p5211_p13)   ;;  %v5881_v28 = vld [vmem:[#allocation6 + $0x8] ss:$16 sps:$4 sm:$0xff] (!%p5211_p13)  }
 0x3b4   : > { %v2221_v56 = vmax.f32 %v2219_v22, %v2220_v47  ;;  %v2255_v57 = vmax.f32 %v2253_v44, %v2254_v14  ;;  %3999 = vmatprep.subr.bf16.mxu0 (!%p5211_p13), %v5808_v30  ;;  %v5836_v8 = vld [vmem:[#allocation6 + $0x124] ss:$16 sps:$4 sm:$0xff] (!%p5211_p13)   ;;  %v5840_v44 = vld [vmem:[#allocation6 + $0x120] ss:$16 sps:$4 sm:$0xff] (!%p5211_p13)   ;;  %v5889_v29 = vld [vmem:[#allocation6 + $0x2c] ss:$16 sps:$4 sm:$0xff] (!%p5211_p13)  }
 0x3b5   : > { %v2205_v58 = vpack.i.bf16 %v2204_v54, %v2204_v54  ;;  %v2239_v7 = vpack.i.bf16 %v2238_v55, %v2238_v55  ;;  %v5838_v22 = vld [vmem:[#allocation6 + $0x324] ss:$16 sps:$4 sm:$0xff] (!%p5211_p13)   ;;  %v5841_v52 = vld [vmem:[#allocation6 + $0x320] ss:$16 sps:$4 sm:$0xff] (!%p5211_p13)  }
 0x3b6   : > { %v2222_v59 = vpack.i.bf16 %v2221_v56, %v2221_v56  ;;  %v2256_v13 = vpack.i.bf16 %v2255_v57, %v2255_v57  ;;  %3959 = vmatpush1.bf16.msra.mxu1 (!%p5211_p13), %v5810_v32  ;;  %v5842_v53 = vld [vmem:[#allocation6 + $0x144] ss:$16 sps:$4 sm:$0xff] (!%p5211_p13)   ;;  %v5846_v14 = vld [vmem:[#allocation6 + $0x140] ss:$16 sps:$4 sm:$0xff] (!%p5211_p13)  }
 0x3b7   : > { %4000 = vmatpush1.bf16.msra.mxu0 (!%p5211_p13), %v5811_v34  ;;  %3960 = vmatprep.subr.bf16.mxu1 (!%p5211_p13), %v5812_v35  ;;  %v5844_v47 = vld [vmem:[#allocation6 + $0x344] ss:$16 sps:$4 sm:$0xff] (!%p5211_p13)   ;;  %v5847_v54 = vld [vmem:[#allocation6 + $0x340] ss:$16 sps:$4 sm:$0xff] (!%p5211_p13)   ;;  %v5887_v34 = vld [vmem:[#allocation6 + $0x28] ss:$16 sps:$4 sm:$0xff] (!%p5211_p13)  }
 0x3b8   : > { %v2268_v60 = vcombine.low %v2205_v58, %v2222_v59  ;;  %v2269_v17 = vcombine.low %v2239_v7, %v2256_v13  ;;  %4001 = vmatprep.subr.bf16.mxu0 (!%p5211_p13), %v5814_v36  ;;  %v5848_v55 = vld [vmem:[#allocation6 + $0x164] ss:$16 sps:$4 sm:$0xff] (!%p5211_p13)   ;;  %v5852_v58 = vld [vmem:[#allocation6 + $0x160] ss:$16 sps:$4 sm:$0xff] (!%p5211_p13)   ;;  %v5895_v36 = vld [vmem:[#allocation6 + $0x4c] ss:$16 sps:$4 sm:$0xff] (!%p5211_p13)  }
 0x3b9   : > { %v5850_v56 = vld [vmem:[#allocation6 + $0x364] ss:$16 sps:$4 sm:$0xff] (!%p5211_p13)   ;;  %v5870_v5 = vld [vmem:[#allocation6 + $0x1c0] ss:$16 sps:$4 sm:$0xff] (!%p5211_p13)  }
 0x3ba   : > { %v2290_v61 = vrot.slane %v2268_v60, %v7003_v50  ;;  %v2297_v18 = vrot.slane %v2269_v17, %v7003_v50  ;;  %3961 = vmatpush1.bf16.msra.mxu1 (!%p5211_p13), %v5816_v37  ;;  %v5854_v59 = vld [vmem:[#allocation6 + $0x184] ss:$16 sps:$4 sm:$0xff] (!%p5211_p13)   ;;  %v5858_v17 = vld [vmem:[#allocation6 + $0x180] ss:$16 sps:$4 sm:$0xff] (!%p5211_p13)  }
 0x3bb   : > { %4002 = vmatpush1.bf16.msra.mxu0 (!%p5211_p13), %v5817_v23  ;;  %3962 = vmatprep.subr.bf16.mxu1 (!%p5211_p13), %v5818_v31  ;;  %v5856_v13 = vld [vmem:[#allocation6 + $0x384] ss:$16 sps:$4 sm:$0xff] (!%p5211_p13)   ;;  %v5871_v6 = vld [vmem:[#allocation6 + $0x3c0] ss:$16 sps:$4 sm:$0xff] (!%p5211_p13)   ;;  %v5893_v23 = vld [vmem:[#allocation6 + $0x48] ss:$16 sps:$4 sm:$0xff] (!%p5211_p13)  }
 0x3bc   : > { %v2299_v62 = vcombine.low %v2290_v61, %v2297_v18  ;;  %4003 = vmatprep.subr.bf16.mxu0 (!%p5211_p13), %v5820_v38  ;;  %v5859_v18 = vld [vmem:[#allocation6 + $0x380] ss:$16 sps:$4 sm:$0xff] (!%p5211_p13)   ;;  %v5872_v9 = vld [vmem:[#allocation6 + $0x1e4] ss:$16 sps:$4 sm:$0xff] (!%p5211_p13)   ;;  %v5901_v38 = vld [vmem:[#allocation6 + $0x6c] ss:$16 sps:$4 sm:$0xff] (!%p5211_p13)  }
 0x3bd   : > { %v5874_v10 = vld [vmem:[#allocation6 + $0x3e4] ss:$16 sps:$4 sm:$0xff] (!%p5211_p13)   ;;  %v5876_v15 = vld [vmem:[#allocation6 + $0x1e0] ss:$16 sps:$4 sm:$0xff] (!%p5211_p13)  }
 0x3be   : > { %v2313_v0 = vrot.slane %v2299_v62, %v7003_v50  ;;  %3963 = vmatpush1.bf16.msra.mxu1 (!%p5211_p13), %v5822_v39  ;;  %v5860_v62 = vld [vmem:[#allocation6 + $0x1a4] ss:$16 sps:$4 sm:$0xff] (!%p5211_p13)   ;;  %v5877_v21 = vld [vmem:[#allocation6 + $0x3e0] ss:$16 sps:$4 sm:$0xff] (!%p5211_p13)  }
 0x3bf   : > { %2353 = sbr.rel (%p5211_p13) target bundleno = 1911 (0x777), region = 92  ;;  %4004 = vmatpush1.bf16.msra.mxu0 (!%p5211_p13), %v5823_v40  ;;  %3964 = vmatprep.subr.bf16.mxu1 (!%p5211_p13), %v5824_v12  ;;  %v5880_v24 = vld [vmem:[#allocation6 + $0x404] ss:$16 sps:$4 sm:$0xff] (!%p5211_p13)   ;;  %v5878_v20 = vld [vmem:[#allocation6 + $0x400] ss:$16 sps:$4 sm:$0xff] (!%p5211_p13)  }
 0x3c0   : > { %v2314_v2 = vcombine.low %v2306_v63, %v2313_v0  ;;  %4005 = vmatprep.subr.bf16.mxu0 (!%p5211_p13), %v5826_v41  ;;  %v5862_v63 = vld [vmem:[#allocation6 + $0x3a4] ss:$16 sps:$4 sm:$0xff] (!%p5211_p13)   ;;  %v5884_v32 = vld [vmem:[#allocation6 + $0x420] ss:$16 sps:$4 sm:$0xff] (!%p5211_p13)   ;;  %v5899_v40 = vld [vmem:[#allocation6 + $0x68] ss:$16 sps:$4 sm:$0xff] (!%p5211_p13)  }
 0x3c1   : > { %v5886_v26 = vld [vmem:[#allocation6 + $0x424] ss:$16 sps:$4 sm:$0xff] (!%p5211_p13)   ;;  %v5890_v37 = vld [vmem:[#allocation6 + $0x440] ss:$16 sps:$4 sm:$0xff] (!%p5211_p13)   ;;  %v5907_v41 = vld [vmem:[#allocation6 + $0x8c] ss:$16 sps:$4 sm:$0xff] (!%p5211_p13)  }
 0x3c2   : > { %v2316_v3 = vmax.bf16 %v2314_v2, %v2257_v1  ;;  %3965 = vmatpush1.bf16.msra.mxu1 (!%p5211_p13), %v5828_v42  ;;  %v5865_v2 = vld [vmem:[#allocation6 + $0x3a0] ss:$16 sps:$4 sm:$0xff] (!%p5211_p13)   ;;  %v5892_v35 = vld [vmem:[#allocation6 + $0x444] ss:$16 sps:$4 sm:$0xff] (!%p5211_p13)  }
 0x3c3   : > { %4006 = vmatpush1.bf16.msra.mxu0 (!%p5211_p13), %v5829_v43  ;;  %3966 = vmatprep.subr.bf16.mxu1 (!%p5211_p13), %v5830_v46  ;;  %v5898_v31 = vld [vmem:[#allocation6 + $0x464] ss:$16 sps:$4 sm:$0xff] (!%p5211_p13)   ;;  %v5896_v39 = vld [vmem:[#allocation6 + $0x460] ss:$16 sps:$4 sm:$0xff] (!%p5211_p13)   ;;  %v5905_v43 = vld [vmem:[#allocation6 + $0x88] ss:$16 sps:$4 sm:$0xff] (!%p5211_p13)  }
 0x3c4   : > { %v2348_v51 = vsel %vm2347_vm1, %v2316_v3, %v2257_v1  ;;  %4007 = vmatprep.subr.bf16.mxu0 (!%p5211_p13), %v5832_v48  ;;  %v5864_v1 = vld [vmem:[#allocation6 + $0x1a0] ss:$16 sps:$4 sm:$0xff] (!%p5211_p13)   ;;  %v5866_v3 = vld [vmem:[#allocation6 + $0x1c4] ss:$16 sps:$4 sm:$0xff] (!%p5211_p13)   ;;  %v5913_v48 = vld [vmem:[#allocation6 + $0xac] ss:$16 sps:$4 sm:$0xff] (!%p5211_p13)  }
 0x3c5   : > { %2349 = vst [vmem:[#allocation2] sm:$0xff] %v2348_v51  ;;  %v5868_v51 = vld [vmem:[#allocation6 + $0x3c4] ss:$16 sps:$4 sm:$0xff] (!%p5211_p13)   ;;  %v5902_v42 = vld [vmem:[#allocation6 + $0x480] ss:$16 sps:$4 sm:$0xff] (!%p5211_p13)  }
 0x3c6   : > { %3967 = vmatpush1.bf16.msra.mxu1 %v5834_v45  ;;  %v5904_v12 = vld [vmem:[#allocation6 + $0x484] ss:$16 sps:$4 sm:$0xff]   ;;  %v5908_v45 = vld [vmem:[#allocation6 + $0x4a0] ss:$16 sps:$4 sm:$0xff]  }
 0x3c7   : > { %4008 = vmatpush1.bf16.msra.mxu0 %v5835_v49  ;;  %3968 = vmatprep.subr.bf16.mxu1 %v5836_v8  ;;  %v5910_v46 = vld [vmem:[#allocation6 + $0x4a4] ss:$16 sps:$4 sm:$0xff]   ;;  %v5911_v49 = vld [vmem:[#allocation6 + $0xa8] ss:$16 sps:$4 sm:$0xff]  }
 0x3c8   : > { %4009 = vmatprep.subr.bf16.mxu0 %v5838_v22  ;;  %v5916_v8 = vld [vmem:[#allocation6 + $0x4c4] ss:$16 sps:$4 sm:$0xff]   ;;  %v5919_v22 = vld [vmem:[#allocation6 + $0xcc] ss:$16 sps:$4 sm:$0xff]  }
 0x3ca   : > { %3969 = vmatpush1.bf16.msra.mxu1 %v5840_v44  ;;  %v5914_v44 = vld [vmem:[#allocation6 + $0x4c0] ss:$16 sps:$4 sm:$0xff]  }
 0x3cb   : > { %4010 = vmatpush1.bf16.msra.mxu0 %v5841_v52  ;;  %3970 = vmatprep.subr.bf16.mxu1 %v5842_v53  ;;  %v5917_v52 = vld [vmem:[#allocation6 + $0xc8] ss:$16 sps:$4 sm:$0xff]   ;;  %v5922_v53 = vld [vmem:[#allocation6 + $0x4e4] ss:$16 sps:$4 sm:$0xff]  }
 0x3cc   : > { %4011 = vmatprep.subr.bf16.mxu0 %v5844_v47  ;;  %v2354_v57 = vld [vmem:[#allocation2] sm:$0xff] }
 0x3cd   : > { %v2620_v7 = vrot.slane %v2354_v57, %v7003_v50  ;;  %v2613_v4 = vcombine.high %v2354_v57, %v2354_v57  ;;  %v5925_v47 = vld [vmem:[#allocation6 + $0xec] ss:$16 sps:$4 sm:$0xff]   ;;  %v5926_v57 = vld [vmem:[#allocation6 + $0x500] ss:$16 sps:$4 sm:$0xff]  }
 0x3ce   : > { %3971 = vmatpush1.bf16.msra.mxu1 %v5846_v14  ;;  %v5920_v14 = vld [vmem:[#allocation6 + $0x4e0] ss:$16 sps:$4 sm:$0xff]  }
 0x3cf   : > { %4012 = vmatpush1.bf16.msra.mxu0 %v5847_v54  ;;  %3972 = vmatprep.subr.bf16.mxu1 %v5848_v55  ;;  %v2628_v60 = vcombine.high %v2620_v7, %v2620_v7  ;;  %v7153_v33 = vrot.slane %v2613_v4, %v7003_v50  ;;  %v7156_v16 = vrot.slane %v2620_v7, %v7003_v50  ;;  %v5923_v54 = vld [vmem:[#allocation6 + $0xe8] ss:$16 sps:$4 sm:$0xff]   ;;  %v5928_v55 = vld [vmem:[#allocation6 + $0x504] ss:$16 sps:$4 sm:$0xff]   ;;  %v5950_v4 = vld [vmem:[#allocation6 + $0x580] ss:$16 sps:$4 sm:$0xff]  }
 0x3d0   : > { %4013 = vmatprep.subr.bf16.mxu0 %v5850_v56  ;;  %v5931_v56 = vld [vmem:[#allocation6 + $0x10c] ss:$16 sps:$4 sm:$0xff]   ;;  %v5934_v7 = vld [vmem:[#allocation6 + $0x524] ss:$16 sps:$4 sm:$0xff]  }
 0x3d1   : > { %v2650_v61 = vrot.slane %v2628_v60, %v7003_v50  ;;  %v2629_v19 = vcombine.high %v7153_v33, %v7153_v33  ;;  %v7162_v25 = vcombine.high %v7156_v16, %v7156_v16  ;;  %v5940_v60 = vld [vmem:[#allocation6 + $0x544] ss:$16 sps:$4 sm:$0xff]  }
 0x3d2   : > { %3973 = vmatpush1.bf16.msra.mxu1 %v5852_v58  ;;  %v5929_v58 = vld [vmem:[#allocation6 + $0x108] ss:$16 sps:$4 sm:$0xff]  }
 0x3d3   : > { %4014 = vmatpush1.bf16.msra.mxu0 %v5853_v11  ;;  %3974 = vmatprep.subr.bf16.mxu1 %v5854_v59  ;;  %v7149_v0 = vcombine.high %v2650_v61, %v2650_v61  ;;  %v7165_v30 = vrot.slane %v2629_v19, %v7003_v50  ;;  %v5937_v11 = vld [vmem:[#allocation6 + $0x12c] ss:$16 sps:$4 sm:$0xff]   ;;  %v5932_v59 = vld [vmem:[#allocation6 + $0x520] ss:$16 sps:$4 sm:$0xff]   ;;  %v5965_v19 = vld [vmem:[#allocation6 + $0x1c8] ss:$16 sps:$4 sm:$0xff]  }
 0x3d4   : > { %4015 = vmatprep.subr.bf16.mxu0 %v5856_v13  ;;  %3982 = vmatprep.mubr.bf16.mxu1 %v2650_v61  ;;  %v5935_v13 = vld [vmem:[#allocation6 + $0x128] ss:$16 sps:$4 sm:$0xff]  }
 0x3d5   : > { %4023 = vmatprep.mubr.bf16.mxu0 %v7149_v0 }
 0x3d6   : > { %3975 = vmatpush1.bf16.msra.mxu1 %v5858_v17  ;;  %v5943_v17 = vld [vmem:[#allocation6 + $0x14c] ss:$16 sps:$4 sm:$0xff]  }
 0x3d7   : > { %4016 = vmatpush1.bf16.msra.mxu0 %v5859_v18  ;;  %3976 = vmatprep.subr.bf16.mxu1 %v5860_v62  ;;  %v5941_v18 = vld [vmem:[#allocation6 + $0x148] ss:$16 sps:$4 sm:$0xff]   ;;  %v5946_v62 = vld [vmem:[#allocation6 + $0x564] ss:$16 sps:$4 sm:$0xff]  }
 0x3d8   : > { %4017 = vmatprep.subr.bf16.mxu0 %v5862_v63  ;;  %v5949_v63 = vld [vmem:[#allocation6 + $0x16c] ss:$16 sps:$4 sm:$0xff]  }
 0x3da   : > { %3977 = vmatpush1.bf16.msra.mxu1 %v5864_v1  ;;  %v5944_v1 = vld [vmem:[#allocation6 + $0x560] ss:$16 sps:$4 sm:$0xff]  }
 0x3db   : > { %4018 = vmatpush1.bf16.msra.mxu0 %v5865_v2  ;;  %3978 = vmatprep.subr.bf16.mxu1 %v5866_v3  ;;  %v5947_v2 = vld [vmem:[#allocation6 + $0x168] ss:$16 sps:$4 sm:$0xff]   ;;  %v5952_v3 = vld [vmem:[#allocation6 + $0x584] ss:$16 sps:$4 sm:$0xff]  }
 0x3dc   : > { %4019 = vmatprep.subr.bf16.mxu0 %v5868_v51  ;;  %v5955_v51 = vld [vmem:[#allocation6 + $0x18c] ss:$16 sps:$4 sm:$0xff]  }
 0x3de   : > { %3979 = vmatpush1.bf16.msra.mxu1 %v5870_v5  ;;  %v5953_v5 = vld [vmem:[#allocation6 + $0x188] ss:$16 sps:$4 sm:$0xff]  }
 0x3df   : > { %4020 = vmatpush1.bf16.msra.mxu0 %v5871_v6  ;;  %3980 = vmatprep.subr.bf16.mxu1 %v5872_v9  ;;  %v5958_v6 = vld [vmem:[#allocation6 + $0x5a4] ss:$16 sps:$4 sm:$0xff]   ;;  %v5961_v9 = vld [vmem:[#allocation6 + $0x1ac] ss:$16 sps:$4 sm:$0xff]  }
 0x3e0   : > { %4021 = vmatprep.subr.bf16.mxu0 %v5874_v10  ;;  %v5956_v10 = vld [vmem:[#allocation6 + $0x5a0] ss:$16 sps:$4 sm:$0xff]  }
 0x3e2   : > { %3981 = vmatpush1.bf16.msra.mxu1 %v5876_v15  ;;  %v5959_v15 = vld [vmem:[#allocation6 + $0x1a8] ss:$16 sps:$4 sm:$0xff]  }
 0x3e3   : > { %4022 = vmatpush1.bf16.msra.mxu0 %v5877_v21  ;;  %4114 = vmatprep.subr.bf16.mxu1 %v5883_v27  ;;  %v5964_v21 = vld [vmem:[#allocation6 + $0x5c4] ss:$16 sps:$4 sm:$0xff]   ;;  %v5962_v27 = vld [vmem:[#allocation6 + $0x5c0] ss:$16 sps:$4 sm:$0xff]  }
 0x3e4   : > { %4032 = vmatprep.subr.bf16.mxu0 %v5880_v24  ;;  %v5967_v24 = vld [vmem:[#allocation6 + $0x1cc] ss:$16 sps:$4 sm:$0xff]  }
 0x3e5   : > { %3983 = vmatmul.mubr.bf16.vlgmr.msra.gmra.mrb[0].mxu1 %v7156_v16 }
 0x3e6   : > { %4024 = vmatmul.mubr.bf16.vlgmr.msra.gmra.mrb[0].mxu0 %v7162_v25  ;;  %4115 = vmatpush1.bf16.msra.mxu1 %v5881_v28  ;;  %v5973_v28 = vld [vmem:[#allocation6 + $0x1ec] ss:$16 sps:$4 sm:$0xff]  }
 0x3e7   : > { %4033 = vmatpush1.bf16.msra.mxu0 %v5878_v20  ;;  %4116 = vmatprep.subr.bf16.mxu1 %v5889_v29  ;;  %v5970_v20 = vld [vmem:[#allocation6 + $0x5e4] ss:$16 sps:$4 sm:$0xff]   ;;  %v5971_v29 = vld [vmem:[#allocation6 + $0x1e8] ss:$16 sps:$4 sm:$0xff]  }
 0x3e8   : > { %4034 = vmatprep.subr.bf16.mxu0 %v5886_v26  ;;  %4064 = vmatprep.mubr.bf16.mxu0 %v7165_v30  ;;  %v5968_v26 = vld [vmem:[#allocation6 + $0x5e0] ss:$16 sps:$4 sm:$0xff]  }
 0x3e9   : > { %4146 = vmatprep.mubr.bf16.mxu1 %v2650_v61  ;;  %v5938_v61 = vld [vmem:[#allocation6 + $0x540] ss:$16 sps:$4 sm:$0xff]  }
 0x3ea   : > { %4117 = vmatpush1.bf16.msra.mxu1 %v5887_v34  ;;  %v5980_v34 = vld [vmem:[#allocation6 + $0x20c] ss:$16 sps:$4 sm:$0xff]  }
 0x3eb   : > { %4035 = vmatpush1.bf16.msra.mxu0 %v5884_v32  ;;  %4118 = vmatprep.subr.bf16.mxu1 %v5895_v36  ;;  %v5977_v32 = vld [vmem:[#allocation6 + $0x604] ss:$16 sps:$4 sm:$0xff]   ;;  %v7172_v36 = vrot.slane %v7153_v33, %v7003_v50  ;;  %v5984_v33 = vld [vmem:[#allocation6 + $0x228] ss:$16 sps:$4 sm:$0xff]  }
 0x3ec   : > { %4036 = vmatprep.subr.bf16.mxu0 %v5892_v35  ;;  %v5975_v35 = vld [vmem:[#allocation6 + $0x600] ss:$16 sps:$4 sm:$0xff]  }
 0x3ee   : > { %4119 = vmatpush1.bf16.msra.mxu1 %v5893_v23  ;;  %v5983_v23 = vld [vmem:[#allocation6 + $0x624] ss:$16 sps:$4 sm:$0xff]  }
 0x3ef   : > { %4037 = vmatpush1.bf16.msra.mxu0 %v5890_v37  ;;  %4120 = vmatprep.subr.bf16.mxu1 %v5901_v38  ;;  %v5978_v37 = vld [vmem:[#allocation6 + $0x208] ss:$16 sps:$4 sm:$0xff]   ;;  %v7176_v38 = vcombine.high %v7165_v30, %v7165_v30 }
 0x3f0   : > { %4038 = vmatprep.subr.bf16.mxu0 %v5898_v31  ;;  %v5986_v31 = vld [vmem:[#allocation6 + $0x22c] ss:$16 sps:$4 sm:$0xff]  }
 0x3f2   : > { %4121 = vmatpush1.bf16.msra.mxu1 %v5899_v40  ;;  %v5989_v40 = vld [vmem:[#allocation6 + $0x644] ss:$16 sps:$4 sm:$0xff]  }
 0x3f3   : > { %4039 = vmatpush1.bf16.msra.mxu0 %v5896_v39  ;;  %4122 = vmatprep.subr.bf16.mxu1 %v5907_v41  ;;  %v5981_v39 = vld [vmem:[#allocation6 + $0x620] ss:$16 sps:$4 sm:$0xff]  }
 0x3f4   : > { %4040 = vmatprep.subr.bf16.mxu0 %v5904_v12  ;;  %v5992_v12 = vld [vmem:[#allocation6 + $0x24c] ss:$16 sps:$4 sm:$0xff]   ;;  %v5987_v41 = vld [vmem:[#allocation6 + $0x640] ss:$16 sps:$4 sm:$0xff]  }
 0x3f6   : > { %4123 = vmatpush1.bf16.msra.mxu1 %v5905_v43  ;;  %v5995_v43 = vld [vmem:[#allocation6 + $0x664] ss:$16 sps:$4 sm:$0xff]  }
 0x3f7   : > { %4041 = vmatpush1.bf16.msra.mxu0 %v5902_v42  ;;  %4124 = vmatprep.subr.bf16.mxu1 %v5913_v48  ;;  %v5990_v42 = vld [vmem:[#allocation6 + $0x248] ss:$16 sps:$4 sm:$0xff]  }
 0x3f8   : > { %4042 = vmatprep.subr.bf16.mxu0 %v5910_v46  ;;  %v5993_v46 = vld [vmem:[#allocation6 + $0x660] ss:$16 sps:$4 sm:$0xff]   ;;  %v5996_v48 = vld [vmem:[#allocation6 + $0x268] ss:$16 sps:$4 sm:$0xff]  }
 0x3fa   : > { %4125 = vmatpush1.bf16.msra.mxu1 %v5911_v49  ;;  %v6004_v49 = vld [vmem:[#allocation6 + $0x28c] ss:$16 sps:$4 sm:$0xff]  }
 0x3fb   : > { %4043 = vmatpush1.bf16.msra.mxu0 %v5908_v45  ;;  %4126 = vmatprep.subr.bf16.mxu1 %v5919_v22  ;;  %v6001_v45 = vld [vmem:[#allocation6 + $0x684] ss:$16 sps:$4 sm:$0xff]  }
 0x3fc   : > { %4044 = vmatprep.subr.bf16.mxu0 %v5916_v8  ;;  %v5999_v8 = vld [vmem:[#allocation6 + $0x680] ss:$16 sps:$4 sm:$0xff]   ;;  %v6007_v22 = vld [vmem:[#allocation6 + $0x6a4] ss:$16 sps:$4 sm:$0xff]  }
 0x3fe   : > { %4127 = vmatpush1.bf16.msra.mxu1 %v5917_v52  ;;  %v6005_v52 = vld [vmem:[#allocation6 + $0x6a0] ss:$16 sps:$4 sm:$0xff]  }
 0x3ff   : > { %4045 = vmatpush1.bf16.msra.mxu0 %v5914_v44  ;;  %4128 = vmatprep.subr.bf16.mxu1 %v5925_v47  ;;  %v6010_v44 = vld [vmem:[#allocation6 + $0x2ac] ss:$16 sps:$4 sm:$0xff]   ;;  %v6013_v47 = vld [vmem:[#allocation6 + $0x6c4] ss:$16 sps:$4 sm:$0xff]  }
 0x400   : > { %4046 = vmatprep.subr.bf16.mxu0 %v5922_v53  ;;  %v6008_v53 = vld [vmem:[#allocation6 + $0x2a8] ss:$16 sps:$4 sm:$0xff]  }
 0x402   : > { %4129 = vmatpush1.bf16.msra.mxu1 %v5923_v54  ;;  %v6011_v54 = vld [vmem:[#allocation6 + $0x6c0] ss:$16 sps:$4 sm:$0xff]  }
 0x403   : > { %4047 = vmatpush1.bf16.msra.mxu0 %v5920_v14  ;;  %4130 = vmatprep.subr.bf16.mxu1 %v5931_v56  ;;  %v6016_v14 = vld [vmem:[#allocation6 + $0x2cc] ss:$16 sps:$4 sm:$0xff]   ;;  %v6019_v56 = vld [vmem:[#allocation6 + $0x6e4] ss:$16 sps:$4 sm:$0xff]  }
 0x404   : > { %4048 = vmatprep.subr.bf16.mxu0 %v5928_v55  ;;  %v6014_v55 = vld [vmem:[#allocation6 + $0x2c8] ss:$16 sps:$4 sm:$0xff]  }
 0x406   : > { %4131 = vmatpush1.bf16.msra.mxu1 %v5929_v58  ;;  %v6017_v58 = vld [vmem:[#allocation6 + $0x6e0] ss:$16 sps:$4 sm:$0xff]  }
 0x407   : > { %4049 = vmatpush1.bf16.msra.mxu0 %v5926_v57  ;;  %4132 = vmatprep.subr.bf16.mxu1 %v5937_v11  ;;  %v6022_v57 = vld [vmem:[#allocation6 + $0x2ec] ss:$16 sps:$4 sm:$0xff]   ;;  %v6025_v11 = vld [vmem:[#allocation6 + $0x704] ss:$16 sps:$4 sm:$0xff]  }
 0x408   : > { %4050 = vmatprep.subr.bf16.mxu0 %v5934_v7  ;;  %v6020_v7 = vld [vmem:[#allocation6 + $0x2e8] ss:$16 sps:$4 sm:$0xff]  }
 0x40a   : > { %4133 = vmatpush1.bf16.msra.mxu1 %v5935_v13  ;;  %v6023_v13 = vld [vmem:[#allocation6 + $0x700] ss:$16 sps:$4 sm:$0xff]  }
 0x40b   : > { %4051 = vmatpush1.bf16.msra.mxu0 %v5932_v59  ;;  %4134 = vmatprep.subr.bf16.mxu1 %v5943_v17  ;;  %v6028_v59 = vld [vmem:[#allocation6 + $0x30c] ss:$16 sps:$4 sm:$0xff]   ;;  %v6031_v17 = vld [vmem:[#allocation6 + $0x724] ss:$16 sps:$4 sm:$0xff]  }
 0x40c   : > { %4052 = vmatprep.subr.bf16.mxu0 %v5940_v60  ;;  %v6026_v60 = vld [vmem:[#allocation6 + $0x308] ss:$16 sps:$4 sm:$0xff]  }
 0x40e   : > { %4135 = vmatpush1.bf16.msra.mxu1 %v5941_v18  ;;  %v6029_v18 = vld [vmem:[#allocation6 + $0x720] ss:$16 sps:$4 sm:$0xff]  }
 0x40f   : > { %4053 = vmatpush1.bf16.msra.mxu0 %v5938_v61  ;;  %4136 = vmatprep.subr.bf16.mxu1 %v5949_v63  ;;  %v6034_v61 = vld [vmem:[#allocation6 + $0x32c] ss:$16 sps:$4 sm:$0xff]   ;;  %v6037_v63 = vld [vmem:[#allocation6 + $0x744] ss:$16 sps:$4 sm:$0xff]  }
 0x410   : > { %4054 = vmatprep.subr.bf16.mxu0 %v5946_v62  ;;  %v6032_v62 = vld [vmem:[#allocation6 + $0x328] ss:$16 sps:$4 sm:$0xff]  }
 0x412   : > { %4137 = vmatpush1.bf16.msra.mxu1 %v5947_v2  ;;  %v6035_v2 = vld [vmem:[#allocation6 + $0x740] ss:$16 sps:$4 sm:$0xff]  }
 0x413   : > { %4055 = vmatpush1.bf16.msra.mxu0 %v5944_v1  ;;  %4138 = vmatprep.subr.bf16.mxu1 %v5955_v51  ;;  %v6040_v1 = vld [vmem:[#allocation6 + $0x34c] ss:$16 sps:$4 sm:$0xff]   ;;  %v6043_v51 = vld [vmem:[#allocation6 + $0x764] ss:$16 sps:$4 sm:$0xff]  }
 0x414   : > { %4056 = vmatprep.subr.bf16.mxu0 %v5952_v3  ;;  %v6038_v3 = vld [vmem:[#allocation6 + $0x348] ss:$16 sps:$4 sm:$0xff]  }
 0x416   : > { %4139 = vmatpush1.bf16.msra.mxu1 %v5953_v5  ;;  %v6041_v5 = vld [vmem:[#allocation6 + $0x760] ss:$16 sps:$4 sm:$0xff]  }
 0x417   : > { %4057 = vmatpush1.bf16.msra.mxu0 %v5950_v4  ;;  %4140 = vmatprep.subr.bf16.mxu1 %v5961_v9  ;;  %v6046_v4 = vld [vmem:[#allocation6 + $0x36c] ss:$16 sps:$4 sm:$0xff]   ;;  %v6049_v9 = vld [vmem:[#allocation6 + $0x784] ss:$16 sps:$4 sm:$0xff]  }
 0x418   : > { %4058 = vmatprep.subr.bf16.mxu0 %v5958_v6  ;;  %v6044_v6 = vld [vmem:[#allocation6 + $0x368] ss:$16 sps:$4 sm:$0xff]  }
 0x41a   : > { %4141 = vmatpush1.bf16.msra.mxu1 %v5959_v15  ;;  %v6047_v15 = vld [vmem:[#allocation6 + $0x780] ss:$16 sps:$4 sm:$0xff]  }
 0x41b   : > { %4059 = vmatpush1.bf16.msra.mxu0 %v5956_v10  ;;  %4142 = vmatprep.subr.bf16.mxu1 %v5967_v24  ;;  %v6052_v10 = vld [vmem:[#allocation6 + $0x38c] ss:$16 sps:$4 sm:$0xff]   ;;  %v6055_v24 = vld [vmem:[#allocation6 + $0x7a4] ss:$16 sps:$4 sm:$0xff]  }
 0x41c   : > { %4060 = vmatprep.subr.bf16.mxu0 %v5964_v21  ;;  %v6050_v21 = vld [vmem:[#allocation6 + $0x388] ss:$16 sps:$4 sm:$0xff]  }
 0x41e   : > { %4143 = vmatpush1.bf16.msra.mxu1 %v5965_v19  ;;  %v6053_v19 = vld [vmem:[#allocation6 + $0x7a0] ss:$16 sps:$4 sm:$0xff]  }
 0x41f   : > { %4061 = vmatpush1.bf16.msra.mxu0 %v5962_v27  ;;  %4144 = vmatprep.subr.bf16.mxu1 %v5973_v28  ;;  %v6058_v27 = vld [vmem:[#allocation6 + $0x3ac] ss:$16 sps:$4 sm:$0xff]   ;;  %v6061_v28 = vld [vmem:[#allocation6 + $0x7c4] ss:$16 sps:$4 sm:$0xff]  }
 0x420   : > { %4062 = vmatprep.subr.bf16.mxu0 %v5970_v20  ;;  %v6056_v20 = vld [vmem:[#allocation6 + $0x3a8] ss:$16 sps:$4 sm:$0xff]  }
 0x422   : > { %4145 = vmatpush1.bf16.msra.mxu1 %v5971_v29  ;;  %v6059_v29 = vld [vmem:[#allocation6 + $0x7c0] ss:$16 sps:$4 sm:$0xff]  }
 0x423   : > { %4063 = vmatpush1.bf16.msra.mxu0 %v5968_v26  ;;  %4155 = vmatprep.subr.bf16.mxu1 %v5980_v34  ;;  %v6064_v26 = vld [vmem:[#allocation6 + $0x3cc] ss:$16 sps:$4 sm:$0xff]   ;;  %v6067_v34 = vld [vmem:[#allocation6 + $0x7e4] ss:$16 sps:$4 sm:$0xff]  }
 0x424   : > { %4073 = vmatprep.subr.bf16.mxu0 %v5977_v32  ;;  %v6062_v32 = vld [vmem:[#allocation6 + $0x3c8] ss:$16 sps:$4 sm:$0xff]  }
 0x425   : > { %4147 = vmatmul.mubr.bf16.vlgmr.msra.gmra.mrb[4].mxu1 %v7156_v16  ;;  %v5998_v16 = vld [vmem:[#allocation6 + $0x26c] ss:$16 sps:$4 sm:$0xff]  }
 0x426   : > { %4065 = vmatmul.mubr.bf16.vlgmr.msra.gmra.mrb[0].mxu0 %v7172_v36  ;;  %4156 = vmatpush1.bf16.msra.mxu1 %v5978_v37  ;;  %v6065_v37 = vld [vmem:[#allocation6 + $0x7e0] ss:$16 sps:$4 sm:$0xff]  }
 0x427   : > { %4074 = vmatpush1.bf16.msra.mxu0 %v5975_v35  ;;  %4157 = vmatprep.subr.bf16.mxu1 %v5986_v31  ;;  %v6070_v35 = vld [vmem:[#allocation6 + $0x3ec] ss:$16 sps:$4 sm:$0xff]  }
 0x428   : > { %4075 = vmatprep.subr.bf16.mxu0 %v5983_v23  ;;  %4105 = vmatprep.mubr.bf16.mxu0 %v7176_v38  ;;  %v6068_v23 = vld [vmem:[#allocation6 + $0x3e8] ss:$16 sps:$4 sm:$0xff]   ;;  %v6073_v31 = vld [vmem:[#allocation6 + $0x40c] ss:$16 sps:$4 sm:$0xff]  }
 0x429   : > { %4187 = vmatprep.mubr.bf16.mxu1 %v7149_v0  ;;  %v6002_v0 = vld [vmem:[#allocation6 + $0x288] ss:$16 sps:$4 sm:$0xff]  }
 0x42a   : > { %4158 = vmatpush1.bf16.msra.mxu1 %v5984_v33  ;;  %v7184_v33 = vcombine.high %v7172_v36, %v7172_v36 }
 0x42b   : > { %4076 = vmatpush1.bf16.msra.mxu0 %v5981_v39  ;;  %4159 = vmatprep.subr.bf16.mxu1 %v5992_v12  ;;  %v6071_v39 = vld [vmem:[#allocation6 + $0x408] ss:$16 sps:$4 sm:$0xff]  }
 0x42c   : > { %4077 = vmatprep.subr.bf16.mxu0 %v5989_v40  ;;  %v6076_v40 = vld [vmem:[#allocation6 + $0x42c] ss:$16 sps:$4 sm:$0xff]   ;;  %v6167_v12 = vld [vmem:[#allocation8] ss:$8 sps:$4 sm:$0xff]  }
 0x42e   : > { %4160 = vmatpush1.bf16.msra.mxu1 %v5990_v42  ;;  %v6074_v42 = vld [vmem:[#allocation6 + $0x428] ss:$16 sps:$4 sm:$0xff]  }
 0x42f   : > { %4078 = vmatpush1.bf16.msra.mxu0 %v5987_v41  ;;  %4161 = vmatprep.subr.bf16.mxu1 %v5998_v16  ;;  %v6169_v41 = vld [vmem:[#allocation8 + $0x4] ss:$8 sps:$4 sm:$0xff]  }
 0x430   : > { %4079 = vmatprep.subr.bf16.mxu0 %v5995_v43  ;;  %v6172_v43 = vld [vmem:[#allocation8 + $0x14] ss:$8 sps:$4 sm:$0xff]  }
 0x431   : > { %v6079_v16 = vld [vmem:[#allocation6 + $0x44c] ss:$16 sps:$4 sm:$0xff]  }
 0x432   : > { %4162 = vmatpush1.bf16.msra.mxu1 %v5996_v48  ;;  %v6175_v48 = vld [vmem:[#allocation8 + $0x24] ss:$8 sps:$4 sm:$0xff]  }
 0x433   : > { %4080 = vmatpush1.bf16.msra.mxu0 %v5993_v46  ;;  %4163 = vmatprep.subr.bf16.mxu1 %v6004_v49  ;;  %v6170_v46 = vld [vmem:[#allocation8 + $0x10] ss:$8 sps:$4 sm:$0xff]   ;;  %v6082_v49 = vld [vmem:[#allocation6 + $0x46c] ss:$16 sps:$4 sm:$0xff]  }
 0x434   : > { %4081 = vmatprep.subr.bf16.mxu0 %v6001_v45  ;;  %v6077_v45 = vld [vmem:[#allocation6 + $0x448] ss:$16 sps:$4 sm:$0xff]  }
 0x436   : > { %4164 = vmatpush1.bf16.msra.mxu1 %v6002_v0  ;;  %v6080_v0 = vld [vmem:[#allocation6 + $0x468] ss:$16 sps:$4 sm:$0xff]  }
 0x437   : > { %4082 = vmatpush1.bf16.msra.mxu0 %v5999_v8  ;;  %4165 = vmatprep.subr.bf16.mxu1 %v6010_v44  ;;  %v6178_v8 = vld [vmem:[#allocation8 + $0x34] ss:$8 sps:$4 sm:$0xff]   ;;  %v6181_v44 = vld [vmem:[#allocation8 + $0x44] ss:$8 sps:$4 sm:$0xff]  }
 0x438   : > { %4083 = vmatprep.subr.bf16.mxu0 %v6007_v22  ;;  %v6085_v22 = vld [vmem:[#allocation6 + $0x48c] ss:$16 sps:$4 sm:$0xff]  }
 0x43a   : > { %4166 = vmatpush1.bf16.msra.mxu1 %v6008_v53  ;;  %v6088_v53 = vld [vmem:[#allocation6 + $0x4ac] ss:$16 sps:$4 sm:$0xff]  }
 0x43b   : > { %4084 = vmatpush1.bf16.msra.mxu0 %v6005_v52  ;;  %4167 = vmatprep.subr.bf16.mxu1 %v6016_v14  ;;  %v6083_v52 = vld [vmem:[#allocation6 + $0x488] ss:$16 sps:$4 sm:$0xff]   ;;  %v6184_v14 = vld [vmem:[#allocation8 + $0x54] ss:$8 sps:$4 sm:$0xff]  }
 0x43c   : > { %4085 = vmatprep.subr.bf16.mxu0 %v6013_v47  ;;  %v6179_v47 = vld [vmem:[#allocation8 + $0x40] ss:$8 sps:$4 sm:$0xff]  }
 0x43e   : > { %4168 = vmatpush1.bf16.msra.mxu1 %v6014_v55  ;;  %v6091_v55 = vld [vmem:[#allocation6 + $0x4cc] ss:$16 sps:$4 sm:$0xff]  }
 0x43f   : > { %4086 = vmatpush1.bf16.msra.mxu0 %v6011_v54  ;;  %4169 = vmatprep.subr.bf16.mxu1 %v6022_v57  ;;  %v6086_v54 = vld [vmem:[#allocation6 + $0x4a8] ss:$16 sps:$4 sm:$0xff]   ;;  %v6187_v57 = vld [vmem:[#allocation8 + $0x64] ss:$8 sps:$4 sm:$0xff]  }
 0x440   : > { %4087 = vmatprep.subr.bf16.mxu0 %v6019_v56  ;;  %v6182_v56 = vld [vmem:[#allocation8 + $0x50] ss:$8 sps:$4 sm:$0xff]  }
 0x442   : > { %4170 = vmatpush1.bf16.msra.mxu1 %v6020_v7  ;;  %v6094_v7 = vld [vmem:[#allocation6 + $0x4ec] ss:$16 sps:$4 sm:$0xff]  }
 0x443   : > { %4088 = vmatpush1.bf16.msra.mxu0 %v6017_v58  ;;  %4171 = vmatprep.subr.bf16.mxu1 %v6028_v59  ;;  %v6089_v58 = vld [vmem:[#allocation6 + $0x4c8] ss:$16 sps:$4 sm:$0xff]   ;;  %v6190_v59 = vld [vmem:[#allocation8 + $0x74] ss:$8 sps:$4 sm:$0xff]  }
 0x444   : > { %4089 = vmatprep.subr.bf16.mxu0 %v6025_v11  ;;  %v6185_v11 = vld [vmem:[#allocation8 + $0x60] ss:$8 sps:$4 sm:$0xff]  }
 0x446   : > { %4172 = vmatpush1.bf16.msra.mxu1 %v6026_v60  ;;  %v6097_v60 = vld [vmem:[#allocation6 + $0x50c] ss:$16 sps:$4 sm:$0xff]  }
 0x447   : > { %4090 = vmatpush1.bf16.msra.mxu0 %v6023_v13  ;;  %4173 = vmatprep.subr.bf16.mxu1 %v6034_v61  ;;  %v6092_v13 = vld [vmem:[#allocation6 + $0x4e8] ss:$16 sps:$4 sm:$0xff]   ;;  %v6193_v61 = vld [vmem:[#allocation8 + $0x84] ss:$8 sps:$4 sm:$0xff]  }
 0x448   : > { %4091 = vmatprep.subr.bf16.mxu0 %v6031_v17  ;;  %v6188_v17 = vld [vmem:[#allocation8 + $0x70] ss:$8 sps:$4 sm:$0xff]  }
 0x44a   : > { %4174 = vmatpush1.bf16.msra.mxu1 %v6032_v62  ;;  %v6100_v62 = vld [vmem:[#allocation6 + $0x52c] ss:$16 sps:$4 sm:$0xff]  }
 0x44b   : > { %4092 = vmatpush1.bf16.msra.mxu0 %v6029_v18  ;;  %4175 = vmatprep.subr.bf16.mxu1 %v6040_v1  ;;  %v6095_v18 = vld [vmem:[#allocation6 + $0x508] ss:$16 sps:$4 sm:$0xff]   ;;  %v6196_v1 = vld [vmem:[#allocation8 + $0x94] ss:$8 sps:$4 sm:$0xff]  }
 0x44c   : > { %4093 = vmatprep.subr.bf16.mxu0 %v6037_v63  ;;  %v6191_v63 = vld [vmem:[#allocation8 + $0x80] ss:$8 sps:$4 sm:$0xff]  }
 0x44e   : > { %4176 = vmatpush1.bf16.msra.mxu1 %v6038_v3  ;;  %v6103_v3 = vld [vmem:[#allocation6 + $0x54c] ss:$16 sps:$4 sm:$0xff]  }
 0x44f   : > { %4094 = vmatpush1.bf16.msra.mxu0 %v6035_v2  ;;  %4177 = vmatprep.subr.bf16.mxu1 %v6046_v4  ;;  %v6098_v2 = vld [vmem:[#allocation6 + $0x528] ss:$16 sps:$4 sm:$0xff]   ;;  %v6199_v4 = vld [vmem:[#allocation8 + $0xa4] ss:$8 sps:$4 sm:$0xff]  }
 0x450   : > { %4095 = vmatprep.subr.bf16.mxu0 %v6043_v51  ;;  %v6194_v51 = vld [vmem:[#allocation8 + $0x90] ss:$8 sps:$4 sm:$0xff]  }
 0x452   : > { %4178 = vmatpush1.bf16.msra.mxu1 %v6044_v6  ;;  %v6106_v6 = vld [vmem:[#allocation6 + $0x56c] ss:$16 sps:$4 sm:$0xff]  }
 0x453   : > { %4096 = vmatpush1.bf16.msra.mxu0 %v6041_v5  ;;  %4179 = vmatprep.subr.bf16.mxu1 %v6052_v10  ;;  %v6101_v5 = vld [vmem:[#allocation6 + $0x548] ss:$16 sps:$4 sm:$0xff]   ;;  %v6202_v10 = vld [vmem:[#allocation8 + $0xb4] ss:$8 sps:$4 sm:$0xff]  }
 0x454   : > { %4097 = vmatprep.subr.bf16.mxu0 %v6049_v9  ;;  %v6197_v9 = vld [vmem:[#allocation8 + $0xa0] ss:$8 sps:$4 sm:$0xff]  }
 0x456   : > { %4180 = vmatpush1.bf16.msra.mxu1 %v6050_v21  ;;  %v6109_v21 = vld [vmem:[#allocation6 + $0x58c] ss:$16 sps:$4 sm:$0xff]  }
 0x457   : > { %4098 = vmatpush1.bf16.msra.mxu0 %v6047_v15  ;;  %4181 = vmatprep.subr.bf16.mxu1 %v6058_v27  ;;  %v6104_v15 = vld [vmem:[#allocation6 + $0x568] ss:$16 sps:$4 sm:$0xff]   ;;  %v6205_v27 = vld [vmem:[#allocation8 + $0xc4] ss:$8 sps:$4 sm:$0xff]  }
 0x458   : > { %4099 = vmatprep.subr.bf16.mxu0 %v6055_v24  ;;  %v6200_v24 = vld [vmem:[#allocation8 + $0xb0] ss:$8 sps:$4 sm:$0xff]  }
 0x45a   : > { %4182 = vmatpush1.bf16.msra.mxu1 %v6056_v20  ;;  %v6112_v20 = vld [vmem:[#allocation6 + $0x5ac] ss:$16 sps:$4 sm:$0xff]  }
 0x45b   : > { %4100 = vmatpush1.bf16.msra.mxu0 %v6053_v19  ;;  %4183 = vmatprep.subr.bf16.mxu1 %v6064_v26  ;;  %v6107_v19 = vld [vmem:[#allocation6 + $0x588] ss:$16 sps:$4 sm:$0xff]   ;;  %v6208_v26 = vld [vmem:[#allocation8 + $0xd4] ss:$8 sps:$4 sm:$0xff]  }
 0x45c   : > { %4101 = vmatprep.subr.bf16.mxu0 %v6061_v28  ;;  %v6203_v28 = vld [vmem:[#allocation8 + $0xc0] ss:$8 sps:$4 sm:$0xff]  }
 0x45e   : > { %4184 = vmatpush1.bf16.msra.mxu1 %v6062_v32  ;;  %v6115_v32 = vld [vmem:[#allocation6 + $0x5cc] ss:$16 sps:$4 sm:$0xff]  }
 0x45f   : > { %4102 = vmatpush1.bf16.msra.mxu0 %v6059_v29  ;;  %4185 = vmatprep.subr.bf16.mxu1 %v6070_v35  ;;  %v6110_v29 = vld [vmem:[#allocation6 + $0x5a8] ss:$16 sps:$4 sm:$0xff]  }
 0x460   : > { %4103 = vmatprep.subr.bf16.mxu0 %v6067_v34  ;;  %v6206_v34 = vld [vmem:[#allocation8 + $0xd0] ss:$8 sps:$4 sm:$0xff]  }
 0x461   : > { %v6113_v35 = vld [vmem:[#allocation6 + $0x5c8] ss:$16 sps:$4 sm:$0xff]  }
 0x462   : > { %4186 = vmatpush1.bf16.msra.mxu1 %v6068_v23  ;;  %v6116_v23 = vld [vmem:[#allocation6 + $0x5e8] ss:$16 sps:$4 sm:$0xff]  }
 0x463   : > { %4104 = vmatpush1.bf16.msra.mxu0 %v6065_v37  ;;  %4196 = vmatprep.subr.bf16.mxu1 %v6073_v31  ;;  %v6118_v37 = vld [vmem:[#allocation6 + $0x5ec] ss:$16 sps:$4 sm:$0xff]  }
 0x464   : > { %4704 = vmatprep.subr.bf16.mxu0 %v6169_v41  ;;  %v6121_v31 = vld [vmem:[#allocation6 + $0x60c] ss:$16 sps:$4 sm:$0xff]  }
 0x465   : > { %4188 = vmatmul.mubr.bf16.vlgmr.msra.gmra.mrb[4].mxu1 %v7162_v25  ;;  %v6173_v25 = vld [vmem:[#allocation8 + $0x20] ss:$8 sps:$4 sm:$0xff]   ;;  %v6127_v41 = vld [vmem:[#allocation6 + $0x64c] ss:$16 sps:$4 sm:$0xff]  }
 0x466   : > { %4106 = vmatmul.mubr.bf16.vlgmr.msra.gmra.mrb[0].mxu0 %v7184_v33  ;;  %4197 = vmatpush1.bf16.msra.mxu1 %v6071_v39  ;;  %v6119_v39 = vld [vmem:[#allocation6 + $0x608] ss:$16 sps:$4 sm:$0xff]  }
 0x467   : > { %4228 = vmatprep.mubr.bf16.mxu1 %v7165_v30  ;;  %4198 = vmatprep.subr.bf16.mxu1 %v6076_v40  ;;  %v6176_v30 = vld [vmem:[#allocation8 + $0x30] ss:$8 sps:$4 sm:$0xff]   ;;  %v6124_v40 = vld [vmem:[#allocation6 + $0x62c] ss:$16 sps:$4 sm:$0xff]  }
 0x468   : > { %4705 = vmatpush1.bf16.msra.mxu0 %v6167_v12  ;;  %v6122_v12 = vld [vmem:[#allocation6 + $0x628] ss:$16 sps:$4 sm:$0xff]  }
 0x469   : > { %4706 = vmatprep.subr.bf16.mxu0 %v6172_v43  ;;  %v6130_v43 = vld [vmem:[#allocation6 + $0x66c] ss:$16 sps:$4 sm:$0xff]  }
 0x46a   : > { %4199 = vmatpush1.bf16.msra.mxu1 %v6074_v42  ;;  %v6125_v42 = vld [vmem:[#allocation6 + $0x648] ss:$16 sps:$4 sm:$0xff]  }
 0x46b   : > { %4200 = vmatprep.subr.bf16.mxu1 %v6079_v16  ;;  %v6128_v16 = vld [vmem:[#allocation6 + $0x668] ss:$16 sps:$4 sm:$0xff]  }
 0x46c   : > { %4707 = vmatpush1.bf16.msra.mxu0 %v6170_v46  ;;  %v6133_v46 = vld [vmem:[#allocation6 + $0x68c] ss:$16 sps:$4 sm:$0xff]  }
 0x46d   : > { %4708 = vmatprep.subr.bf16.mxu0 %v6175_v48  ;;  %v6131_v48 = vld [vmem:[#allocation6 + $0x688] ss:$16 sps:$4 sm:$0xff]  }
 0x46e   : > { %4201 = vmatpush1.bf16.msra.mxu1 %v6077_v45  ;;  %v6136_v45 = vld [vmem:[#allocation6 + $0x6ac] ss:$16 sps:$4 sm:$0xff]  }
 0x46f   : > { %4202 = vmatprep.subr.bf16.mxu1 %v6082_v49  ;;  %v6139_v49 = vld [vmem:[#allocation6 + $0x6cc] ss:$16 sps:$4 sm:$0xff]  }
 0x470   : > { %4709 = vmatpush1.bf16.msra.mxu0 %v6173_v25 }
 0x471   : > { %4710 = vmatprep.subr.bf16.mxu0 %v6178_v8  ;;  %v6211_v8 = vld [vmem:[#allocation8 + $0xe4] ss:$8 sps:$4 sm:$0xff]  }
 0x472   : > { %4203 = vmatpush1.bf16.msra.mxu1 %v6080_v0 }
 0x473   : > { %4204 = vmatprep.subr.bf16.mxu1 %v6085_v22  ;;  %v6137_v22 = vld [vmem:[#allocation6 + $0x6c8] ss:$16 sps:$4 sm:$0xff]  }
 0x474   : > { %4711 = vmatpush1.bf16.msra.mxu0 %v6176_v30  ;;  %v6209_v30 = vld [vmem:[#allocation8 + $0xe0] ss:$8 sps:$4 sm:$0xff]  }
 0x475   : > { %4712 = vmatprep.subr.bf16.mxu0 %v6181_v44 }
 0x476   : > { %4205 = vmatpush1.bf16.msra.mxu1 %v6083_v52  ;;  %v6142_v52 = vld [vmem:[#allocation6 + $0x6ec] ss:$16 sps:$4 sm:$0xff]  }
 0x477   : > { %4206 = vmatprep.subr.bf16.mxu1 %v6088_v53  ;;  %v6214_v53 = vld [vmem:[#allocation8 + $0xf4] ss:$8 sps:$4 sm:$0xff]  }
 0x478   : > { %4713 = vmatpush1.bf16.msra.mxu0 %v6179_v47  ;;  %v6140_v47 = vld [vmem:[#allocation6 + $0x6e8] ss:$16 sps:$4 sm:$0xff]  }
 0x479   : > { %4714 = vmatprep.subr.bf16.mxu0 %v6184_v14  ;;  %v6212_v14 = vld [vmem:[#allocation8 + $0xf0] ss:$8 sps:$4 sm:$0xff]  }
 0x47a   : > { %4207 = vmatpush1.bf16.msra.mxu1 %v6086_v54  ;;  %v6145_v54 = vld [vmem:[#allocation6 + $0x70c] ss:$16 sps:$4 sm:$0xff]  }
 0x47b   : > { %4208 = vmatprep.subr.bf16.mxu1 %v6091_v55  ;;  %v6143_v55 = vld [vmem:[#allocation6 + $0x708] ss:$16 sps:$4 sm:$0xff]  }
 0x47c   : > { %4715 = vmatpush1.bf16.msra.mxu0 %v6182_v56  ;;  %v6148_v56 = vld [vmem:[#allocation6 + $0x72c] ss:$16 sps:$4 sm:$0xff]  }
 0x47d   : > { %4716 = vmatprep.subr.bf16.mxu0 %v6187_v57  ;;  %v6217_v57 = vld [vmem:[#allocation8 + $0x104] ss:$8 sps:$4 sm:$0xff]  }
 0x47e   : > { %4209 = vmatpush1.bf16.msra.mxu1 %v6089_v58  ;;  %v6146_v58 = vld [vmem:[#allocation6 + $0x728] ss:$16 sps:$4 sm:$0xff]  }
 0x47f   : > { %4210 = vmatprep.subr.bf16.mxu1 %v6094_v7  ;;  %v6151_v7 = vld [vmem:[#allocation6 + $0x74c] ss:$16 sps:$4 sm:$0xff]  }
 0x480   : > { %4717 = vmatpush1.bf16.msra.mxu0 %v6185_v11  ;;  %v6149_v11 = vld [vmem:[#allocation6 + $0x748] ss:$16 sps:$4 sm:$0xff]  }
 0x481   : > { %4718 = vmatprep.subr.bf16.mxu0 %v6190_v59  ;;  %v6154_v59 = vld [vmem:[#allocation6 + $0x76c] ss:$16 sps:$4 sm:$0xff]  }
 0x482   : > { %4211 = vmatpush1.bf16.msra.mxu1 %v6092_v13  ;;  %v6152_v13 = vld [vmem:[#allocation6 + $0x768] ss:$16 sps:$4 sm:$0xff]  }
 0x483   : > { %4212 = vmatprep.subr.bf16.mxu1 %v6097_v60  ;;  %v6157_v60 = vld [vmem:[#allocation6 + $0x78c] ss:$16 sps:$4 sm:$0xff]  }
 0x484   : > { %4719 = vmatpush1.bf16.msra.mxu0 %v6188_v17  ;;  %v6155_v17 = vld [vmem:[#allocation6 + $0x788] ss:$16 sps:$4 sm:$0xff]  }
 0x485   : > { %4720 = vmatprep.subr.bf16.mxu0 %v6193_v61  ;;  %v6160_v61 = vld [vmem:[#allocation6 + $0x7ac] ss:$16 sps:$4 sm:$0xff]  }
 0x486   : > { %4213 = vmatpush1.bf16.msra.mxu1 %v6095_v18  ;;  %v6158_v18 = vld [vmem:[#allocation6 + $0x7a8] ss:$16 sps:$4 sm:$0xff]  }
 0x487   : > { %4214 = vmatprep.subr.bf16.mxu1 %v6100_v62  ;;  %v6163_v62 = vld [vmem:[#allocation6 + $0x7cc] ss:$16 sps:$4 sm:$0xff]  }
 0x488   : > { %4721 = vmatpush1.bf16.msra.mxu0 %v6191_v63  ;;  %v6161_v63 = vld [vmem:[#allocation6 + $0x7c8] ss:$16 sps:$4 sm:$0xff]  }
 0x489   : > { %4722 = vmatprep.subr.bf16.mxu0 %v6196_v1  ;;  %v6166_v1 = vld [vmem:[#allocation6 + $0x7ec] ss:$16 sps:$4 sm:$0xff]  }
 0x48a   : > { %4215 = vmatpush1.bf16.msra.mxu1 %v6098_v2  ;;  %v6164_v2 = vld [vmem:[#allocation6 + $0x7e8] ss:$16 sps:$4 sm:$0xff]  }
 0x48b   : > { %4216 = vmatprep.subr.bf16.mxu1 %v6103_v3  ;;  %v5468_v3 = vld.sshfl [vmem:[%s7332_s8] sm:$0x33 pattern:$0x75316420] }
 0x48c   : > { %4723 = vmatpush1.bf16.msra.mxu0 %v6194_v51  ;;  %v4290_v51 = vcombine.high %v5468_v3, %v5468_v3 }
 0x48d   : > { %4724 = vmatprep.subr.bf16.mxu0 %v6199_v4 }
 0x48e   : > { %4217 = vmatpush1.bf16.msra.mxu1 %v6101_v5 }
 0x48f   : > { %4218 = vmatprep.subr.bf16.mxu1 %v6106_v6  ;;  %v7196_v6 = vrot.slane %v5468_v3, %v7003_v50 }
 0x490   : > { %4725 = vmatpush1.bf16.msra.mxu0 %v6197_v9 }
 0x491   : > { %4726 = vmatprep.subr.bf16.mxu0 %v6202_v10 }
 0x492   : > { %4219 = vmatpush1.bf16.msra.mxu1 %v6104_v15  ;;  %v7199_v15 = vrot.slane %v4290_v51, %v7003_v50 }
 0x493   : > { %4220 = vmatprep.subr.bf16.mxu1 %v6109_v21 }
 0x494   : > { %4727 = vmatpush1.bf16.msra.mxu0 %v6200_v24 }
 0x495   : > { %4728 = vmatprep.subr.bf16.mxu0 %v6205_v27 }
 0x496   : > { %4221 = vmatpush1.bf16.msra.mxu1 %v6107_v19 }
 0x497   : > { %4222 = vmatprep.subr.bf16.mxu1 %v6112_v20 }
 0x498   : > { %4729 = vmatpush1.bf16.msra.mxu0 %v6203_v28  ;;  %v6478_v28 = vmov 0  }
 0x499   : > { %4730 = vmatprep.subr.bf16.mxu0 %v6208_v26 }
 0x49a   : > { %4223 = vmatpush1.bf16.msra.mxu1 %v6110_v29  ;;  %v6215_v29 = vld [vmem:[#allocation8 + $0x100] ss:$8 sps:$4 sm:$0xff]  }
 0x49b   : > { %4224 = vmatprep.subr.bf16.mxu1 %v6115_v32  ;;  %v6220_v32 = vld [vmem:[#allocation8 + $0x114] ss:$8 sps:$4 sm:$0xff]  }
 0x49c   : > { %4731 = vmatpush1.bf16.msra.mxu0 %v6206_v34 }
 0x49d   : > { %4732 = vmatprep.subr.bf16.mxu0 %v6211_v8  ;;  %v6273_v8 = vld [vmem:[%s7398_s13 + $0x68] sm:$0xff]  }
 0x49e   : > { %4225 = vmatpush1.bf16.msra.mxu1 %v6113_v35  ;;  %v6263_v35 = vld [vmem:[%s7398_s13 + $0x40] sm:$0xff]  }
 0x49f   : > { %4226 = vmatprep.subr.bf16.mxu1 %v6118_v37  ;;  %v6264_v37 = vld [vmem:[%s7398_s13] sm:$0xff]  }
 0x4a0   : > { %4733 = vmatpush1.bf16.msra.mxu0 %v6209_v30  ;;  %v6235_v30 = vld [vmem:[#allocation8 + $0x164] ss:$8 sps:$4 sm:$0xff]  }
 0x4a1   : > { %4734 = vmatprep.subr.bf16.mxu0 %v6214_v53  ;;  %v6236_v53 = vld [vmem:[#allocation8 + $0x170] ss:$8 sps:$4 sm:$0xff]  }
 0x4a2   : > { %4227 = vmatpush1.bf16.msra.mxu1 %v6116_v23  ;;  %v6265_v23 = vld [vmem:[%s7398_s13 + $0x48] sm:$0xff]  }
 0x4a3   : > { %4237 = vmatprep.subr.bf16.mxu1 %v6121_v31  ;;  %v6218_v31 = vld [vmem:[#allocation8 + $0x110] ss:$8 sps:$4 sm:$0xff]  }
 0x4a4   : > { %4735 = vmatpush1.bf16.msra.mxu0 %v6212_v14  ;;  %v6239_v14 = vld [vmem:[#allocation8 + $0x180] ss:$8 sps:$4 sm:$0xff]  }
 0x4a5   : > { %4229 = vmatmul.mubr.bf16.vlgmr.msra.gmra.mrb[4].mxu1 %v7172_v36  ;;  %v6134_v36 = vld [vmem:[#allocation6 + $0x6a8] ss:$16 sps:$4 sm:$0xff]   ;;  %4745 = vmatprep.subr.bf16.mxu0 %v6217_v57 }
 0x4a6   : > { %4238 = vmatpush1.bf16.msra.mxu1 %v6119_v39  ;;  %4269 = vmatprep.mubr.bf16.mxu1 %v7176_v38  ;;  %v6266_v39 = vld [vmem:[%s7398_s13 + $0x8] sm:$0xff]  }
 0x4a7   : > { %4239 = vmatprep.subr.bf16.mxu1 %v6124_v40  ;;  %v6223_v40 = vld [vmem:[#allocation8 + $0x124] ss:$8 sps:$4 sm:$0xff]   ;;  %v6245_v57 = vld [vmem:[#allocation8 + $0x1a0] ss:$8 sps:$4 sm:$0xff]  }
 0x4aa   : > { %4240 = vmatpush1.bf16.msra.mxu1 %v6122_v12  ;;  %v6267_v12 = vld [vmem:[%s7398_s13 + $0x50] sm:$0xff]  }
 0x4ab   : > { %4241 = vmatprep.subr.bf16.mxu1 %v6127_v41  ;;  %v6221_v41 = vld [vmem:[#allocation8 + $0x120] ss:$8 sps:$4 sm:$0xff]  }
 0x4ae   : > { %4242 = vmatpush1.bf16.msra.mxu1 %v6125_v42  ;;  %v6268_v42 = vld [vmem:[%s7398_s13 + $0x10] sm:$0xff]  }
 0x4af   : > { %4243 = vmatprep.subr.bf16.mxu1 %v6130_v43  ;;  %v6226_v43 = vld [vmem:[#allocation8 + $0x134] ss:$8 sps:$4 sm:$0xff]  }
 0x4b2   : > { %4244 = vmatpush1.bf16.msra.mxu1 %v6128_v16  ;;  %v6269_v16 = vld [vmem:[%s7398_s13 + $0x58] sm:$0xff]  }
 0x4b3   : > { %4245 = vmatprep.subr.bf16.mxu1 %v6133_v46  ;;  %v6224_v46 = vld [vmem:[#allocation8 + $0x130] ss:$8 sps:$4 sm:$0xff]  }
 0x4b6   : > { %4246 = vmatpush1.bf16.msra.mxu1 %v6131_v48  ;;  %v6270_v48 = vld [vmem:[%s7398_s13 + $0x18] sm:$0xff]  }
 0x4b7   : > { %4247 = vmatprep.subr.bf16.mxu1 %v6136_v45  ;;  %v6229_v45 = vld [vmem:[#allocation8 + $0x144] ss:$8 sps:$4 sm:$0xff]  }
 0x4b8   : > { %v3984_v25 = vpop.f32.mrb[0].mxu1 }
 0x4b9   : > { %v3986_v38 = vpop.f32.mrb[1].mxu1 }
 0x4ba   : > { %v3988_v0 = vpop.f32.mrb[2].mxu1  ;;  %4248 = vmatpush1.bf16.msra.mxu1 %v6134_v36  ;;  %v6271_v36 = vld [vmem:[%s7398_s13 + $0x60] sm:$0xff]  }
 0x4bb   : > { %v3989_v44 = vpop.f32.mrb[3].mxu1  ;;  %4249 = vmatprep.subr.bf16.mxu1 %v6139_v49  ;;  %v6227_v49 = vld [vmem:[#allocation8 + $0x140] ss:$8 sps:$4 sm:$0xff]   ;;  %v6230_v0 = vld [vmem:[#allocation8 + $0x150] ss:$8 sps:$4 sm:$0xff]  }
 0x4bc   : > { %v6233_v44 = vld [vmem:[#allocation8 + $0x160] ss:$8 sps:$4 sm:$0xff]  }
 0x4be   : > { %4250 = vmatpush1.bf16.msra.mxu1 %v6137_v22  ;;  %v6274_v22 = vld [vmem:[%s7398_s13 + $0x28] sm:$0xff]  }
 0x4bf   : > { %4251 = vmatprep.subr.bf16.mxu1 %v6142_v52  ;;  %v6238_v52 = vld [vmem:[#allocation8 + $0x174] ss:$8 sps:$4 sm:$0xff]  }
 0x4c2   : > { %4252 = vmatpush1.bf16.msra.mxu1 %v6140_v47  ;;  %v6241_v47 = vld [vmem:[#allocation8 + $0x184] ss:$8 sps:$4 sm:$0xff]  }
 0x4c3   : > { %4253 = vmatprep.subr.bf16.mxu1 %v6145_v54  ;;  %v6244_v54 = vld [vmem:[#allocation8 + $0x194] ss:$8 sps:$4 sm:$0xff]  }
 0x4c6   : > { %4254 = vmatpush1.bf16.msra.mxu1 %v6143_v55  ;;  %v6242_v55 = vld [vmem:[#allocation8 + $0x190] ss:$8 sps:$4 sm:$0xff]  }
 0x4c7   : > { %4255 = vmatprep.subr.bf16.mxu1 %v6148_v56  ;;  %v6247_v56 = vld [vmem:[#allocation8 + $0x1a4] ss:$8 sps:$4 sm:$0xff]  }
 0x4ca   : > { %4256 = vmatpush1.bf16.msra.mxu1 %v6146_v58  ;;  %v6250_v58 = vld [vmem:[#allocation8 + $0x1b4] ss:$8 sps:$4 sm:$0xff]  }
 0x4cb   : > { %4257 = vmatprep.subr.bf16.mxu1 %v6151_v7  ;;  %v6248_v7 = vld [vmem:[#allocation8 + $0x1b0] ss:$8 sps:$4 sm:$0xff]  }
 0x4ce   : > { %4258 = vmatpush1.bf16.msra.mxu1 %v6149_v11  ;;  %v6253_v11 = vld [vmem:[#allocation8 + $0x1c4] ss:$8 sps:$4 sm:$0xff]  }
 0x4cf   : > { %4259 = vmatprep.subr.bf16.mxu1 %v6154_v59  ;;  %v6251_v59 = vld [vmem:[#allocation8 + $0x1c0] ss:$8 sps:$4 sm:$0xff]  }
 0x4d2   : > { %4260 = vmatpush1.bf16.msra.mxu1 %v6152_v13  ;;  %v6256_v13 = vld [vmem:[#allocation8 + $0x1d4] ss:$8 sps:$4 sm:$0xff]  }
 0x4d3   : > { %4261 = vmatprep.subr.bf16.mxu1 %v6157_v60  ;;  %v6254_v60 = vld [vmem:[#allocation8 + $0x1d0] ss:$8 sps:$4 sm:$0xff]  }
 0x4d6   : > { %4262 = vmatpush1.bf16.msra.mxu1 %v6155_v17  ;;  %v6259_v17 = vld [vmem:[#allocation8 + $0x1e4] ss:$8 sps:$4 sm:$0xff]  }
 0x4d7   : > { %4263 = vmatprep.subr.bf16.mxu1 %v6160_v61  ;;  %v6257_v61 = vld [vmem:[#allocation8 + $0x1e0] ss:$8 sps:$4 sm:$0xff]  }
 0x4da   : > { %4264 = vmatpush1.bf16.msra.mxu1 %v6158_v18  ;;  %v6262_v18 = vld [vmem:[#allocation8 + $0x1f4] ss:$8 sps:$4 sm:$0xff]  }
 0x4db   : > { %4265 = vmatprep.subr.bf16.mxu1 %v6163_v62  ;;  %v6260_v62 = vld [vmem:[#allocation8 + $0x1f0] ss:$8 sps:$4 sm:$0xff]  }
 0x4de   : > { %4266 = vmatpush1.bf16.msra.mxu1 %v6161_v63  ;;  %v4305_v63 = vcombine.high %v7196_v6, %v7196_v6 }
 0x4df   : > { %4267 = vmatprep.subr.bf16.mxu1 %v6166_v1 }
 0x4e2   : > { %4268 = vmatpush1.bf16.msra.mxu1 %v6164_v2  ;;  %v4306_v2 = vcombine.high %v7199_v15, %v7199_v15 }
 0x4e3   : > { %5574 = vmatprep.subr.bf16.mxu1 %v6263_v35 }
 0x4e5   : > { %4270 = vmatmul.mubr.bf16.vlgmr.msra.gmra.mrb[4].mxu1 %v7184_v33 }
 0x4e6   : > { %5575 = vmatpush3.bf16.msra.mxu1 %v6264_v37 }
 0x4e7   : > { %5576 = vmatprep.subr.bf16.mxu1 %v6265_v23 }
 0x4ea   : > { %5577 = vmatpush3.bf16.msra.mxu1 %v6266_v39 }
 0x4eb   : > { %5578 = vmatprep.subr.bf16.mxu1 %v6267_v12 }
 0x4ee   : > { %5579 = vmatpush3.bf16.msra.mxu1 %v6268_v42 }
 0x4ef   : > { %5580 = vmatprep.subr.bf16.mxu1 %v6269_v16  ;;  %v4849_v16 = vld [vmem:[%s7400_s20] sm:$0x1] }
 0x4f2   : > { %5581 = vmatpush3.bf16.msra.mxu1 %v6270_v48 }
 0x4f3   : > { %5582 = vmatprep.subr.bf16.mxu1 %v6271_v36 }
 0x539   : > { %v4107_v4 = vpop.f32.mrb[0].mxu0 }
 0x53a   : > { %v5638_v5 = vadd.f32 %v4107_v4, %v3984_v25  ;;  %v4109_v9 = vpop.f32.mrb[1].mxu0  ;;  %v6272_v25 = vld [vmem:[%s7398_s13 + $0x20] sm:$0xff]  }
 0x53b   : > { %v5639_v10 = vadd.f32 %v4109_v9, %v3986_v38  ;;  %v4111_v21 = vpop.f32.mrb[2].mxu0  ;;  %v6232_v38 = vld [vmem:[#allocation8 + $0x154] ss:$8 sps:$4 sm:$0xff]   ;;  %5583 = vmatpush3.bf16.msra.mxu1 %v6272_v25 }
 0x53c   : > { %v4278_v24 = vpack.c.bf16 %v5638_v5, %v5638_v5  ;;  %v4112_v27 = vpop.f32.mrb[3].mxu0  ;;  %5584 = vmatprep.subr.bf16.mxu1 %v6273_v8 }
 0x53d   : > { %v4279_v19 = vpack.c.bf16 %v5639_v10, %v5639_v10 }
 0x53e   : > { %v4311_v33 = vadd.bf16 %v7196_v6, %v4278_v24  ;;  %v6275_v6 = vld [vmem:[%s7398_s13 + $0x70] sm:$0xff]  }
 0x53f   : > { %v4312_v20 = vadd.bf16 %v7199_v15, %v4279_v19  ;;  %5585 = vmatpush3.bf16.msra.mxu1 %v6274_v22  ;;  %v6276_v15 = vld [vmem:[%s7398_s13 + $0x30] sm:$0xff]   ;;  %v6277_v19 = vld [vmem:[%s7398_s13 + $0x78] sm:$0xff]  }
 0x540   : > { %v4315_v34 = vmax.bf16 %v6478_v28, %v4311_v33  ;;  %5586 = vmatprep.subr.bf16.mxu1 %v6275_v6  ;;  %v6278_v33 = vld [vmem:[%s7398_s13 + $0x38] sm:$0xff]  }
 0x541   : > { %v4316_v26 = vmax.bf16 %v6478_v28, %v4312_v20  ;;  %v5533_v20 = vld.sshfl [vmem:[%s7399_s10] sm:$0x11 pattern:$0x75316420] }
 0x543   : > { %4736 = vmatprep.mubr.bf16.mxu0 %v4316_v26  ;;  %5587 = vmatpush3.bf16.msra.mxu1 %v6276_v15  ;;  %v4796_v26 = vcombine.high %v5533_v20, %v5533_v20 }
 0x544   : > { %4737 = vmatmul.mubr.bf16.vlgmr.msra.gmra.mrb[4].mxu0 %v4315_v34  ;;  %5588 = vmatprep.subr.bf16.mxu1 %v6277_v19 }
 0x545   : > { %4746 = vmatpush1.bf16.msra.mxu0 %v6215_v29  ;;  %v4803_v29 = vrot.slane %v5533_v20, %v7003_v50  ;;  %v4810_v34 = vrot.slane %v4796_v26, %v7003_v50 }
 0x546   : > { %4747 = vmatprep.subr.bf16.mxu0 %v6220_v32 }
 0x547   : > { %5589 = vmatpush3.bf16.msra.mxu1 %v6278_v33 }
 0x549   : > { %4748 = vmatpush1.bf16.msra.mxu0 %v6218_v31 }
 0x54a   : > { %4749 = vmatprep.subr.bf16.mxu0 %v6223_v40 }
 0x54d   : > { %4750 = vmatpush1.bf16.msra.mxu0 %v6221_v41 }
 0x54e   : > { %4751 = vmatprep.subr.bf16.mxu0 %v6226_v43 }
 0x551   : > { %4752 = vmatpush1.bf16.msra.mxu0 %v6224_v46 }
 0x552   : > { %4753 = vmatprep.subr.bf16.mxu0 %v6229_v45 }
 0x555   : > { %4754 = vmatpush1.bf16.msra.mxu0 %v6227_v49 }
 0x556   : > { %4755 = vmatprep.subr.bf16.mxu0 %v6232_v38 }
 0x559   : > { %4756 = vmatpush1.bf16.msra.mxu0 %v6230_v0 }
 0x55a   : > { %4757 = vmatprep.subr.bf16.mxu0 %v6235_v30 }
 0x55d   : > { %4758 = vmatpush1.bf16.msra.mxu0 %v6233_v44 }
 0x55e   : > { %4759 = vmatprep.subr.bf16.mxu0 %v6238_v52 }
 0x561   : > { %4760 = vmatpush1.bf16.msra.mxu0 %v6236_v53 }
 0x562   : > { %4761 = vmatprep.subr.bf16.mxu0 %v6241_v47 }
 0x565   : > { %4762 = vmatpush1.bf16.msra.mxu0 %v6239_v14 }
 0x566   : > { %4763 = vmatprep.subr.bf16.mxu0 %v6244_v54 }
 0x569   : > { %4764 = vmatpush1.bf16.msra.mxu0 %v6242_v55 }
 0x56a   : > { %4765 = vmatprep.subr.bf16.mxu0 %v6247_v56 }
 0x56d   : > { %4766 = vmatpush1.bf16.msra.mxu0 %v6245_v57 }
 0x56e   : > { %4767 = vmatprep.subr.bf16.mxu0 %v6250_v58 }
 0x571   : > { %4768 = vmatpush1.bf16.msra.mxu0 %v6248_v7 }
 0x572   : > { %4769 = vmatprep.subr.bf16.mxu0 %v6253_v11 }
 0x575   : > { %4770 = vmatpush1.bf16.msra.mxu0 %v6251_v59 }
 0x576   : > { %4771 = vmatprep.subr.bf16.mxu0 %v6256_v13 }
 0x579   : > { %4772 = vmatpush1.bf16.msra.mxu0 %v6254_v60 }
 0x57a   : > { %4773 = vmatprep.subr.bf16.mxu0 %v6259_v17 }
 0x57d   : > { %4774 = vmatpush1.bf16.msra.mxu0 %v6257_v61 }
 0x57e   : > { %4775 = vmatprep.subr.bf16.mxu0 %v6262_v18 }
 0x581   : > { %4776 = vmatpush1.bf16.msra.mxu0 %v6260_v62 }
 0x5b8   : > { %v4271_v1 = vpop.f32.mrb[4].mxu1 }
 0x5b9   : > { %v4280_v3 = vpack.c.bf16 %v4271_v1, %v4271_v1  ;;  %v4273_v51 = vpop.f32.mrb[5].mxu1 }
 0x5ba   : > { %v4281_v4 = vpack.c.bf16 %v4273_v51, %v4273_v51  ;;  %v4275_v5 = vpop.f32.mrb[6].mxu1 }
 0x5bb   : > { %v4313_v9 = vadd.bf16 %v4305_v63, %v4280_v3  ;;  %v4276_v10 = vpop.f32.mrb[7].mxu1 }
 0x5bc   : > { %v4314_v21 = vadd.bf16 %v4306_v2, %v4281_v4 }
 0x5bd   : > { %v4317_v27 = vmax.bf16 %v6478_v28, %v4313_v9 }
 0x5be   : > { %v4318_v24 = vmax.bf16 %v6478_v28, %v4314_v21 }
 0x5c0   : > { %4777 = vmatprep.mubr.bf16.mxu0 %v4318_v24 }
 0x5c1   : > { %4778 = vmatmul.mubr.bf16.vlgmr.msra.gmra.mrb[4].mxu0 %v4317_v27 }
 0x694   : > { %v4779_v32 = vpop.f32.mrb[4].mxu0 }
 0x695   : > { %v4786_v35 = vpack.c.bf16 %v4779_v32, %v4779_v32  ;;  %v4781_v37 = vpop.f32.mrb[5].mxu0 }
 0x696   : > { %v4787_v23 = vpack.c.bf16 %v4781_v37, %v4781_v37  ;;  %v4783_v31 = vpop.f32.mrb[6].mxu0 }
 0x697   : > { %v4813_v39 = vadd.bf16 %v4803_v29, %v4786_v35  ;;  %v4784_v40 = vpop.f32.mrb[7].mxu0 }
 0x698   : > { %v4814_v12 = vadd.bf16 %v4810_v34, %v4787_v23 }
 0x699   : > { %v4815_v42 = vmax.bf16 %v6478_v28, %v4813_v39 }
 0x69a   : > { %v4816_v41 = vmax.bf16 %v6478_v28, %v4814_v12 }
 0x69c   : > { %4978 = vmatprep.mubr.bf16.mxu1 %v4816_v41 }
 0x69d   : > { %4979 = vmatmul.mubr.bf16.vlgmr.msra.gmra.mrb[8].mxu1 %v4815_v42 }
 0x770   : > { %v5590_v43 = vpop.f32.mrb[8].mxu1 }
 0x771   : > { %v5591_v50 = vpop.f32.mrb[9].mxu1 }
 0x772   : > { %v5592_v46 = vadd.f32 %v5591_v50, %v5590_v43  ;;  %v5593_v48 = vpop.f32.mrb[10].mxu1 }
 0x773   : > { %v5594_v45 = vpop.f32.mrb[11].mxu1 }
 0x774   : > { %v4981_v36 = vadd.f32 %v5592_v46, %v4849_v16 }
 0x776   : > { %4986 = vst [vmem:[%s6716_s17] sm:$0x1] %v4981_v36 }
 0x777 PF: > { %s7401_s27 = sld [smem:[#allocation19_spill]]  ;;  %s5550_s21 = sshll.u32 %s6453_s29, 4 }
 0x778   : > { %s7402_s18 = sld [smem:[#allocation26_spill]]  ;;  %s5000_s16 = sshll.u32 %s6716_s17, 4  ;;  %s5001_s16 = int_to_ptr.vmem [resolvable:$true] %s5000_s16 }
 0x779   : > { %s4988_s19 = scalar_lea.sflag [#allocation5], %s510_s30  ;;  %s6363_s28 = scalar_lea.vmem %s5001_s16, 16 }
 0x77a   : > { %p6364_p1 = scmp.ne.s32.totalorder %s5001_s16, %s6363_s28  ;;  %s6479_s25 = smov [#allocation9]  }
 0x77b   : > { %s6367_s22 = sshll.u32 %s6479_s25, 4  ;;  %s6368_s22 = int_to_ptr.vmem [resolvable:$false] %s6367_s22 }
 0x77c   : > { %s6369_s12 = scalar_lea.vmem %s6368_s22, 32  ;;  %p6370_p7 = scmp.lt.s32.totalorder %s5001_s16, %s6368_s22 }
 0x77d   : > { %p7403_p4 = scmp.ne.s32.totalorder %s7401_s27, 0  ;;  %p6371_p8 = scmp.lt.s32.totalorder %s6369_s12, %s6363_s28 }
 0x77e   : > { %s7274_s14 = scalar_lea.hbm %s7402_s18, %s5550_s21 }
 0x77f   : > { %p6365_p5 = pnand %p6364_p1, %p7403_p4  ;;  %p6372_p11 = por %p6371_p8, %p6370_p7 }
 0x781   : > { %p6366_p6 = pneg %p6365_p5 }
 0x783   : > { %p6373_p12 = pnand %p6372_p11, %p6366_p6 }
 0x785   : > { %6376 = shalt.err (!%p6373_p12)
}
 0x786   : > { %s6377_s29 = scalar_lea.hbm %s7274_s14, 16  ;;  %s6381_s10 = scalar_lea.hbm %s7402_s18, 32 }
 0x787   : > { %p6378_p3 = scmp.ne.s32.totalorder %s7274_s14, %s6377_s29  ;;  %p6382_p2 = scmp.lt.u32.totalorder %s7274_s14, %s7402_s18 }
 0x788   : > { %p6383_p10 = scmp.lt.u32.totalorder %s6381_s10, %s6377_s29  ;;  %p6385_p1 = scmp.lt.u32.totalorder %s6377_s29, %s7274_s14 }
 0x789   : > { %p6379_p9 = pnand %p6378_p3, %p7403_p4 }
 0x78a   : > { %p6384_p13 = por %p6383_p10, %p6382_p2 }
 0x78b   : > { %p6380_p0 = pneg %p6379_p9 }
 0x78c   : > { %p6386_p5 = por %p6385_p1, %p6384_p13 }
 0x78e   : > { %p6387_p6 = pnand %p6386_p5, %p6380_p0 }
 0x790   : > { %6390 = shalt.err (!%p6387_p6)
}
 0x791   : > { %5678 = dma.vmem_to_hbm [thread:$0]  (%p7403_p4), %s5001_s16, 16, %s7274_s14, %s4988_s19  }
 0x792 PF: > { %s7404_s20 = sld [smem:[#allocation17_spill]]  ;;  %s7405_s21 = sld [smem:[#allocation13_spill]] }
 0x793   : > { %s7406_s15 = sld [smem:[#allocation21_spill]] }
 0x798   : > { %p5700_p7 = scmp.ge.s32.totalorder %s7404_s20, 2  ;;  %s5012_s24 = sand.u32 1, %s7405_s21  }
 0x799   : > { %p7407_p8 = scmp.ne.s32.totalorder %s7406_s15, 0  ;;  %s5013_s28 = scalar_lea.sflag [#allocation5], %s5012_s24 }
 0x79b   : > { %p5691_p11 = pnand %p5700_p7, %p7407_p8 }
 0x79d   : > { %6432 = dma.done.wait (!%p5691_p11), %s5013_s28, 16  }
 0x79e   : > { %6434 = vsyncadd (!%p5691_p11), %s5013_s28, 4294967280  ;;  %s28_s15 = sadd.s32 1, %s7404_s20   ;;  %s7408_s22 = sld [smem:[#allocation14_spill]] }
 0x79f   : > { %p25_p12 = scmp.ge.s32.totalorder %s28_s15, 6   ;;  %s7409_s27 = sld [smem:[#allocation22_spill]] }
 0x7a0   : > { %s7410_s28 = sld [smem:[#allocation15_spill]]  ;;  %s7411_s29 = sld [smem:[#allocation16_spill]] }
 0x7a1   : > { %s7412_s30 = sld [smem:[#allocation18_spill]]  ;;  %s7413_s14 = sld [smem:[#allocation20_spill]] }
 0x7a2   : > { %s7414_s25 = smov %s6441_s26  ;;  %27 = sbr.rel (!%p25_p12) target bundleno = 12 (0xc), region = 128 }
 0x7a4   : > { %s7415_s26 = smov %s7408_s22 }
 0x7a9   :  { %5017 = vsyncpa [#allocation4], 1 }
 0x7aa   :  { %5019 = vsyncpa [#allocation4 + $0x1], 1 }
 0x7ab   :  { %5020 = vsyncpa [#allocation7], 1 }
 0x7ac   :  { %5021 = vsyncpa [#allocation5], 1 }
 0x7ad   :  { %5023 = vsyncpa [#allocation5 + $0x1], 1 }

</bundles_post_ra>
